<compile_context>
chip_gen: v7x
topology: tpu7x:2x2x1
jax: 0.10.0
libtpu: 0.0.40
codegen_flags: <defaults>
</compile_context>

<pallas_src>
import math

import jax
import jax.numpy as jnp
from jax import lax
from jax.experimental import pallas as pl
from jax.experimental.pallas import tpu as pltpu


# ----------------------------------------------------------------------------
# Kernel
# ----------------------------------------------------------------------------
def _make_gnn_kernel(M, H, step):
    def kernel(bd_in_ref, bd_out_ref, h_ref, we_ref, wg_ref, be_ref, bg_ref,
               out_ref):
        f32 = jnp.float32
        cdt = we_ref.dtype                      # matmul operand dtype
        h = h_ref[...].astype(f32)              # (M, H) f32 carry (small)

        def one_step(h):
            hc = h.astype(cdt)
            # Fused linear_edge_in / linear_edge_out: one (M,H)@(H,2H) dot;
            # lanes 0:H are edge_in, H:2H are edge_out.  Edge biases cannot be
            # folded past the adjacency matmul, so they are added here.
            e = jnp.dot(hc, we_ref[...], preferred_element_type=f32)
            e = e + be_ref[...]
            ec = e.astype(cdt)
            # Block-diagonal adjacency matmuls — one full-K dot per direction
            # (operands read straight from VMEM refs at point of use).
            in_in = jnp.dot(bd_in_ref[...], ec[:, 0:H],
                            preferred_element_type=f32)
            in_out = jnp.dot(bd_out_ref[...], ec[:, H:2 * H],
                             preferred_element_type=f32)
            # Fused gate projection: (M,3H)@(3H,4H); result columns are
            # [r | z | i_n | h_n].  b_iah/b_ioh/b_ih/b_hh were folded
            # host-side into the (1,4H) gate-bias row.
            x = jnp.concatenate(
                [in_in.astype(cdt), in_out.astype(cdt), hc], axis=1)
            g = jnp.dot(x, wg_ref[...], preferred_element_type=f32)
            g = g + bg_ref[...]
            reset_gate = jax.nn.sigmoid(g[:, 0:H])
            input_gate = jax.nn.sigmoid(g[:, H:2 * H])
            new_gate = jnp.tanh(g[:, 2 * H:3 * H]
                                + reset_gate * g[:, 3 * H:4 * H])
            return (1.0 - input_gate) * h + input_gate * new_gate

        if step <= 4:
            for _ in range(step):           # small static unroll
                h = one_step(h)
        else:
            # Larger step: bound live ranges with a visible loop.
            h = lax.fori_loop(0, step, lambda i, hh: one_step(hh), h,
                              unroll=True)

        # NOTE: out block is (M, H) -> only H of 128 lanes; at ~M*H*4 bytes per
        # tile the masked-store cost is negligible, so no relayout is done.
        out_ref[...] = h.astype(out_ref.dtype)

    return kernel


# ----------------------------------------------------------------------------
# Host-side packing: fused weights, fused biases, block-diagonal adjacency
# ----------------------------------------------------------------------------
def _pack_params(params, H, compute_dtype):
    W = params["w_ih"]                      # (3H, 2H)
    U = params["w_hh"]                      # (3H, H)
    b_ih, b_hh = params["b_ih"], params["b_hh"]
    b_iah, b_ioh = params["b_iah"], params["b_ioh"]

    def rows(g):
        return slice(g * H, (g + 1) * H)

    # Fused edge weight: hc @ [Wein.T | Weout.T]  -> (H, 2H)
    w_edge = jnp.concatenate(
        [params["w_edge_in"].T, params["w_edge_out"].T], axis=1)

    # Fused gate weight (3H, 4H): row blocks pair with [in_in; in_out; hc];
    # column blocks are [r | z | i_n | h_n].  The h_n column keeps only U_n
    # (it is scaled by the reset gate before tanh, so it cannot be summed in).
    zeros = jnp.zeros((H, H), dtype=W.dtype)

    def gate_col(g, include_u):
        wi = W[rows(g), 0:H].T                      # pairs with in_in
        wo = W[rows(g), H:2 * H].T                  # pairs with in_out
        uu = U[rows(g), :].T if include_u else zeros
        return jnp.concatenate([wi, wo, uu], axis=0)  # (3H, H)

    col_hn = jnp.concatenate([zeros, zeros, U[rows(2), :].T], axis=0)
    w_gate = jnp.concatenate(
        [gate_col(0, True), gate_col(1, True), gate_col(2, False), col_hn],
        axis=1)                                      # (3H, 4H)

    # Bias rows (kept in f32).  b_iah/b_ioh are folded through w_ih.
    b_edge = jnp.concatenate(
        [params["b_edge_in"], params["b_edge_out"]])[None, :]   # (1, 2H)

    def fold(g):
        return (b_iah @ W[rows(g), 0:H].T
                + b_ioh @ W[rows(g), H:2 * H].T + b_ih[rows(g)])

    b_gate = jnp.concatenate([
        fold(0) + b_hh[0:H],          # r
        fold(1) + b_hh[H:2 * H],      # z
        fold(2),                      # i_n
        b_hh[2 * H:3 * H],            # h_n
    ])[None, :]                                         # (1, 4H)

    return (w_edge.astype(compute_dtype), w_gate.astype(compute_dtype),
            b_edge.astype(jnp.float32), b_gate.astype(jnp.float32))


def _block_diag(a, G, TB):
    """(B, N, N) -> (G*TB*N, TB*N), per-group block-diagonal layout."""
    B, N, _ = a.shape
    ag = a.reshape(G, TB, N, N)
    eye = jnp.eye(TB, dtype=a.dtype)
    bd = ag[:, :, :, None, :] * eye[None, :, None, :, None]   # (G,TB,N,TB,N)
    return bd.reshape(G * TB * N, TB * N)


# ----------------------------------------------------------------------------
# Generation-aware configuration
# ----------------------------------------------------------------------------
def _tpu_config():
    kind = ""
    try:
        kind = jax.devices()[0].device_kind.lower()
    except Exception:
        pass
    if "v7" in kind:
        # 2 TensorCores per chip, 64 MiB physical VMEM: shard the grid and
        # keep the scoped limit well under physical.
        return {"multi_tc": True, "vmem_limit": 48 << 20, "prefer_bf16": True}
    if any(t in kind for t in ("v6", "v5 lite", "v5e", "v5lite", "v4")):
        # Single TensorCore, 128 MiB physical VMEM.
        return {"multi_tc": False, "vmem_limit": 64 << 20,
                "prefer_bf16": "v6" in kind}
    # Unknown / older generation: stay at a conservative scoped limit.
    return {"multi_tc": False, "vmem_limit": 32 << 20, "prefer_bf16": False}


def _choose_tb(B, N, H, itemsize, multi_tc, vmem_limit):
    budget = max(4 << 20, vmem_limit // 2)

    def tile_bytes(tb):
        m = tb * N
        # BD(A_in) + BD(A_out) + hidden-in + out blocks, double-buffered,
        # plus the (double-buffered) fused weight / bias blocks.
        data = 2 * (2 * m * m + 2 * m * H) * itemsize
        weights = 2 * (H * 2 * H + 3 * H * 4 * H) * itemsize + 2 * 6 * H * 4
        return data + weights

    divisors = [d for d in range(1, B + 1) if B % d == 0]
    if multi_tc and B >= 2:
        # v7x: keep G >= 2 and even so both TensorCores get equal tiles.
        even = [d for d in divisors if (B // d) >= 2 and (B // d) % 2 == 0]
        cands = even or [d for d in divisors if (B // d) >= 2] or divisors
    else:
        # Single TC: a bigger TB (ideally TB = B, grid=(1,)) is strictly
        # better — extra grid steps are just serial-loop overhead.
        cands = divisors
    best = 1
    for d in cands:
        if tile_bytes(d) <= budget:
            best = max(best, d)
    return best


# ----------------------------------------------------------------------------
# Wrapper
# ----------------------------------------------------------------------------
def gnn_forward_pallas(A, hidden, params, step=1, compute_dtype=None):
    B, N, H = hidden.shape
    assert A.shape == (B, N, 2 * N)
    # TODO(synk): pad N host-side if real session graphs have N % 8 != 0.
    assert N % 8 == 0, "N must be a multiple of 8"

    cfg = _tpu_config()
    if compute_dtype is None:
        compute_dtype = jnp.bfloat16 if cfg["prefer_bf16"] else jnp.float32
    itemsize = jnp.dtype(compute_dtype).itemsize

    TB = _choose_tb(B, N, H, itemsize, cfg["multi_tc"], cfg["vmem_limit"])
    G = B // TB
    M = TB * N

    # Host-side layout plumbing (XLA ops, outside the kernel).
    bd_in = _block_diag(A[:, :, :N].astype(compute_dtype), G, TB)
    bd_out = _block_diag(A[:, :, N:2 * N].astype(compute_dtype), G, TB)
    h2d = hidden.reshape(B * N, H).astype(compute_dtype)
    w_edge, w_gate, b_edge, b_gate = _pack_params(params, H, compute_dtype)

    kernel = _make_gnn_kernel(M, H, step)

    grid_spec = pltpu.PrefetchScalarGridSpec(
        num_scalar_prefetch=0,
        grid=(G,),
        in_specs=[
            pl.BlockSpec((M, M), lambda g: (g, 0)),           # BD(A_in)
            pl.BlockSpec((M, M), lambda g: (g, 0)),           # BD(A_out)
            pl.BlockSpec((M, H), lambda g: (g, 0)),           # hidden rows
            pl.BlockSpec(w_edge.shape, lambda g: (0, 0)),     # fused edge W
            pl.BlockSpec(w_gate.shape, lambda g: (0, 0)),     # fused gate W
            pl.BlockSpec(b_edge.shape, lambda g: (0, 0)),     # edge bias row
            pl.BlockSpec(b_gate.shape, lambda g: (0, 0)),     # gate bias row
        ],
        out_specs=pl.BlockSpec((M, H), lambda g: (g, 0)),
    )

    out2d = pl.pallas_call(
        kernel,
        out_shape=jax.ShapeDtypeStruct((B * N, H), jnp.float32),
        grid_spec=grid_spec,
        compiler_params=pltpu.CompilerParams(
            dimension_semantics=("parallel",),
            vmem_limit_bytes=cfg["vmem_limit"]),
    )(bd_in, bd_out, h2d, w_edge, w_gate, b_edge, b_gate)

    return out2d.reshape(B, N, H)


# ----------------------------------------------------------------------------
# Pure-JAX reference (mirrors the PyTorch forward exactly)
# ----------------------------------------------------------------------------
def gnn_forward_ref(A, hidden, params, step=1):
    H = hidden.shape[-1]
    N = A.shape[1]
    for _ in range(step):
        edge_in = hidden @ params["w_edge_in"].T + params["b_edge_in"]
        edge_out = hidden @ params["w_edge_out"].T + params["b_edge_out"]
        input_in = jnp.matmul(A[:, :, :N], edge_in) + params["b_iah"]
        input_out = jnp.matmul(A[:, :, N:2 * N], edge_out) + params["b_ioh"]
        inputs = jnp.concatenate([input_in, input_out], axis=2)
        gi = inputs @ params["w_ih"].T + params["b_ih"]
        gh = hidden @ params["w_hh"].T + params["b_hh"]
        i_r, i_i, i_n = gi[..., :H], gi[..., H:2 * H], gi[..., 2 * H:]
        h_r, h_i, h_n = gh[..., :H], gh[..., H:2 * H], gh[..., 2 * H:]
        reset_gate = jax.nn.sigmoid(i_r + h_r)
        input_gate = jax.nn.sigmoid(i_i + h_i)
        new_gate = jnp.tanh(i_n + reset_gate * h_n)
        hidden = (1 - input_gate) * hidden + input_gate * new_gate
    return hidden


def init_params(key, hidden_size):
    H = hidden_size
    stdv = 1.0 / math.sqrt(H)
    keys = jax.random.split(key, 10)

    def u(k, shape):
        return jax.random.uniform(k, shape, jnp.float32, -stdv, stdv)

    return {
        "w_ih": u(keys[0], (3 * H, 2 * H)),
        "w_hh": u(keys[1], (3 * H, H)),
        "b_ih": u(keys[2], (3 * H,)),
        "b_hh": u(keys[3], (3 * H,)),
        "b_iah": u(keys[4], (H,)),
        "b_ioh": u(keys[5], (H,)),
        "w_edge_in": u(keys[6], (H, H)),
        "b_edge_in": u(keys[7], (H,)),
        "w_edge_out": u(keys[8], (H, H)),
        "b_edge_out": u(keys[9], (H,)),
    }


if __name__ == "__main__":
    B, N, H = 16, 16, 32
    STEP = 2

    root = jax.random.PRNGKey(0)
    k_params, k_A, k_h = jax.random.split(root, 3)

    params = init_params(k_params, H)
    A = jax.random.uniform(k_A, (B, N, 2 * N), jnp.float32, 0.0, 1.0)
    hidden = jax.random.normal(k_h, (B, N, H), jnp.float32)

    ref = gnn_forward_ref(A, hidden, params, step=STEP)

    # f32 operand path: must match the reference tightly (fusions only
    # change summation order).
    out = gnn_forward_pallas(A, hidden, params, step=STEP,
                             compute_dtype=jnp.float32)
    out = jax.block_until_ready(out)
    assert out.shape == (B, N, H)
    assert jnp.allclose(out, ref, atol=2e-4, rtol=2e-4), "f32 mismatch vs ref"

    # bf16 matmul-operand path (v6e/v7x default): loose sanity check only.
    out_bf16 = gnn_forward_pallas(A, hidden, params, step=STEP,
                                  compute_dtype=jnp.bfloat16)
    out_bf16 = jax.block_until_ready(out_bf16)
    assert jnp.allclose(out_bf16, ref, atol=0.25, rtol=0.05), "bf16 sanity fail"

    print("KERNEL_OK")
</pallas_src>

<mosaic_0001>
module attributes {stable_mosaic.version = 11 : i64} {
  func.func @kernel(%arg0: i32, %arg1: memref<256x256xf32, #tpu.memory_space<vmem>>, %arg2: memref<256x256xf32, #tpu.memory_space<vmem>>, %arg3: memref<256x32xf32, #tpu.memory_space<vmem>>, %arg4: memref<32x64xf32, #tpu.memory_space<vmem>>, %arg5: memref<96x128xf32, #tpu.memory_space<vmem>>, %arg6: memref<1x64xf32, #tpu.memory_space<vmem>>, %arg7: memref<1x128xf32, #tpu.memory_space<vmem>>, %arg8: memref<256x32xf32, #tpu.memory_space<vmem>>) attributes {dimension_semantics = [#tpu.dimension_semantics<parallel>], iteration_bounds = array<i64: 1>, scalar_prefetch = 0 : i64, scratch_operands = 0 : i64, tpu.core_type = #tpu.core_type<tc>, window_params = [{transform_indices = @transform_0, window_bounds = array<i64: 256, 256>}, {transform_indices = @transform_1, window_bounds = array<i64: 256, 256>}, {transform_indices = @transform_2, window_bounds = array<i64: 256, 32>}, {pipeline_mode = #tpu.pipeline_mode<synchronous>, transform_indices = @transform_3, window_bounds = array<i64: 32, 64>}, {pipeline_mode = #tpu.pipeline_mode<synchronous>, transform_indices = @transform_4, window_bounds = array<i64: 96, 128>}, {pipeline_mode = #tpu.pipeline_mode<synchronous>, transform_indices = @transform_5, window_bounds = array<i64: 1, 64>}, {pipeline_mode = #tpu.pipeline_mode<synchronous>, transform_indices = @transform_6, window_bounds = array<i64: 1, 128>}, {transform_indices = @transform_7, window_bounds = array<i64: 256, 32>}]} {
    %c0 = arith.constant 0 : index
    %c0_0 = arith.constant 0 : index
    %0 = vector.load %arg3[%c0, %c0_0] : memref<256x32xf32, #tpu.memory_space<vmem>>, vector<256x32xf32>
    %c0_1 = arith.constant 0 : index
    %c0_2 = arith.constant 0 : index
    %1 = vector.load %arg4[%c0_1, %c0_2] : memref<32x64xf32, #tpu.memory_space<vmem>>, vector<32x64xf32>
    %cst = arith.constant dense<0.000000e+00> : vector<256x64xf32>
    %2 = tpu.matmul %0, %1, %cst {dimension_numbers = #tpu.dot_dimension_numbers<[1], [0], [0], [1], [0, 0, 1, 1], [], []>} : vector<256x32xf32>, vector<32x64xf32>, vector<256x64xf32> -> vector<256x64xf32>
    %c0_3 = arith.constant 0 : index
    %c0_4 = arith.constant 0 : index
    %3 = vector.load %arg6[%c0_3, %c0_4] : memref<1x64xf32, #tpu.memory_space<vmem>>, vector<1x64xf32>
    %4 = vector.broadcast %3 : vector<1x64xf32> to vector<256x64xf32>
    %5 = arith.addf %2, %4 : vector<256x64xf32>
    %c0_5 = arith.constant 0 : index
    %c0_6 = arith.constant 0 : index
    %6 = vector.load %arg1[%c0_5, %c0_6] : memref<256x256xf32, #tpu.memory_space<vmem>>, vector<256x256xf32>
    %7 = vector.extract_strided_slice %5 {offsets = [0, 0], sizes = [256, 32], strides = [1, 1]} : vector<256x64xf32> to vector<256x32xf32>
    %cst_7 = arith.constant dense<0.000000e+00> : vector<256x32xf32>
    %8 = tpu.matmul %6, %7, %cst_7 {dimension_numbers = #tpu.dot_dimension_numbers<[1], [0], [0], [1], [0, 0, 1, 1], [], []>} : vector<256x256xf32>, vector<256x32xf32>, vector<256x32xf32> -> vector<256x32xf32>
    %c0_8 = arith.constant 0 : index
    %c0_9 = arith.constant 0 : index
    %9 = vector.load %arg2[%c0_8, %c0_9] : memref<256x256xf32, #tpu.memory_space<vmem>>, vector<256x256xf32>
    %10 = vector.extract_strided_slice %5 {offsets = [0, 32], sizes = [256, 32], strides = [1, 1]} : vector<256x64xf32> to vector<256x32xf32>
    %cst_10 = arith.constant dense<0.000000e+00> : vector<256x32xf32>
    %11 = tpu.matmul %9, %10, %cst_10 {dimension_numbers = #tpu.dot_dimension_numbers<[1], [0], [0], [1], [0, 0, 1, 1], [], []>} : vector<256x256xf32>, vector<256x32xf32>, vector<256x32xf32> -> vector<256x32xf32>
    %12 = tpu.concatenate %8, %11, %0 in 1 : vector<256x32xf32>, vector<256x32xf32>, vector<256x32xf32> -> vector<256x96xf32>
    %c0_11 = arith.constant 0 : index
    %c0_12 = arith.constant 0 : index
    %13 = vector.load %arg5[%c0_11, %c0_12] : memref<96x128xf32, #tpu.memory_space<vmem>>, vector<96x128xf32>
    %cst_13 = arith.constant dense<0.000000e+00> : vector<256x128xf32>
    %14 = tpu.matmul %12, %13, %cst_13 {dimension_numbers = #tpu.dot_dimension_numbers<[1], [0], [0], [1], [0, 0, 1, 1], [], []>} : vector<256x96xf32>, vector<96x128xf32>, vector<256x128xf32> -> vector<256x128xf32>
    %c0_14 = arith.constant 0 : index
    %c0_15 = arith.constant 0 : index
    %15 = vector.load %arg7[%c0_14, %c0_15] : memref<1x128xf32, #tpu.memory_space<vmem>>, vector<1x128xf32>
    %16 = vector.broadcast %15 : vector<1x128xf32> to vector<256x128xf32>
    %17 = arith.addf %14, %16 : vector<256x128xf32>
    %18 = vector.extract_strided_slice %17 {offsets = [0, 0], sizes = [256, 32], strides = [1, 1]} : vector<256x128xf32> to vector<256x32xf32>
    %19 = arith.negf %18 : vector<256x32xf32>
    %20 = math.exp %19 : vector<256x32xf32>
    %cst_16 = arith.constant 1.000000e+00 : f32
    %21 = vector.broadcast %cst_16 : f32 to vector<256x32xf32>
    %22 = arith.addf %21, %20 : vector<256x32xf32>
    %23 = arith.divf %21, %22 : vector<256x32xf32>
    %24 = vector.extract_strided_slice %17 {offsets = [0, 32], sizes = [256, 32], strides = [1, 1]} : vector<256x128xf32> to vector<256x32xf32>
    %25 = arith.negf %24 : vector<256x32xf32>
    %26 = math.exp %25 : vector<256x32xf32>
    %cst_17 = arith.constant 1.000000e+00 : f32
    %27 = vector.broadcast %cst_17 : f32 to vector<256x32xf32>
    %28 = arith.addf %27, %26 : vector<256x32xf32>
    %29 = arith.divf %27, %28 : vector<256x32xf32>
    %30 = vector.extract_strided_slice %17 {offsets = [0, 64], sizes = [256, 32], strides = [1, 1]} : vector<256x128xf32> to vector<256x32xf32>
    %31 = vector.extract_strided_slice %17 {offsets = [0, 96], sizes = [256, 32], strides = [1, 1]} : vector<256x128xf32> to vector<256x32xf32>
    %32 = arith.mulf %23, %31 : vector<256x32xf32>
    %33 = arith.addf %30, %32 : vector<256x32xf32>
    %34 = math.tanh %33 : vector<256x32xf32>
    %cst_18 = arith.constant 1.000000e+00 : f32
    %35 = vector.broadcast %cst_18 : f32 to vector<256x32xf32>
    %36 = arith.subf %35, %29 : vector<256x32xf32>
    %37 = arith.mulf %36, %0 : vector<256x32xf32>
    %38 = arith.mulf %29, %34 : vector<256x32xf32>
    %39 = arith.addf %37, %38 : vector<256x32xf32>
    %c0_19 = arith.constant 0 : index
    %c0_20 = arith.constant 0 : index
    %40 = vector.load %arg4[%c0_19, %c0_20] : memref<32x64xf32, #tpu.memory_space<vmem>>, vector<32x64xf32>
    %cst_21 = arith.constant dense<0.000000e+00> : vector<256x64xf32>
    %41 = tpu.matmul %39, %40, %cst_21 {dimension_numbers = #tpu.dot_dimension_numbers<[1], [0], [0], [1], [0, 0, 1, 1], [], []>} : vector<256x32xf32>, vector<32x64xf32>, vector<256x64xf32> -> vector<256x64xf32>
    %c0_22 = arith.constant 0 : index
    %c0_23 = arith.constant 0 : index
    %42 = vector.load %arg6[%c0_22, %c0_23] : memref<1x64xf32, #tpu.memory_space<vmem>>, vector<1x64xf32>
    %43 = vector.broadcast %42 : vector<1x64xf32> to vector<256x64xf32>
    %44 = arith.addf %41, %43 : vector<256x64xf32>
    %c0_24 = arith.constant 0 : index
    %c0_25 = arith.constant 0 : index
    %45 = vector.load %arg1[%c0_24, %c0_25] : memref<256x256xf32, #tpu.memory_space<vmem>>, vector<256x256xf32>
    %46 = vector.extract_strided_slice %44 {offsets = [0, 0], sizes = [256, 32], strides = [1, 1]} : vector<256x64xf32> to vector<256x32xf32>
    %cst_26 = arith.constant dense<0.000000e+00> : vector<256x32xf32>
    %47 = tpu.matmul %45, %46, %cst_26 {dimension_numbers = #tpu.dot_dimension_numbers<[1], [0], [0], [1], [0, 0, 1, 1], [], []>} : vector<256x256xf32>, vector<256x32xf32>, vector<256x32xf32> -> vector<256x32xf32>
    %c0_27 = arith.constant 0 : index
    %c0_28 = arith.constant 0 : index
    %48 = vector.load %arg2[%c0_27, %c0_28] : memref<256x256xf32, #tpu.memory_space<vmem>>, vector<256x256xf32>
    %49 = vector.extract_strided_slice %44 {offsets = [0, 32], sizes = [256, 32], strides = [1, 1]} : vector<256x64xf32> to vector<256x32xf32>
    %cst_29 = arith.constant dense<0.000000e+00> : vector<256x32xf32>
    %50 = tpu.matmul %48, %49, %cst_29 {dimension_numbers = #tpu.dot_dimension_numbers<[1], [0], [0], [1], [0, 0, 1, 1], [], []>} : vector<256x256xf32>, vector<256x32xf32>, vector<256x32xf32> -> vector<256x32xf32>
    %51 = tpu.concatenate %47, %50, %39 in 1 : vector<256x32xf32>, vector<256x32xf32>, vector<256x32xf32> -> vector<256x96xf32>
    %c0_30 = arith.constant 0 : index
    %c0_31 = arith.constant 0 : index
    %52 = vector.load %arg5[%c0_30, %c0_31] : memref<96x128xf32, #tpu.memory_space<vmem>>, vector<96x128xf32>
    %cst_32 = arith.constant dense<0.000000e+00> : vector<256x128xf32>
    %53 = tpu.matmul %51, %52, %cst_32 {dimension_numbers = #tpu.dot_dimension_numbers<[1], [0], [0], [1], [0, 0, 1, 1], [], []>} : vector<256x96xf32>, vector<96x128xf32>, vector<256x128xf32> -> vector<256x128xf32>
    %c0_33 = arith.constant 0 : index
    %c0_34 = arith.constant 0 : index
    %54 = vector.load %arg7[%c0_33, %c0_34] : memref<1x128xf32, #tpu.memory_space<vmem>>, vector<1x128xf32>
    %55 = vector.broadcast %54 : vector<1x128xf32> to vector<256x128xf32>
    %56 = arith.addf %53, %55 : vector<256x128xf32>
    %57 = vector.extract_strided_slice %56 {offsets = [0, 0], sizes = [256, 32], strides = [1, 1]} : vector<256x128xf32> to vector<256x32xf32>
    %58 = arith.negf %57 : vector<256x32xf32>
    %59 = math.exp %58 : vector<256x32xf32>
    %cst_35 = arith.constant 1.000000e+00 : f32
    %60 = vector.broadcast %cst_35 : f32 to vector<256x32xf32>
    %61 = arith.addf %60, %59 : vector<256x32xf32>
    %62 = arith.divf %60, %61 : vector<256x32xf32>
    %63 = vector.extract_strided_slice %56 {offsets = [0, 32], sizes = [256, 32], strides = [1, 1]} : vector<256x128xf32> to vector<256x32xf32>
    %64 = arith.negf %63 : vector<256x32xf32>
    %65 = math.exp %64 : vector<256x32xf32>
    %cst_36 = arith.constant 1.000000e+00 : f32
    %66 = vector.broadcast %cst_36 : f32 to vector<256x32xf32>
    %67 = arith.addf %66, %65 : vector<256x32xf32>
    %68 = arith.divf %66, %67 : vector<256x32xf32>
    %69 = vector.extract_strided_slice %56 {offsets = [0, 64], sizes = [256, 32], strides = [1, 1]} : vector<256x128xf32> to vector<256x32xf32>
    %70 = vector.extract_strided_slice %56 {offsets = [0, 96], sizes = [256, 32], strides = [1, 1]} : vector<256x128xf32> to vector<256x32xf32>
    %71 = arith.mulf %62, %70 : vector<256x32xf32>
    %72 = arith.addf %69, %71 : vector<256x32xf32>
    %73 = math.tanh %72 : vector<256x32xf32>
    %cst_37 = arith.constant 1.000000e+00 : f32
    %74 = vector.broadcast %cst_37 : f32 to vector<256x32xf32>
    %75 = arith.subf %74, %68 : vector<256x32xf32>
    %76 = arith.mulf %75, %39 : vector<256x32xf32>
    %77 = arith.mulf %68, %73 : vector<256x32xf32>
    %78 = arith.addf %76, %77 : vector<256x32xf32>
    %c0_38 = arith.constant 0 : index
    %c0_39 = arith.constant 0 : index
    %79 = vector.load %arg8[%c0_38, %c0_39] : memref<256x32xf32, #tpu.memory_space<vmem>>, vector<256x32xf32>
    tpu.vector_store %arg8[%c0_38, %c0_39], %78 {strides = array<i32>} : memref<256x32xf32, #tpu.memory_space<vmem>>, vector<256x32xf32>,
    return
  }
  func.func @transform_0(%arg0: i32) -> (i32, i32) {
    %c0_i32 = arith.constant 0 : i32
    %c0_i32_0 = arith.constant 0 : i32
    return %arg0, %c0_i32 : i32, i32
  }
  func.func @transform_1(%arg0: i32) -> (i32, i32) {
    %c0_i32 = arith.constant 0 : i32
    %c0_i32_0 = arith.constant 0 : i32
    return %arg0, %c0_i32 : i32, i32
  }
  func.func @transform_2(%arg0: i32) -> (i32, i32) {
    %c0_i32 = arith.constant 0 : i32
    %c0_i32_0 = arith.constant 0 : i32
    return %arg0, %c0_i32 : i32, i32
  }
  func.func @transform_3(%arg0: i32) -> (i32, i32) {
    %c0_i32 = arith.constant 0 : i32
    %c0_i32_0 = arith.constant 0 : i32
    %c0_i32_1 = arith.constant 0 : i32
    return %c0_i32, %c0_i32_0 : i32, i32
  }
  func.func @transform_4(%arg0: i32) -> (i32, i32) {
    %c0_i32 = arith.constant 0 : i32
    %c0_i32_0 = arith.constant 0 : i32
    %c0_i32_1 = arith.constant 0 : i32
    return %c0_i32, %c0_i32_0 : i32, i32
  }
  func.func @transform_5(%arg0: i32) -> (i32, i32) {
    %c0_i32 = arith.constant 0 : i32
    %c0_i32_0 = arith.constant 0 : i32
    %c0_i32_1 = arith.constant 0 : i32
    return %c0_i32, %c0_i32_0 : i32, i32
  }
  func.func @transform_6(%arg0: i32) -> (i32, i32) {
    %c0_i32 = arith.constant 0 : i32
    %c0_i32_0 = arith.constant 0 : i32
    %c0_i32_1 = arith.constant 0 : i32
    return %c0_i32, %c0_i32_0 : i32, i32
  }
  func.func @transform_7(%arg0: i32) -> (i32, i32) {
    %c0_i32 = arith.constant 0 : i32
    %c0_i32_0 = arith.constant 0 : i32
    return %arg0, %c0_i32 : i32, i32
  }
}

</mosaic_0001>

<bundles_post_ra>
// kernel: tpu_custom_call.1
= control target key start
LH: loop header
LB: loop body
LE: loop exit
PB: predicated region body
PF: predicated region fallthrough
CT: control target
= control target key end

     0   :  { %12 = vsyncpa [#allocation3], 0  ;;  %s9587_s0 = inlined_call_operand.hbm [shape: f32[256,256], index: 0, kind: input, shape index: {}]   ;;  %s9588_s1 = inlined_call_operand.hbm [shape: f32[256,256], index: 1, kind: input, shape index: {}]   ;;  %s9589_s2 = inlined_call_operand.vmem [shape: f32[256,32], index: 2, kind: input, shape index: {}]   ;;  %s9590_s3 = inlined_call_operand.vmem [shape: f32[32,64], index: 3, kind: input, shape index: {}]   ;;  %s9591_s4 = inlined_call_operand.vmem [shape: f32[96,128], index: 4, kind: input, shape index: {}]   ;;  %s9592_s5 = inlined_call_operand.vmem [shape: f32[1,64], index: 5, kind: input, shape index: {}]   ;;  %s9593_s6 = inlined_call_operand.vmem [shape: f32[1,128], index: 6, kind: input, shape index: {}]   ;;  %s9594_s7 = inlined_call_operand.vmem [shape: f32[256,32], index: 7, kind: output, shape index: {}]  }
   0x1   :  { %13 = vsyncpa [#allocation5], 0  ;;  %s6831_s24 = smov [#allocation2]   ;;  %s6783_s28 = scalar_lea.hbm %s9587_s0, 8192 }
   0x2   :  { %s19_s25 = sshll.u32 %s6831_s24, 4  ;;  %p6784_p0 = scmp.ne.s32.totalorder %s9587_s0, %s6783_s28  ;;  %s20_s25 = int_to_ptr.vmem [resolvable:$true] %s19_s25 }
   0x3   :  { %p6787_p1 = scmp.lt.u32.totalorder %s6783_s28, %s9587_s0 }
   0x5   :  { %p6789_p2 = pnand %p6787_p1, %p6784_p0 }
   0x7   :  { %6792 = shalt.err (!%p6789_p2)
}
   0x8   :  { %s6793_s10 = scalar_lea.vmem %s20_s25, 8192  ;;  %p6798_p4 = scmp.lt.s32.totalorder %s20_s25, %s20_s25 }
   0x9   :  { %p6794_p3 = scmp.ne.s32.totalorder %s20_s25, %s6793_s10  ;;  %p6799_p5 = scmp.lt.s32.totalorder %s6793_s10, %s6793_s10 }
   0xb   :  { %p6800_p6 = por %p6799_p5, %p6798_p4 }
   0xd   :  { %p6801_p7 = pnand %p6800_p6, %p6794_p3 }
   0xf   :  { %6804 = shalt.err (!%p6801_p7)
}
  0x10   :  { %s6832_s11 = smov 256   ;;  %s6833_s12 = smov 16  }
  0x11   :  { %25 = dma.hbm_to_vmem [thread:$0]  %s9587_s0, 8192, %s20_s25, [#allocation3], %s6832_s11, %s6832_s11, %s6833_s12  }
  0x12   :  { %s6834_s15 = smov [#allocation4]   ;;  %s6805_s19 = scalar_lea.hbm %s9588_s1, 8192 }
  0x13   :  { %s31_s16 = sshll.u32 %s6834_s15, 4  ;;  %p6806_p8 = scmp.ne.s32.totalorder %s9588_s1, %s6805_s19  ;;  %s32_s16 = int_to_ptr.vmem [resolvable:$true] %s31_s16 }
  0x14   :  { %p6809_p9 = scmp.lt.u32.totalorder %s6805_s19, %s9588_s1 }
  0x16   :  { %p6811_p10 = pnand %p6809_p9, %p6806_p8 }
  0x18   :  { %6814 = shalt.err (!%p6811_p10)
}
  0x19   :  { %s6815_s24 = scalar_lea.vmem %s32_s16, 8192  ;;  %p6820_p12 = scmp.lt.s32.totalorder %s32_s16, %s32_s16 }
  0x1a   :  { %p6816_p11 = scmp.ne.s32.totalorder %s32_s16, %s6815_s24  ;;  %p6821_p13 = scmp.lt.s32.totalorder %s6815_s24, %s6815_s24 }
  0x1c   :  { %p6822_p0 = por %p6821_p13, %p6820_p12 }
  0x1e   :  { %p6823_p1 = pnand %p6822_p0, %p6816_p11 }
  0x20   :  { %6826 = shalt.err (!%p6823_p1)
}
  0x21   :  { %37 = dma.hbm_to_vmem [thread:$0]  %s9588_s1, 8192, %s32_s16, [#allocation5], %s6832_s11, %s6832_s11, %s6833_s12  }
  0x22   :  { %6827 = dma.done.wait [#allocation3], 8192  }
  0x23   :  { %6828 = vsyncadd [#allocation3], 4294959104 }
  0x24   :  { %6829 = dma.done.wait [#allocation5], 8192  }
  0x25   :  { %6830 = vsyncadd [#allocation5], 4294959104  ;;  %vm97_vm0 = vcmask 261120   ;;  %v86_v0 = vld [vmem:[%s9590_s3] sm:$0xff]  ;;  %v87_v1 = vld [vmem:[%s9590_s3 + $0x8] sm:$0xff]  ;;  %v9595_v38 = vmov 0.0|0.0  }
  0x26   :  { %v88_v2 = vld [vmem:[%s9590_s3 + $0x10] sm:$0xff]  ;;  %v6912_v3 = vpack.c.bf16 %v87_v1, %v86_v0  ;;  %v89_v4 = vld [vmem:[%s9590_s3 + $0x18] sm:$0xff]  ;;  %v6920_v5 = vld [vmem:[%s9589_s2] sm:$0xff]  ;;  %5807 = vmatprep.subr.bf16.mxu1 %v9595_v38  ;;  %s6836_s23 = smov 96   ;;  %s6837_s24 = smov 64   ;;  %vm1381_vm1 = vcmask 523264  }
  0x27   :  { %v6922_v6 = vpack.c.bf16 %v89_v4, %v88_v2  ;;  %5551 = vmatprep.mubr.msk.f32.mxu0 %vm97_vm0, %v6920_v5  ;;  %v6933_v7 = vld [vmem:[%s9589_s2 + $0x8] sm:$0xff]  ;;  %v6938_v8 = vld [vmem:[%s9589_s2 + $0x10] sm:$0xff]  ;;  %v6947_v9 = vld [vmem:[%s9589_s2 + $0x18] sm:$0xff]  ;;  %vm1433_vm2 = vcmask 785408  }
  0x28   :  { %5800 = vmatprep.subr.bf16.mxu0 %v6912_v3  ;;  %v6952_v10 = vld [vmem:[%s9589_s2 + $0x20] sm:$0xff]  ;;  %v6961_v11 = vld [vmem:[%s9589_s2 + $0x28] sm:$0xff]  ;;  %v6966_v12 = vld [vmem:[%s9589_s2 + $0x30] sm:$0xff] }
  0x29   :  { %5802 = vmatpush3.bf16.msra.mxu0 %v6912_v3  ;;  %v6975_v13 = vld [vmem:[%s9589_s2 + $0x38] sm:$0xff]  ;;  %v6980_v14 = vld [vmem:[%s9589_s2 + $0x40] sm:$0xff]  ;;  %v6989_v15 = vld [vmem:[%s9589_s2 + $0x48] sm:$0xff] }
  0x2a   :  { %5804 = vmatprep.subr.bf16.mxu0 %v6922_v6  ;;  %v6994_v16 = vld [vmem:[%s9589_s2 + $0x50] sm:$0xff]  ;;  %v7003_v17 = vld [vmem:[%s9589_s2 + $0x58] sm:$0xff]  ;;  %v7008_v18 = vld [vmem:[%s9589_s2 + $0x60] sm:$0xff] }
  0x2b   :  { %v7017_v19 = vld [vmem:[%s9589_s2 + $0x68] sm:$0xff]  ;;  %v7022_v20 = vld [vmem:[%s9589_s2 + $0x70] sm:$0xff]  ;;  %v7031_v21 = vld [vmem:[%s9589_s2 + $0x78] sm:$0xff] }
  0x2c   :  { %v7036_v22 = vld [vmem:[%s9589_s2 + $0x80] sm:$0xff]  ;;  %v7045_v23 = vld [vmem:[%s9589_s2 + $0x88] sm:$0xff]  ;;  %v7050_v24 = vld [vmem:[%s9589_s2 + $0x90] sm:$0xff] }
  0x2d   :  { %5806 = vmatpush3.bf16.msra.mxu0 %v6922_v6  ;;  %v7059_v25 = vld [vmem:[%s9589_s2 + $0x98] sm:$0xff]  ;;  %v7064_v26 = vld [vmem:[%s9589_s2 + $0xa0] sm:$0xff]  ;;  %v7073_v27 = vld [vmem:[%s9589_s2 + $0xa8] sm:$0xff] }
  0x2e   :  { %v7078_v28 = vld [vmem:[%s9589_s2 + $0xb0] sm:$0xff]  ;;  %v7087_v29 = vld [vmem:[%s9589_s2 + $0xb8] sm:$0xff]  ;;  %v7092_v30 = vld [vmem:[%s9589_s2 + $0xc0] sm:$0xff]  ;;  %5855 = vmatprep.subr.bf16.mxu0 %v9595_v38 }
  0x2f   :  { %v7101_v31 = vld [vmem:[%s9589_s2 + $0xc8] sm:$0xff]  ;;  %v7106_v32 = vld [vmem:[%s9589_s2 + $0xd0] sm:$0xff]  ;;  %v7115_v33 = vld [vmem:[%s9589_s2 + $0xd8] sm:$0xff] }
  0x30   :  { %5552 = vmatmul.mubr.msk.f32.vlgmr.msra.gmra.mrb[0].mxu0 %vm97_vm0, %v6933_v7  ;;  %v7120_v34 = vld [vmem:[%s9589_s2 + $0xe0] sm:$0xff]  ;;  %v7129_v35 = vld [vmem:[%s9589_s2 + $0xe8] sm:$0xff]  ;;  %v84_v36 = vld [vmem:[%s9589_s2 + $0xf0] sm:$0xff] }
  0x31   :  { %5554 = vmatprep.mubr.msk.f32.mxu0 %vm97_vm0, %v6938_v8  ;;  %v85_v37 = vld [vmem:[%s9589_s2 + $0xf8] sm:$0xff]  ;;  %v7146_v39 = vld [vmem:[%s9592_s5] ss:$0 sm:$0xff] }
  0x34   :  { %5555 = vmatmul.mubr.msk.f32.gmra.mrb[2].mxu0 %vm97_vm0, %v6947_v9 }
  0x35   :  { %5557 = vmatprep.mubr.msk.f32.mxu0 %vm97_vm0, %v6952_v10 }
  0x38   :  { %5558 = vmatmul.mubr.msk.f32.gmra.mrb[4].mxu0 %vm97_vm0, %v6961_v11 }
  0x39   :  { %5560 = vmatprep.mubr.msk.f32.mxu0 %vm97_vm0, %v6966_v12 }
  0x3c   :  { %5561 = vmatmul.mubr.msk.f32.gmra.mrb[6].mxu0 %vm97_vm0, %v6975_v13 }
  0x3d   :  { %5563 = vmatprep.mubr.msk.f32.mxu0 %vm97_vm0, %v6980_v14 }
  0x40   :  { %5564 = vmatmul.mubr.msk.f32.gmra.mrb[8].mxu0 %vm97_vm0, %v6989_v15 }
  0x41   :  { %5566 = vmatprep.mubr.msk.f32.mxu0 %vm97_vm0, %v6994_v16 }
  0x44   :  { %5567 = vmatmul.mubr.msk.f32.gmra.mrb[10].mxu0 %vm97_vm0, %v7003_v17 }
  0x45   :  { %5569 = vmatprep.mubr.msk.f32.mxu0 %vm97_vm0, %v7008_v18 }
  0x48   :  { %5570 = vmatmul.mubr.msk.f32.gmra.mrb[12].mxu0 %vm97_vm0, %v7017_v19 }
  0x49   :  { %5572 = vmatprep.mubr.msk.f32.mxu0 %vm97_vm0, %v7022_v20 }
  0x4c   :  { %5573 = vmatmul.mubr.msk.f32.gmra.mrb[14].mxu0 %vm97_vm0, %v7031_v21 }
  0x4d   :  { %5575 = vmatprep.mubr.msk.f32.mxu0 %vm97_vm0, %v7036_v22 }
  0x50   :  { %5576 = vmatmul.mubr.msk.f32.gmra.mrb[16].mxu0 %vm97_vm0, %v7045_v23 }
  0x51   :  { %5578 = vmatprep.mubr.msk.f32.mxu0 %vm97_vm0, %v7050_v24 }
  0x54   :  { %5579 = vmatmul.mubr.msk.f32.gmra.mrb[18].mxu0 %vm97_vm0, %v7059_v25 }
  0x55   :  { %5581 = vmatprep.mubr.msk.f32.mxu0 %vm97_vm0, %v7064_v26 }
  0x58   :  { %5582 = vmatmul.mubr.msk.f32.gmra.mrb[20].mxu0 %vm97_vm0, %v7073_v27 }
  0x59   :  { %5584 = vmatprep.mubr.msk.f32.mxu0 %vm97_vm0, %v7078_v28 }
  0x5c   :  { %5585 = vmatmul.mubr.msk.f32.gmra.mrb[22].mxu0 %vm97_vm0, %v7087_v29 }
  0x5d   :  { %5587 = vmatprep.mubr.msk.f32.mxu0 %vm97_vm0, %v7092_v30 }
  0x60   :  { %5588 = vmatmul.mubr.msk.f32.gmra.mrb[24].mxu0 %vm97_vm0, %v7101_v31 }
  0x61   :  { %5590 = vmatprep.mubr.msk.f32.mxu0 %vm97_vm0, %v7106_v32 }
  0x64   :  { %5591 = vmatmul.mubr.msk.f32.gmra.mrb[26].mxu0 %vm97_vm0, %v7115_v33 }
  0x65   :  { %5593 = vmatprep.mubr.msk.f32.mxu0 %vm97_vm0, %v7120_v34 }
  0x68   :  { %5594 = vmatmul.mubr.msk.f32.gmra.mrb[28].mxu0 %vm97_vm0, %v7129_v35 }
  0x69   :  { %5596 = vmatprep.mubr.msk.f32.mxu0 %vm97_vm0, %v84_v36 }
  0x6c   :  { %5597 = vmatmul.mubr.msk.f32.gmra.mrb[30].mxu0 %vm97_vm0, %v85_v37 }
 0x103   :  { %v5553_v40 = vpop.f32.mrb[0].mxu0 }
 0x104   :  { %v266_v41 = vadd.f32 %v5553_v40, %v7146_v39  ;;  %v260_v42 = vpop.f32.mrb[1].mxu0 }
 0x105   :  { %v261_v43 = vadd.f32 %v7146_v39, %v260_v42 }
 0x107   :  { %v5556_v44 = vpop.f32.mrb[2].mxu0  ;;  %v6075_v45 = vpack.i.bf16 %v266_v41, %v261_v43  ;;  %v5808_v46 = vpack.c.bf16 %v266_v41, %v261_v43 }
 0x108   :  { %v276_v47 = vadd.f32 %v5556_v44, %v7146_v39  ;;  %v270_v48 = vpop.f32.mrb[3].mxu0 }
 0x109   :  { %v271_v49 = vadd.f32 %v7146_v39, %v270_v48  ;;  %6076 = vrot.lane.b32.xlu0 %v6075_v45, %s6836_s23  ;;  %5809 = vmatpush1.bf16.msra.mxu1 %v5808_v46 }
 0x10a   :  { %5810 = vmatprep.subr.bf16.mxu1 %v9595_v38 }
 0x10b   :  { %v6080_v50 = vpack.i.bf16 %v276_v47, %v271_v49  ;;  %v5811_v51 = vpack.c.bf16 %v276_v47, %v271_v49  ;;  %v5559_v52 = vpop.f32.mrb[4].mxu0 }
 0x10c   :  { %v286_v53 = vadd.f32 %v5559_v52, %v7146_v39  ;;  %v280_v54 = vpop.f32.mrb[5].mxu0 }
 0x10d   :  { %v281_v55 = vadd.f32 %v7146_v39, %v280_v54  ;;  %6081 = vrot.lane.b32.xlu0 %v6080_v50, %s6836_s23  ;;  %5812 = vmatpush1.bf16.msra.mxu1 %v5811_v51 }
 0x10e   :  { %5813 = vmatprep.subr.bf16.mxu1 %v9595_v38 }
 0x10f   :  { %v5814_v56 = vpack.c.bf16 %v286_v53, %v281_v55  ;;  %v5562_v57 = vpop.f32.mrb[6].mxu0  ;;  %v6085_v58 = vpack.i.bf16 %v286_v53, %v281_v55 }
 0x110   :  { %v296_v59 = vadd.f32 %v5562_v57, %v7146_v39  ;;  %v290_v60 = vpop.f32.mrb[7].mxu0 }
 0x111   :  { %v291_v61 = vadd.f32 %v7146_v39, %v290_v60  ;;  %6086 = vrot.lane.b32.xlu1 %v6085_v58, %s6836_s23  ;;  %5815 = vmatpush1.bf16.msra.mxu1 %v5814_v56 }
 0x112   :  { %5816 = vmatprep.subr.bf16.mxu1 %v9595_v38 }
 0x113   :  { %v6090_v62 = vpack.i.bf16 %v296_v59, %v291_v61  ;;  %v5817_v63 = vpack.c.bf16 %v296_v59, %v291_v61  ;;  %v5565_v0 = vpop.f32.mrb[8].mxu0 }
 0x114   :  { %v306_v1 = vadd.f32 %v5565_v0, %v7146_v39  ;;  %v300_v2 = vpop.f32.mrb[9].mxu0 }
 0x115   :  { %v301_v4 = vadd.f32 %v7146_v39, %v300_v2  ;;  %6091 = vrot.lane.b32.xlu1 %v6090_v62, %s6836_s23  ;;  %5818 = vmatpush1.bf16.msra.mxu1 %v5817_v63 }
 0x116   :  { %5819 = vmatprep.subr.bf16.mxu1 %v9595_v38 }
 0x117   :  { %v6095_v36 = vpack.i.bf16 %v306_v1, %v301_v4  ;;  %v5820_v37 = vpack.c.bf16 %v306_v1, %v301_v4  ;;  %v5568_v40 = vpop.f32.mrb[10].mxu0 }
 0x118   :  { %v316_v41 = vadd.f32 %v5568_v40, %v7146_v39  ;;  %v310_v42 = vpop.f32.mrb[11].mxu0 }
 0x119   :  { %v311_v43 = vadd.f32 %v7146_v39, %v310_v42  ;;  %6096 = vrot.lane.b32.xlu0 %v6095_v36, %s6836_s23  ;;  %5821 = vmatpush1.bf16.msra.mxu1 %v5820_v37 }
 0x11a   :  { %5822 = vmatprep.subr.bf16.mxu1 %v9595_v38 }
 0x11b   :  { %v6100_v44 = vpack.i.bf16 %v316_v41, %v311_v43  ;;  %v5823_v45 = vpack.c.bf16 %v316_v41, %v311_v43  ;;  %v5571_v46 = vpop.f32.mrb[12].mxu0 }
 0x11c   :  { %v326_v47 = vadd.f32 %v5571_v46, %v7146_v39  ;;  %v320_v48 = vpop.f32.mrb[13].mxu0 }
 0x11d   :  { %v321_v49 = vadd.f32 %v7146_v39, %v320_v48  ;;  %6101 = vrot.lane.b32.xlu1 %v6100_v44, %s6836_s23  ;;  %5824 = vmatpush1.bf16.msra.mxu1 %v5823_v45 }
 0x11e   :  { %5825 = vmatprep.subr.bf16.mxu1 %v9595_v38 }
 0x11f   :  { %v6105_v50 = vpack.i.bf16 %v326_v47, %v321_v49  ;;  %v5826_v51 = vpack.c.bf16 %v326_v47, %v321_v49  ;;  %v5574_v52 = vpop.f32.mrb[14].mxu0 }
 0x120   :  { %v336_v53 = vadd.f32 %v5574_v52, %v7146_v39  ;;  %v330_v54 = vpop.f32.mrb[15].mxu0 }
 0x121   :  { %v331_v55 = vadd.f32 %v7146_v39, %v330_v54  ;;  %6106 = vrot.lane.b32.xlu0 %v6105_v50, %s6836_s23  ;;  %5827 = vmatpush1.bf16.msra.mxu1 %v5826_v51 }
 0x122   :  { %5828 = vmatprep.subr.bf16.mxu1 %v9595_v38 }
 0x123   :  { %v6110_v56 = vpack.i.bf16 %v336_v53, %v331_v55  ;;  %v5829_v57 = vpack.c.bf16 %v336_v53, %v331_v55  ;;  %v5577_v58 = vpop.f32.mrb[16].mxu0 }
 0x124   :  { %v346_v59 = vadd.f32 %v5577_v58, %v7146_v39  ;;  %v340_v60 = vpop.f32.mrb[17].mxu0 }
 0x125   :  { %v341_v61 = vadd.f32 %v7146_v39, %v340_v60  ;;  %6111 = vrot.lane.b32.xlu1 %v6110_v56, %s6836_s23  ;;  %5830 = vmatpush1.bf16.msra.mxu1 %v5829_v57 }
 0x126   :  { %5831 = vmatprep.subr.bf16.mxu1 %v9595_v38 }
 0x127   :  { %v6115_v62 = vpack.i.bf16 %v346_v59, %v341_v61  ;;  %v5832_v63 = vpack.c.bf16 %v346_v59, %v341_v61  ;;  %v5580_v0 = vpop.f32.mrb[18].mxu0 }
 0x128   :  { %v356_v1 = vadd.f32 %v5580_v0, %v7146_v39  ;;  %v350_v2 = vpop.f32.mrb[19].mxu0 }
 0x129   :  { %v351_v4 = vadd.f32 %v7146_v39, %v350_v2  ;;  %6116 = vrot.lane.b32.xlu0 %v6115_v62, %s6836_s23  ;;  %5833 = vmatpush1.bf16.msra.mxu1 %v5832_v63 }
 0x12a   :  { %5834 = vmatprep.subr.bf16.mxu1 %v9595_v38 }
 0x12b   :  { %v6120_v36 = vpack.i.bf16 %v356_v1, %v351_v4  ;;  %v5835_v37 = vpack.c.bf16 %v356_v1, %v351_v4  ;;  %v5583_v40 = vpop.f32.mrb[20].mxu0  ;;  %v709_v4 = vld [vmem:[#allocation4 + $0x8] sm:$0xff] }
 0x12c   :  { %v366_v41 = vadd.f32 %v5583_v40, %v7146_v39  ;;  %v360_v42 = vpop.f32.mrb[21].mxu0  ;;  %964 = vmatprep.mubr.f32.mxu0 %v709_v4 }
 0x12d   :  { %v361_v43 = vadd.f32 %v7146_v39, %v360_v42  ;;  %6121 = vrot.lane.b32.xlu1 %v6120_v36, %s6836_s23  ;;  %5836 = vmatpush1.bf16.msra.mxu1 %v5835_v37 }
 0x12e   :  { %5837 = vmatprep.subr.bf16.mxu1 %v9595_v38 }
 0x12f   :  { %v6125_v44 = vpack.i.bf16 %v366_v41, %v361_v43  ;;  %v5838_v45 = vpack.c.bf16 %v366_v41, %v361_v43  ;;  %v5586_v46 = vpop.f32.mrb[22].mxu0 }
 0x130   :  { %v376_v47 = vadd.f32 %v5586_v46, %v7146_v39  ;;  %v370_v48 = vpop.f32.mrb[23].mxu0 }
 0x131   :  { %v371_v49 = vadd.f32 %v7146_v39, %v370_v48  ;;  %6126 = vrot.lane.b32.xlu0 %v6125_v44, %s6836_s23  ;;  %5839 = vmatpush1.bf16.msra.mxu1 %v5838_v45 }
 0x132   :  { %5840 = vmatprep.subr.bf16.mxu1 %v9595_v38 }
 0x133   :  { %v6130_v50 = vpack.i.bf16 %v376_v47, %v371_v49  ;;  %v5841_v51 = vpack.c.bf16 %v376_v47, %v371_v49  ;;  %v5589_v52 = vpop.f32.mrb[24].mxu0 }
 0x134   :  { %v386_v53 = vadd.f32 %v5589_v52, %v7146_v39  ;;  %v380_v54 = vpop.f32.mrb[25].mxu0 }
 0x135   :  { %v381_v55 = vadd.f32 %v7146_v39, %v380_v54  ;;  %6131 = vrot.lane.b32.xlu1 %v6130_v50, %s6836_s23  ;;  %5842 = vmatpush1.bf16.msra.mxu1 %v5841_v51 }
 0x136   :  { %5843 = vmatprep.subr.bf16.mxu1 %v9595_v38 }
 0x137   :  { %v6135_v56 = vpack.i.bf16 %v386_v53, %v381_v55  ;;  %v5844_v57 = vpack.c.bf16 %v386_v53, %v381_v55  ;;  %v5592_v58 = vpop.f32.mrb[26].mxu0 }
 0x138   :  { %v396_v59 = vadd.f32 %v5592_v58, %v7146_v39  ;;  %v390_v60 = vpop.f32.mrb[27].mxu0 }
 0x139   :  { %v391_v61 = vadd.f32 %v7146_v39, %v390_v60  ;;  %6136 = vrot.lane.b32.xlu0 %v6135_v56, %s6836_s23  ;;  %5845 = vmatpush1.bf16.msra.mxu1 %v5844_v57 }
 0x13a   :  { %5846 = vmatprep.subr.bf16.mxu1 %v9595_v38 }
 0x13b   :  { %v6140_v62 = vpack.i.bf16 %v396_v59, %v391_v61  ;;  %v5847_v63 = vpack.c.bf16 %v396_v59, %v391_v61  ;;  %v5595_v0 = vpop.f32.mrb[28].mxu0 }
 0x13c   :  { %v406_v1 = vadd.f32 %v5595_v0, %v7146_v39  ;;  %v400_v2 = vpop.f32.mrb[29].mxu0 }
 0x13d   :  { %v401_v36 = vadd.f32 %v7146_v39, %v400_v2  ;;  %6141 = vrot.lane.b32.xlu1 %v6140_v62, %s6836_s23  ;;  %5848 = vmatpush1.bf16.msra.mxu1 %v5847_v63 }
 0x13e   :  { %5849 = vmatprep.subr.bf16.mxu1 %v9595_v38 }
 0x13f   :  { %v6145_v37 = vpack.i.bf16 %v406_v1, %v401_v36  ;;  %v5850_v40 = vpack.c.bf16 %v406_v1, %v401_v36  ;;  %v5598_v41 = vpop.f32.mrb[30].mxu0 }
 0x140   :  { %v416_v42 = vadd.f32 %v5598_v41, %v7146_v39  ;;  %v410_v43 = vpop.f32.mrb[31].mxu0 }
 0x141   :  { %v411_v44 = vadd.f32 %v7146_v39, %v410_v43  ;;  %6146 = vrot.lane.b32.xlu0 %v6145_v37, %s6836_s23  ;;  %5851 = vmatpush1.bf16.msra.mxu1 %v5850_v40 }
 0x142   :  { %5852 = vmatprep.subr.bf16.mxu1 %v9595_v38 }
 0x143   :  { %v6150_v45 = vpack.i.bf16 %v416_v42, %v411_v44  ;;  %v5853_v46 = vpack.c.bf16 %v416_v42, %v411_v44 }
 0x145   :  { %6151 = vrot.lane.b32.xlu1 %v6150_v45, %s6836_s23  ;;  %5854 = vmatpush1.bf16.msra.mxu1 %v5853_v46 }
 0x146   :  { %1253 = vrot.lane.b32.xlu0 %v6920_v5, %s6837_s24  ;;  %v429_v5 = vld [vmem:[#allocation2 + $0x50] sm:$0xff] }
 0x149   :  { %1255 = vrot.lane.b32.xlu1 %v6933_v7, %s6837_s24  ;;  %v432_v7 = vld [vmem:[#allocation2 + $0x68] sm:$0xff] }
 0x14a   :  { %1257 = vrot.lane.b32.xlu0 %v6938_v8, %s6837_s24  ;;  %v434_v8 = vld [vmem:[#allocation2 + $0x78] sm:$0xff] }
 0x14d   :  { %1259 = vrot.lane.b32.xlu1 %v6947_v9, %s6837_s24  ;;  %v714_v9 = vld [vmem:[#allocation4 + $0x30] sm:$0xff] }
 0x14e   :  { %1261 = vrot.lane.b32.xlu0 %v6952_v10, %s6837_s24  ;;  %v1415_v10 = vld [vmem:[%s9591_s4 + $0x8] sm:$0xff] }
 0x151   :  { %1263 = vrot.lane.b32.xlu1 %v6961_v11, %s6837_s24  ;;  %v433_v11 = vld [vmem:[#allocation2 + $0x70] sm:$0xff] }
 0x152   :  { %1265 = vrot.lane.b32.xlu0 %v6966_v12, %s6837_s24  ;;  %v719_v12 = vld [vmem:[#allocation4 + $0x58] sm:$0xff] }
 0x155   :  { %1267 = vrot.lane.b32.xlu1 %v6975_v13, %s6837_s24  ;;  %v438_v13 = vld [vmem:[#allocation2 + $0x98] sm:$0xff] }
 0x156   :  { %1269 = vrot.lane.b32.xlu0 %v6980_v14, %s6837_s24  ;;  %v440_v14 = vld [vmem:[#allocation2 + $0xa8] sm:$0xff] }
 0x159   :  { %1271 = vrot.lane.b32.xlu1 %v6989_v15, %s6837_s24  ;;  %v720_v15 = vld [vmem:[#allocation4 + $0x60] sm:$0xff] }
 0x15a   :  { %1273 = vrot.lane.b32.xlu0 %v6994_v16, %s6837_s24  ;;  %v442_v16 = vld [vmem:[#allocation2 + $0xb8] sm:$0xff] }
 0x15d   :  { %1275 = vrot.lane.b32.xlu1 %v7003_v17, %s6837_s24  ;;  %v441_v17 = vld [vmem:[#allocation2 + $0xb0] sm:$0xff] }
 0x15e   :  { %1277 = vrot.lane.b32.xlu0 %v7008_v18, %s6837_s24  ;;  %v444_v18 = vld [vmem:[#allocation2 + $0xc8] sm:$0xff] }
 0x161   :  { %1279 = vrot.lane.b32.xlu1 %v7017_v19, %s6837_s24  ;;  %v443_v19 = vld [vmem:[#allocation2 + $0xc0] sm:$0xff] }
 0x162   :  { %1281 = vrot.lane.b32.xlu0 %v7022_v20, %s6837_s24  ;;  %v446_v20 = vld [vmem:[#allocation2 + $0xd8] sm:$0xff] }
 0x165   :  { %1283 = vrot.lane.b32.xlu1 %v7031_v21, %s6837_s24  ;;  %v445_v21 = vld [vmem:[#allocation2 + $0xd0] sm:$0xff] }
 0x166   :  { %1285 = vrot.lane.b32.xlu0 %v7036_v22, %s6837_s24  ;;  %v448_v22 = vld [vmem:[#allocation2 + $0xe8] sm:$0xff] }
 0x169   :  { %1287 = vrot.lane.b32.xlu1 %v7045_v23, %s6837_s24  ;;  %v447_v23 = vld [vmem:[#allocation2 + $0xe0] sm:$0xff] }
 0x16a   :  { %1289 = vrot.lane.b32.xlu0 %v7050_v24, %s6837_s24  ;;  %v450_v24 = vld [vmem:[#allocation2 + $0xf8] sm:$0xff] }
 0x16d   :  { %1291 = vrot.lane.b32.xlu1 %v7059_v25, %s6837_s24  ;;  %v449_v25 = vld [vmem:[#allocation2 + $0xf0] sm:$0xff] }
 0x16e   :  { %1293 = vrot.lane.b32.xlu0 %v7064_v26, %s6837_s24  ;;  %v452_v26 = vld [vmem:[#allocation2 + $0x108] sm:$0xff] }
 0x171   :  { %1295 = vrot.lane.b32.xlu1 %v7073_v27, %s6837_s24  ;;  %v451_v27 = vld [vmem:[#allocation2 + $0x100] sm:$0xff] }
 0x172   :  { %1297 = vrot.lane.b32.xlu0 %v7078_v28, %s6837_s24  ;;  %v454_v28 = vld [vmem:[#allocation2 + $0x118] sm:$0xff] }
 0x175   :  { %1299 = vrot.lane.b32.xlu1 %v7087_v29, %s6837_s24  ;;  %v453_v29 = vld [vmem:[#allocation2 + $0x110] sm:$0xff] }
 0x176   :  { %1301 = vrot.lane.b32.xlu0 %v7092_v30, %s6837_s24  ;;  %v456_v30 = vld [vmem:[#allocation2 + $0x128] sm:$0xff] }
 0x179   :  { %1303 = vrot.lane.b32.xlu1 %v7101_v31, %s6837_s24  ;;  %v455_v31 = vld [vmem:[#allocation2 + $0x120] sm:$0xff] }
 0x17a   :  { %1305 = vrot.lane.b32.xlu0 %v7106_v32, %s6837_s24  ;;  %v458_v32 = vld [vmem:[#allocation2 + $0x138] sm:$0xff] }
 0x17b   :  { %v6077_v47 = vpop.permute.xlu0 %6076 }
 0x17c   :  { %v6079_v48 = vunpack.i.h.bf16 %v6077_v47  ;;  %v6078_v49 = vunpack.i.l.bf16 %v6077_v47 }
 0x17d   :  { %1307 = vrot.lane.b32.xlu1 %v7115_v33, %s6837_s24  ;;  %v457_v33 = vld [vmem:[#allocation2 + $0x130] sm:$0xff] }
 0x17e   :  { %v5856_v50 = vpack.c.bf16 %v6079_v48, %v6078_v49  ;;  %1309 = vrot.lane.b32.xlu0 %v7120_v34, %s6837_s24  ;;  %v459_v34 = vld [vmem:[#allocation2 + $0x140] sm:$0xff] }
 0x17f   :  { %v6082_v51 = vpop.permute.xlu0 %6081 }
 0x180   :  { %v6084_v52 = vunpack.i.h.bf16 %v6082_v51  ;;  %v6083_v53 = vunpack.i.l.bf16 %v6082_v51  ;;  %5857 = vmatpush1.bf16.msra.mxu0 %v5856_v50 }
 0x181   :  { %5858 = vmatprep.subr.bf16.mxu0 %v9595_v38  ;;  %1311 = vrot.lane.b32.xlu1 %v7129_v35, %s6837_s24  ;;  %v742_v35 = vld [vmem:[#allocation4 + $0x110] sm:$0xff] }
 0x182   :  { %v5859_v39 = vpack.c.bf16 %v6084_v52, %v6083_v53 }
 0x183   :  { %v6087_v54 = vpop.permute.xlu1 %6086 }
 0x184   :  { %v6089_v55 = vunpack.i.h.bf16 %v6087_v54  ;;  %v6088_v56 = vunpack.i.l.bf16 %v6087_v54  ;;  %5860 = vmatpush1.bf16.msra.mxu0 %v5859_v39 }
 0x185   :  { %5861 = vmatprep.subr.bf16.mxu0 %v9595_v38 }
 0x186   :  { %v5862_v57 = vpack.c.bf16 %v6089_v55, %v6088_v56 }
 0x187   :  { %v6092_v58 = vpop.permute.xlu1 %6091 }
 0x188   :  { %v6094_v59 = vunpack.i.h.bf16 %v6092_v58  ;;  %v6093_v60 = vunpack.i.l.bf16 %v6092_v58  ;;  %5863 = vmatpush1.bf16.msra.mxu0 %v5862_v57 }
 0x189   :  { %5864 = vmatprep.subr.bf16.mxu0 %v9595_v38 }
 0x18a   :  { %v5865_v61 = vpack.c.bf16 %v6094_v59, %v6093_v60 }
 0x18b   :  { %v6097_v62 = vpop.permute.xlu0 %6096 }
 0x18c   :  { %v6099_v63 = vunpack.i.h.bf16 %v6097_v62  ;;  %v6098_v0 = vunpack.i.l.bf16 %v6097_v62  ;;  %5866 = vmatpush1.bf16.msra.mxu0 %v5865_v61 }
 0x18d   :  { %5867 = vmatprep.subr.bf16.mxu0 %v9595_v38 }
 0x18e   :  { %v5868_v1 = vpack.c.bf16 %v6099_v63, %v6098_v0 }
 0x18f   :  { %v6102_v2 = vpop.permute.xlu1 %6101 }
 0x190   :  { %v6104_v4 = vunpack.i.h.bf16 %v6102_v2  ;;  %v6103_v36 = vunpack.i.l.bf16 %v6102_v2  ;;  %5869 = vmatpush1.bf16.msra.mxu0 %v5868_v1 }
 0x191   :  { %5870 = vmatprep.subr.bf16.mxu0 %v9595_v38 }
 0x192   :  { %v5871_v37 = vpack.c.bf16 %v6104_v4, %v6103_v36  ;;  %v420_v36 = vld [vmem:[#allocation2 + $0x8] sm:$0xff] }
 0x193   :  { %v6107_v40 = vpop.permute.xlu0 %6106  ;;  %547 = vmatprep.mubr.f32.mxu1 %v420_v36  ;;  %v716_v36 = vld [vmem:[#allocation4 + $0x40] sm:$0xff] }
 0x194   :  { %v6109_v41 = vunpack.i.h.bf16 %v6107_v40  ;;  %v6108_v42 = vunpack.i.l.bf16 %v6107_v40  ;;  %5872 = vmatpush1.bf16.msra.mxu0 %v5871_v37  ;;  %v419_v37 = vld [vmem:[#allocation2] sm:$0xff] }
 0x195   :  { %5873 = vmatprep.subr.bf16.mxu0 %v9595_v38  ;;  %548 = vmatmul.mubr.f32.vlgmr.msra.gmra.mrb[0].mxu1 %v419_v37  ;;  %v435_v37 = vld [vmem:[#allocation2 + $0x80] sm:$0xff] }
 0x196   :  { %v5874_v43 = vpack.c.bf16 %v6109_v41, %v6108_v42 }
 0x197   :  { %v6112_v44 = vpop.permute.xlu1 %6111 }
 0x198   :  { %v6114_v45 = vunpack.i.h.bf16 %v6112_v44  ;;  %v6113_v46 = vunpack.i.l.bf16 %v6112_v44  ;;  %5875 = vmatpush1.bf16.msra.mxu0 %v5874_v43  ;;  %v422_v44 = vld [vmem:[#allocation2 + $0x18] sm:$0xff] }
 0x199   :  { %5876 = vmatprep.subr.bf16.mxu0 %v9595_v38  ;;  %552 = vmatprep.mubr.f32.mxu1 %v422_v44  ;;  %v439_v44 = vld [vmem:[#allocation2 + $0xa0] sm:$0xff] }
 0x19a   :  { %v5877_v47 = vpack.c.bf16 %v6114_v45, %v6113_v46  ;;  %v421_v45 = vld [vmem:[#allocation2 + $0x10] sm:$0xff] }
 0x19b   :  { %v6117_v48 = vpop.permute.xlu0 %6116  ;;  %553 = vmatmul.mubr.f32.gmra.mrb[2].mxu1 %v421_v45  ;;  %v722_v45 = vld [vmem:[#allocation4 + $0x70] sm:$0xff] }
 0x19c   :  { %v6119_v49 = vunpack.i.h.bf16 %v6117_v48  ;;  %v6118_v50 = vunpack.i.l.bf16 %v6117_v48  ;;  %5878 = vmatpush1.bf16.msra.mxu0 %v5877_v47 }
 0x19d   :  { %5879 = vmatprep.subr.bf16.mxu0 %v9595_v38 }
 0x19e   :  { %v5880_v51 = vpack.c.bf16 %v6119_v49, %v6118_v50  ;;  %v424_v50 = vld [vmem:[#allocation2 + $0x28] sm:$0xff] }
 0x19f   :  { %v6122_v52 = vpop.permute.xlu1 %6121  ;;  %557 = vmatprep.mubr.f32.mxu1 %v424_v50  ;;  %v729_v50 = vld [vmem:[#allocation4 + $0xa8] sm:$0xff] }
 0x1a0   :  { %v6124_v53 = vunpack.i.h.bf16 %v6122_v52  ;;  %v6123_v39 = vunpack.i.l.bf16 %v6122_v52  ;;  %5881 = vmatpush1.bf16.msra.mxu0 %v5880_v51  ;;  %v423_v51 = vld [vmem:[#allocation2 + $0x20] sm:$0xff] }
 0x1a1   :  { %5882 = vmatprep.subr.bf16.mxu0 %v9595_v38  ;;  %558 = vmatmul.mubr.f32.gmra.mrb[4].mxu1 %v423_v51  ;;  %v728_v51 = vld [vmem:[#allocation4 + $0xa0] sm:$0xff] }
 0x1a2   :  { %v5883_v54 = vpack.c.bf16 %v6124_v53, %v6123_v39 }
 0x1a3   :  { %v6127_v55 = vpop.permute.xlu0 %6126 }
 0x1a4   :  { %v6129_v56 = vunpack.i.h.bf16 %v6127_v55  ;;  %v6128_v57 = vunpack.i.l.bf16 %v6127_v55  ;;  %5884 = vmatpush1.bf16.msra.mxu0 %v5883_v54  ;;  %v426_v54 = vld [vmem:[#allocation2 + $0x38] sm:$0xff]  ;;  %v425_v55 = vld [vmem:[#allocation2 + $0x30] sm:$0xff] }
 0x1a5   :  { %5885 = vmatprep.subr.bf16.mxu0 %v9595_v38  ;;  %562 = vmatprep.mubr.f32.mxu1 %v426_v54  ;;  %v732_v54 = vld [vmem:[#allocation4 + $0xc0] sm:$0xff] }
 0x1a6   :  { %v5886_v58 = vpack.c.bf16 %v6129_v56, %v6128_v57  ;;  %v428_v56 = vld [vmem:[#allocation2 + $0x48] sm:$0xff]  ;;  %v708_v57 = vld [vmem:[#allocation4] sm:$0xff]  ;;  %563 = vmatmul.mubr.f32.gmra.mrb[6].mxu1 %v425_v55  ;;  %v735_v55 = vld [vmem:[#allocation4 + $0xd8] sm:$0xff] }
 0x1a7   :  { %v6132_v59 = vpop.permute.xlu1 %6131  ;;  %567 = vmatprep.mubr.f32.mxu1 %v428_v56  ;;  %v734_v56 = vld [vmem:[#allocation4 + $0xd0] sm:$0xff] }
 0x1a8   :  { %v6134_v60 = vunpack.i.h.bf16 %v6132_v59  ;;  %v6133_v61 = vunpack.i.l.bf16 %v6132_v59  ;;  %5887 = vmatpush1.bf16.msra.mxu0 %v5886_v58  ;;  %v711_v58 = vld [vmem:[#allocation4 + $0x18] sm:$0xff]  ;;  %v427_v59 = vld [vmem:[#allocation2 + $0x40] sm:$0xff] }
 0x1a9   :  { %5888 = vmatprep.subr.bf16.mxu0 %v9595_v38 }
 0x1aa   :  { %v5889_v62 = vpack.c.bf16 %v6134_v60, %v6133_v61  ;;  %v430_v60 = vld [vmem:[#allocation2 + $0x58] sm:$0xff]  ;;  %v710_v61 = vld [vmem:[#allocation4 + $0x10] sm:$0xff]  ;;  %568 = vmatmul.mubr.f32.gmra.mrb[8].mxu1 %v427_v59 }
 0x1ab   :  { %v6137_v63 = vpop.permute.xlu0 %6136  ;;  %572 = vmatprep.mubr.f32.mxu1 %v430_v60  ;;  %v739_v59 = vld [vmem:[#allocation4 + $0xf8] sm:$0xff]  ;;  %v738_v60 = vld [vmem:[#allocation4 + $0xf0] sm:$0xff] }
 0x1ac   :  { %v6139_v0 = vunpack.i.h.bf16 %v6137_v63  ;;  %v6138_v1 = vunpack.i.l.bf16 %v6137_v63  ;;  %5890 = vmatpush1.bf16.msra.mxu0 %v5889_v62  ;;  %v713_v62 = vld [vmem:[#allocation4 + $0x28] sm:$0xff]  ;;  %v712_v63 = vld [vmem:[#allocation4 + $0x20] sm:$0xff] }
 0x1ad   :  { %5891 = vmatprep.subr.bf16.mxu0 %v9595_v38 }
 0x1ae   :  { %v5892_v2 = vpack.c.bf16 %v6139_v0, %v6138_v1  ;;  %v715_v0 = vld [vmem:[#allocation4 + $0x38] sm:$0xff]  ;;  %573 = vmatmul.mubr.f32.gmra.mrb[10].mxu1 %v429_v5  ;;  %v717_v1 = vld [vmem:[#allocation4 + $0x48] sm:$0xff]  ;;  %v740_v5 = vld [vmem:[#allocation4 + $0x100] sm:$0xff] }
 0x1af   :  { %v6142_v4 = vpop.permute.xlu1 %6141  ;;  %577 = vmatprep.mubr.f32.mxu1 %v432_v7  ;;  %v743_v7 = vld [vmem:[#allocation4 + $0x118] sm:$0xff] }
 0x1b0   :  { %v6144_v40 = vunpack.i.h.bf16 %v6142_v4  ;;  %v6143_v41 = vunpack.i.l.bf16 %v6142_v4  ;;  %5893 = vmatpush1.bf16.msra.mxu0 %v5892_v2  ;;  %v436_v4 = vld [vmem:[#allocation2 + $0x88] sm:$0xff] }
 0x1b1   :  { %5894 = vmatprep.subr.bf16.mxu0 %v9595_v38 }
 0x1b2   :  { %v5895_v42 = vpack.c.bf16 %v6144_v40, %v6143_v41  ;;  %v718_v40 = vld [vmem:[#allocation4 + $0x50] sm:$0xff]  ;;  %v721_v41 = vld [vmem:[#allocation4 + $0x68] sm:$0xff] }
 0x1b3   :  { %v6147_v43 = vpop.permute.xlu0 %6146 }
 0x1b4   :  { %v6149_v46 = vunpack.i.h.bf16 %v6147_v43  ;;  %v6148_v47 = vunpack.i.l.bf16 %v6147_v43  ;;  %5896 = vmatpush1.bf16.msra.mxu0 %v5895_v42  ;;  %v437_v42 = vld [vmem:[#allocation2 + $0x90] sm:$0xff]  ;;  %v723_v43 = vld [vmem:[#allocation4 + $0x78] sm:$0xff] }
 0x1b5   :  { %5897 = vmatprep.subr.bf16.mxu0 %v9595_v38 }
 0x1b6   :  { %v5898_v48 = vpack.c.bf16 %v6149_v46, %v6148_v47  ;;  %v725_v46 = vld [vmem:[#allocation4 + $0x88] sm:$0xff]  ;;  %v724_v47 = vld [vmem:[#allocation4 + $0x80] sm:$0xff] }
 0x1b7   :  { %v6152_v49 = vpop.permute.xlu1 %6151 }
 0x1b8   :  { %v6154_v52 = vunpack.i.h.bf16 %v6152_v49  ;;  %v6153_v53 = vunpack.i.l.bf16 %v6152_v49  ;;  %5899 = vmatpush1.bf16.msra.mxu0 %v5898_v48  ;;  %v727_v48 = vld [vmem:[#allocation4 + $0x98] sm:$0xff]  ;;  %v726_v49 = vld [vmem:[#allocation4 + $0x90] sm:$0xff] }
 0x1b9   :  { %5900 = vmatprep.subr.bf16.mxu0 %v9595_v38 }
 0x1ba   :  { %v5901_v39 = vpack.c.bf16 %v6154_v52, %v6153_v53  ;;  %v731_v52 = vld [vmem:[#allocation4 + $0xb8] sm:$0xff]  ;;  %v730_v53 = vld [vmem:[#allocation4 + $0xb0] sm:$0xff] }
 0x1bc   :  { %5902 = vmatpush1.bf16.msra.mxu0 %v5901_v39  ;;  %v733_v39 = vld [vmem:[#allocation4 + $0xc8] sm:$0xff] }
 0x1bd   :  { %5928 = vmatprep.subr.bf16.mxu0 %v6912_v3 }
 0x1bf   :  { %965 = vmatmul.mubr.f32.vlgmr.msra.gmra.mrb[32].mxu0 %v708_v57  ;;  %v737_v57 = vld [vmem:[#allocation4 + $0xe8] sm:$0xff] }
 0x1c0   :  { %969 = vmatprep.mubr.f32.mxu0 %v711_v58  ;;  %5930 = vmatpush3.bf16.msra.mxu0 %v6912_v3  ;;  %v431_v3 = vld [vmem:[#allocation2 + $0x60] sm:$0xff] }
 0x1c1   :  { %5932 = vmatprep.subr.bf16.mxu0 %v6922_v6  ;;  %578 = vmatmul.mubr.f32.gmra.mrb[12].mxu1 %v431_v3  ;;  %v736_v58 = vld [vmem:[#allocation4 + $0xe0] sm:$0xff]  ;;  %v461_v3 = vld [vmem:[#allocation2 + $0x150] sm:$0xff] }
 0x1c2   :  { %582 = vmatprep.mubr.f32.mxu1 %v434_v8  ;;  %v464_v8 = vld [vmem:[#allocation2 + $0x168] sm:$0xff] }
 0x1c3   :  { %970 = vmatmul.mubr.f32.gmra.mrb[34].mxu0 %v710_v61  ;;  %v741_v61 = vld [vmem:[#allocation4 + $0x108] sm:$0xff] }
 0x1c4   :  { %974 = vmatprep.mubr.f32.mxu0 %v713_v62  ;;  %5934 = vmatpush3.bf16.msra.mxu0 %v6922_v6  ;;  %v1414_v6 = vld [vmem:[%s9591_s4] sm:$0xff]  ;;  %v460_v62 = vld [vmem:[#allocation2 + $0x148] sm:$0xff] }
 0x1c5   :  { %5983 = vmatprep.subr.bf16.mxu0 %v9595_v38  ;;  %v7253_v2 = vpack.c.bf16 %v1415_v10, %v1414_v6  ;;  %583 = vmatmul.mubr.f32.gmra.mrb[14].mxu1 %v433_v11  ;;  %v463_v6 = vld [vmem:[#allocation2 + $0x160] sm:$0xff]  ;;  %v466_v10 = vld [vmem:[#allocation2 + $0x178] sm:$0xff]  ;;  %v746_v11 = vld [vmem:[#allocation4 + $0x130] sm:$0xff] }
 0x1c6   :  { %587 = vmatprep.mubr.f32.mxu1 %v436_v4  ;;  %v749_v4 = vld [vmem:[#allocation4 + $0x148] sm:$0xff] }
 0x1c7   :  { %975 = vmatmul.mubr.f32.gmra.mrb[36].mxu0 %v712_v63  ;;  %9702 = vst [vmem:[#allocation8_spill] sm:$0xff] %v7253_v2  ;;  %5904 = vmatprep.subr.bf16.mxu1 %v7253_v2  ;;  %v462_v63 = vld [vmem:[#allocation2 + $0x158] sm:$0xff] }
 0x1c8   :  { %979 = vmatprep.mubr.f32.mxu0 %v715_v0  ;;  %5906 = vmatpush3.bf16.msra.mxu1 %v7253_v2  ;;  %v745_v0 = vld [vmem:[#allocation4 + $0x128] sm:$0xff] }
 0x1c9   :  { %588 = vmatmul.mubr.f32.gmra.mrb[16].mxu1 %v435_v37  ;;  %v748_v37 = vld [vmem:[#allocation4 + $0x140] sm:$0xff] }
 0x1ca   :  { %592 = vmatprep.mubr.f32.mxu1 %v438_v13  ;;  %v751_v13 = vld [vmem:[#allocation4 + $0x158] sm:$0xff] }
 0x1cb   :  { %980 = vmatmul.mubr.f32.gmra.mrb[38].mxu0 %v714_v9  ;;  %v744_v9 = vld [vmem:[#allocation4 + $0x120] sm:$0xff] }
 0x1cc   :  { %984 = vmatprep.mubr.f32.mxu0 %v717_v1  ;;  %v747_v1 = vld [vmem:[#allocation4 + $0x138] sm:$0xff] }
 0x1cd   :  { %593 = vmatmul.mubr.f32.gmra.mrb[18].mxu1 %v437_v42  ;;  %v753_v42 = vld [vmem:[#allocation4 + $0x168] sm:$0xff] }
 0x1ce   :  { %597 = vmatprep.mubr.f32.mxu1 %v440_v14  ;;  %v470_v14 = vld [vmem:[#allocation2 + $0x198] sm:$0xff] }
 0x1cf   :  { %985 = vmatmul.mubr.f32.gmra.mrb[40].mxu0 %v716_v36  ;;  %v465_v36 = vld [vmem:[#allocation2 + $0x170] sm:$0xff] }
 0x1d0   :  { %989 = vmatprep.mubr.f32.mxu0 %v719_v12  ;;  %v468_v12 = vld [vmem:[#allocation2 + $0x188] sm:$0xff] }
 0x1d1   :  { %598 = vmatmul.mubr.f32.gmra.mrb[20].mxu1 %v439_v44  ;;  %v755_v44 = vld [vmem:[#allocation4 + $0x178] sm:$0xff] }
 0x1d2   :  { %602 = vmatprep.mubr.f32.mxu1 %v442_v16  ;;  %v472_v16 = vld [vmem:[#allocation2 + $0x1a8] sm:$0xff] }
 0x1d3   :  { %990 = vmatmul.mubr.f32.gmra.mrb[42].mxu0 %v718_v40  ;;  %v467_v40 = vld [vmem:[#allocation2 + $0x180] sm:$0xff] }
 0x1d4   :  { %994 = vmatprep.mubr.f32.mxu0 %v721_v41  ;;  %v750_v41 = vld [vmem:[#allocation4 + $0x150] sm:$0xff] }
 0x1d5   :  { %603 = vmatmul.mubr.f32.gmra.mrb[22].mxu1 %v441_v17  ;;  %v757_v17 = vld [vmem:[#allocation4 + $0x188] sm:$0xff] }
 0x1d6   :  { %607 = vmatprep.mubr.f32.mxu1 %v444_v18  ;;  %v474_v18 = vld [vmem:[#allocation2 + $0x1b8] sm:$0xff] }
 0x1d7   :  { %995 = vmatmul.mubr.f32.gmra.mrb[44].mxu0 %v720_v15  ;;  %v469_v15 = vld [vmem:[#allocation2 + $0x190] sm:$0xff] }
 0x1d8   :  { %999 = vmatprep.mubr.f32.mxu0 %v723_v43  ;;  %v752_v43 = vld [vmem:[#allocation4 + $0x160] sm:$0xff] }
 0x1d9   :  { %608 = vmatmul.mubr.f32.gmra.mrb[24].mxu1 %v443_v19  ;;  %v759_v19 = vld [vmem:[#allocation4 + $0x198] sm:$0xff] }
 0x1da   :  { %612 = vmatprep.mubr.f32.mxu1 %v446_v20  ;;  %v476_v20 = vld [vmem:[#allocation2 + $0x1c8] sm:$0xff] }
 0x1db   :  { %1000 = vmatmul.mubr.f32.gmra.mrb[46].mxu0 %v722_v45  ;;  %v471_v45 = vld [vmem:[#allocation2 + $0x1a0] sm:$0xff] }
 0x1dc   :  { %1004 = vmatprep.mubr.f32.mxu0 %v725_v46  ;;  %v754_v46 = vld [vmem:[#allocation4 + $0x170] sm:$0xff] }
 0x1dd   :  { %613 = vmatmul.mubr.f32.gmra.mrb[26].mxu1 %v445_v21  ;;  %v761_v21 = vld [vmem:[#allocation4 + $0x1a8] sm:$0xff] }
 0x1de   :  { %617 = vmatprep.mubr.f32.mxu1 %v448_v22  ;;  %v478_v22 = vld [vmem:[#allocation2 + $0x1d8] sm:$0xff] }
 0x1df   :  { %1005 = vmatmul.mubr.f32.gmra.mrb[48].mxu0 %v724_v47  ;;  %v473_v47 = vld [vmem:[#allocation2 + $0x1b0] sm:$0xff] }
 0x1e0   :  { %1009 = vmatprep.mubr.f32.mxu0 %v727_v48  ;;  %v756_v48 = vld [vmem:[#allocation4 + $0x180] sm:$0xff] }
 0x1e1   :  { %618 = vmatmul.mubr.f32.gmra.mrb[28].mxu1 %v447_v23  ;;  %v760_v23 = vld [vmem:[#allocation4 + $0x1a0] sm:$0xff] }
 0x1e2   :  { %622 = vmatprep.mubr.f32.mxu1 %v450_v24 }
 0x1e3   :  { %1010 = vmatmul.mubr.f32.gmra.mrb[50].mxu0 %v726_v49  ;;  %v475_v49 = vld [vmem:[#allocation2 + $0x1c0] sm:$0xff] }
 0x1e4   :  { %1014 = vmatprep.mubr.f32.mxu0 %v729_v50  ;;  %v758_v50 = vld [vmem:[#allocation4 + $0x190] sm:$0xff] }
 0x1e5   :  { %623 = vmatmul.mubr.f32.gmra.mrb[30].mxu1 %v449_v25  ;;  %v480_v25 = vld [vmem:[#allocation2 + $0x1e8] sm:$0xff] }
 0x1e6   :  { %627 = vmatprep.mubr.f32.mxu1 %v452_v26  ;;  %v479_v26 = vld [vmem:[#allocation2 + $0x1e0] sm:$0xff] }
 0x1e7   :  { %1015 = vmatmul.mubr.f32.gmra.mrb[52].mxu0 %v728_v51  ;;  %v1416_v51 = vld [vmem:[%s9591_s4 + $0x10] sm:$0xff] }
 0x1e8   :  { %1019 = vmatprep.mubr.f32.mxu0 %v731_v52  ;;  %v1417_v52 = vld [vmem:[%s9591_s4 + $0x18] sm:$0xff] }
 0x1e9   :  { %628 = vmatmul.mubr.f32.gmra.mrb[32].mxu1 %v451_v27  ;;  %v7307_v24 = vpack.c.bf16 %v1417_v52, %v1416_v51  ;;  %v482_v27 = vld [vmem:[#allocation2 + $0x1f8] sm:$0xff] }
 0x1ea   :  { %632 = vmatprep.mubr.f32.mxu1 %v454_v28  ;;  %v481_v28 = vld [vmem:[#allocation2 + $0x1f0] sm:$0xff] }
 0x1eb   :  { %1020 = vmatmul.mubr.f32.gmra.mrb[54].mxu0 %v730_v53  ;;  %9703 = vst [vmem:[#allocation9_spill] sm:$0xff] %v7307_v24  ;;  %v477_v53 = vld [vmem:[#allocation2 + $0x1d0] sm:$0xff]  ;;  %5908 = vmatprep.subr.bf16.mxu1 %v7307_v24 }
 0x1ec   :  { %1024 = vmatprep.mubr.f32.mxu0 %v733_v39  ;;  %v763_v39 = vld [vmem:[#allocation4 + $0x1b8] sm:$0xff]  ;;  %5910 = vmatpush3.bf16.msra.mxu1 %v7307_v24 }
 0x1ed   :  { %633 = vmatmul.mubr.f32.gmra.mrb[34].mxu1 %v453_v29  ;;  %v766_v29 = vld [vmem:[#allocation4 + $0x1d0] sm:$0xff] }
 0x1ee   :  { %637 = vmatprep.mubr.f32.mxu1 %v456_v30  ;;  %v769_v30 = vld [vmem:[#allocation4 + $0x1e8] sm:$0xff] }
 0x1ef   :  { %1025 = vmatmul.mubr.f32.gmra.mrb[56].mxu0 %v732_v54  ;;  %v762_v54 = vld [vmem:[#allocation4 + $0x1b0] sm:$0xff] }
 0x1f0   :  { %1029 = vmatprep.mubr.f32.mxu0 %v735_v55  ;;  %v765_v55 = vld [vmem:[#allocation4 + $0x1c8] sm:$0xff] }
 0x1f1   :  { %638 = vmatmul.mubr.f32.gmra.mrb[36].mxu1 %v455_v31  ;;  %v770_v31 = vld [vmem:[#allocation4 + $0x1f0] sm:$0xff] }
 0x1f2   :  { %642 = vmatprep.mubr.f32.mxu1 %v458_v32  ;;  %v1418_v32 = vld [vmem:[%s9591_s4 + $0x20] sm:$0xff] }
 0x1f3   :  { %1030 = vmatmul.mubr.f32.gmra.mrb[58].mxu0 %v734_v56  ;;  %v764_v56 = vld [vmem:[#allocation4 + $0x1c0] sm:$0xff] }
 0x1f4   :  { %1034 = vmatprep.mubr.f32.mxu0 %v737_v57  ;;  %v767_v57 = vld [vmem:[#allocation4 + $0x1d8] sm:$0xff] }
 0x1f5   :  { %643 = vmatmul.mubr.f32.gmra.mrb[38].mxu1 %v457_v33  ;;  %v1420_v33 = vld [vmem:[%s9591_s4 + $0x30] sm:$0xff] }
 0x1f6   :  { %647 = vmatprep.mubr.f32.mxu1 %v460_v62  ;;  %v1421_v62 = vld [vmem:[%s9591_s4 + $0x38] sm:$0xff] }
 0x1f7   :  { %1035 = vmatmul.mubr.f32.gmra.mrb[60].mxu0 %v736_v58  ;;  %v768_v58 = vld [vmem:[#allocation4 + $0x1e0] sm:$0xff] }
 0x1f8   :  { %1039 = vmatprep.mubr.f32.mxu0 %v739_v59  ;;  %v771_v59 = vld [vmem:[#allocation4 + $0x1f8] sm:$0xff] }
 0x1f9   :  { %648 = vmatmul.mubr.f32.gmra.mrb[40].mxu1 %v459_v34  ;;  %v1423_v34 = vld [vmem:[%s9591_s4 + $0x48] sm:$0xff] }
 0x1fa   :  { %652 = vmatprep.mubr.f32.mxu1 %v462_v63 }
 0x1fb   :  { %1040 = vmatmul.mubr.f32.gmra.mrb[62].mxu0 %v738_v60  ;;  %v1419_v60 = vld [vmem:[%s9591_s4 + $0x28] sm:$0xff] }
 0x1fc   :  { %1044 = vmatprep.mubr.f32.mxu0 %v741_v61  ;;  %v7317_v61 = vpack.c.bf16 %v1419_v60, %v1418_v32 }
 0x1fd   :  { %653 = vmatmul.mubr.f32.gmra.mrb[42].mxu1 %v461_v3 }
 0x1fe   :  { %657 = vmatprep.mubr.f32.mxu1 %v464_v8  ;;  %9704 = vst [vmem:[#allocation10_spill] sm:$0xff] %v7317_v61  ;;  %5912 = vmatprep.subr.bf16.mxu1 %v7317_v61 }
 0x1ff   :  { %1045 = vmatmul.mubr.f32.gmra.mrb[64].mxu0 %v740_v5  ;;  %5914 = vmatpush3.bf16.msra.mxu1 %v7317_v61  ;;  %v7327_v5 = vpack.c.bf16 %v1421_v62, %v1420_v33 }
 0x200   :  { %1049 = vmatprep.mubr.f32.mxu0 %v743_v7  ;;  %v1422_v7 = vld [vmem:[%s9591_s4 + $0x40] sm:$0xff] }
 0x201   :  { %658 = vmatmul.mubr.f32.gmra.mrb[44].mxu1 %v463_v6  ;;  %9705 = vst [vmem:[#allocation11_spill] sm:$0xff] %v7327_v5  ;;  %5916 = vmatprep.subr.bf16.mxu1 %v7327_v5  ;;  %v7337_v63 = vpack.c.bf16 %v1423_v34, %v1422_v7 }
 0x202   :  { %662 = vmatprep.mubr.f32.mxu1 %v466_v10 }
 0x203   :  { %1050 = vmatmul.mubr.f32.gmra.mrb[66].mxu0 %v742_v35  ;;  %5918 = vmatpush3.bf16.msra.mxu1 %v7327_v5  ;;  %9706 = vst [vmem:[#allocation12_spill] sm:$0xff] %v7337_v63  ;;  %v1424_v35 = vld [vmem:[%s9591_s4 + $0x50] sm:$0xff] }
 0x204   :  { %1054 = vmatprep.mubr.f32.mxu0 %v745_v0  ;;  %5920 = vmatprep.subr.bf16.mxu1 %v7337_v63  ;;  %v1425_v0 = vld [vmem:[%s9591_s4 + $0x58] sm:$0xff]  ;;  %s6838_s4 = smov 32  }
 0x205   :  { %663 = vmatmul.mubr.f32.gmra.mrb[46].mxu1 %v465_v36  ;;  %v7347_v3 = vpack.c.bf16 %v1425_v0, %v1424_v35 }
 0x206   :  { %667 = vmatprep.mubr.f32.mxu1 %v468_v12 }
 0x207   :  { %1055 = vmatmul.mubr.f32.gmra.mrb[68].mxu0 %v744_v9  ;;  %5922 = vmatpush3.bf16.msra.mxu1 %v7337_v63  ;;  %9707 = vst [vmem:[#allocation13_spill] sm:$0xff] %v7347_v3 }
 0x208   :  { %1059 = vmatprep.mubr.f32.mxu0 %v747_v1  ;;  %5924 = vmatprep.subr.bf16.mxu1 %v7347_v3 }
 0x209   :  { %668 = vmatmul.mubr.f32.gmra.mrb[48].mxu1 %v467_v40 }
 0x20a   :  { %672 = vmatprep.mubr.f32.mxu1 %v470_v14 }
 0x20b   :  { %1060 = vmatmul.mubr.f32.gmra.mrb[70].mxu0 %v746_v11  ;;  %5926 = vmatpush3.bf16.msra.mxu1 %v7347_v3 }
 0x20c   :  { %1064 = vmatprep.mubr.f32.mxu0 %v749_v4  ;;  %5935 = vmatprep.subr.bf16.mxu1 %v9595_v38 }
 0x20d   :  { %673 = vmatmul.mubr.f32.gmra.mrb[50].mxu1 %v469_v15 }
 0x20e   :  { %677 = vmatprep.mubr.f32.mxu1 %v472_v16 }
 0x20f   :  { %1065 = vmatmul.mubr.f32.gmra.mrb[72].mxu0 %v748_v37 }
 0x210   :  { %1069 = vmatprep.mubr.f32.mxu0 %v751_v13 }
 0x211   :  { %678 = vmatmul.mubr.f32.gmra.mrb[52].mxu1 %v471_v45 }
 0x212   :  { %682 = vmatprep.mubr.f32.mxu1 %v474_v18 }
 0x213   :  { %1070 = vmatmul.mubr.f32.gmra.mrb[74].mxu0 %v750_v41 }
 0x214   :  { %1074 = vmatprep.mubr.f32.mxu0 %v753_v42 }
 0x215   :  { %683 = vmatmul.mubr.f32.gmra.mrb[54].mxu1 %v473_v47 }
 0x216   :  { %687 = vmatprep.mubr.f32.mxu1 %v476_v20 }
 0x217   :  { %1075 = vmatmul.mubr.f32.gmra.mrb[76].mxu0 %v752_v43 }
 0x218   :  { %1079 = vmatprep.mubr.f32.mxu0 %v755_v44 }
 0x219   :  { %688 = vmatmul.mubr.f32.gmra.mrb[56].mxu1 %v475_v49 }
 0x21a   :  { %692 = vmatprep.mubr.f32.mxu1 %v478_v22 }
 0x21b   :  { %1080 = vmatmul.mubr.f32.gmra.mrb[78].mxu0 %v754_v46 }
 0x21c   :  { %1084 = vmatprep.mubr.f32.mxu0 %v757_v17 }
 0x21d   :  { %693 = vmatmul.mubr.f32.gmra.mrb[58].mxu1 %v477_v53  ;;  %v7379_v53 = vpop.permute.xlu0 %1253 }
 0x21e   :  { %697 = vmatprep.mubr.f32.mxu1 %v480_v25 }
 0x21f   :  { %1085 = vmatmul.mubr.f32.gmra.mrb[80].mxu0 %v756_v48 }
 0x220   :  { %1089 = vmatprep.mubr.f32.mxu0 %v759_v19 }
 0x221   :  { %698 = vmatmul.mubr.f32.gmra.mrb[60].mxu1 %v479_v26 }
 0x222   :  { %702 = vmatprep.mubr.f32.mxu1 %v482_v27  ;;  %v7386_v27 = vpop.permute.xlu0 %1257 }
 0x223   :  { %1090 = vmatmul.mubr.f32.gmra.mrb[82].mxu0 %v758_v50 }
 0x224   :  { %1094 = vmatprep.mubr.f32.mxu0 %v761_v21 }
 0x225   :  { %703 = vmatmul.mubr.f32.gmra.mrb[62].mxu1 %v481_v28 }
 0x226   :  { %v7396_v60 = vpop.permute.xlu0 %1261 }
 0x227   :  { %1095 = vmatmul.mubr.f32.gmra.mrb[84].mxu0 %v760_v23 }
 0x228   :  { %1099 = vmatprep.mubr.f32.mxu0 %v763_v39 }
 0x22a   :  { %v7403_v0 = vpop.permute.xlu0 %1265 }
 0x22b   :  { %1100 = vmatmul.mubr.f32.gmra.mrb[86].mxu0 %v762_v54 }
 0x22c   :  { %1104 = vmatprep.mubr.f32.mxu0 %v765_v55  ;;  %v7384_v55 = vpop.permute.xlu1 %1255 }
 0x22f   :  { %1105 = vmatmul.mubr.f32.gmra.mrb[88].mxu0 %v764_v56 }
 0x230   :  { %1109 = vmatprep.mubr.f32.mxu0 %v767_v57 }
 0x233   :  { %1110 = vmatmul.mubr.f32.gmra.mrb[90].mxu0 %v766_v29 }
 0x234   :  { %1114 = vmatprep.mubr.f32.mxu0 %v769_v30  ;;  %v7391_v30 = vpop.permute.xlu1 %1259 }
 0x237   :  { %1115 = vmatmul.mubr.f32.gmra.mrb[92].mxu0 %v768_v58 }
 0x238   :  { %1119 = vmatprep.mubr.f32.mxu0 %v771_v59  ;;  %v7401_v35 = vpop.permute.xlu1 %1263 }
 0x23b   :  { %1120 = vmatmul.mubr.f32.gmra.mrb[94].mxu0 %v770_v31 }
 0x268   :  { %v7352_v8 = vpop.f32.mrb[0].mxu1 }
 0x269   :  { %v551_v9 = vpop.f32.mrb[1].mxu1 }
 0x26e   :  { %v7354_v1 = vpop.f32.mrb[2].mxu1 }
 0x26f   :  { %v556_v6 = vpop.f32.mrb[3].mxu1 }
 0x274   :  { %v7356_v10 = vpop.f32.mrb[4].mxu1 }
 0x275   :  { %v561_v11 = vpop.f32.mrb[5].mxu1 }
 0x279   :  { %v7358_v4 = vpop.f32.mrb[6].mxu1 }
 0x27a   :  { %v566_v12 = vpop.f32.mrb[7].mxu1 }
 0x27b   :  { %v7408_v12 = vpop.permute.xlu1 %1267 }
 0x27d   :  { %v7361_v13 = vpop.f32.mrb[8].mxu1 }
 0x27e   :  { %v571_v41 = vpop.f32.mrb[9].mxu1 }
 0x281   :  { %v7364_v14 = vpop.f32.mrb[10].mxu1 }
 0x282   :  { %v576_v43 = vpop.f32.mrb[11].mxu1 }
 0x292   :  { %v966_v36 = vpop.f32.mrb[32].mxu0 }
 0x293   :  { %1157 = vrot.lane.b32.xlu0 %v966_v36, %s6838_s4  ;;  %v968_v37 = vpop.f32.mrb[33].mxu0 }
 0x294   :  { %v7367_v16 = vpop.f32.mrb[12].mxu1 }
 0x295   :  { %v581_v46 = vpop.f32.mrb[13].mxu1 }
 0x296   :  { %v971_v40 = vpop.f32.mrb[34].mxu0 }
 0x297   :  { %1159 = vrot.lane.b32.xlu1 %v971_v40, %s6838_s4  ;;  %v973_v42 = vpop.f32.mrb[35].mxu0 }
 0x298   :  { %v7370_v18 = vpop.f32.mrb[14].mxu1 }
 0x299   :  { %v586_v48 = vpop.f32.mrb[15].mxu1 }
 0x29a   :  { %v976_v15 = vpop.f32.mrb[36].mxu0 }
 0x29b   :  { %1161 = vrot.lane.b32.xlu0 %v976_v15, %s6838_s4  ;;  %v978_v44 = vpop.f32.mrb[37].mxu0  ;;  %v7413_v15 = vpop.permute.xlu0 %1269 }
 0x29c   :  { %v7373_v20 = vpop.f32.mrb[16].mxu1 }
 0x29d   :  { %v591_v50 = vpop.f32.mrb[17].mxu1 }
 0x29e   :  { %v981_v45 = vpop.f32.mrb[38].mxu0 }
 0x29f   :  { %1163 = vrot.lane.b32.xlu1 %v981_v45, %s6838_s4  ;;  %v983_v17 = vpop.f32.mrb[39].mxu0 }
 0x2a0   :  { %v7376_v22 = vpop.f32.mrb[18].mxu1  ;;  %v7418_v17 = vpop.permute.xlu1 %1271 }
 0x2a1   :  { %v596_v52 = vpop.f32.mrb[19].mxu1 }
 0x2a2   :  { %v986_v47 = vpop.f32.mrb[40].mxu0 }
 0x2a3   :  { %1165 = vrot.lane.b32.xlu0 %v986_v47, %s6838_s4  ;;  %v988_v19 = vpop.f32.mrb[41].mxu0  ;;  %v7420_v47 = vpop.permute.xlu0 %1273 }
 0x2a4   :  { %v7381_v39 = vpop.f32.mrb[20].mxu1 }
 0x2a5   :  { %v601_v26 = vpop.f32.mrb[21].mxu1 }
 0x2a6   :  { %v991_v49 = vpop.f32.mrb[42].mxu0 }
 0x2a7   :  { %1167 = vrot.lane.b32.xlu1 %v991_v49, %s6838_s4  ;;  %v993_v21 = vpop.f32.mrb[43].mxu0  ;;  %v7430_v26 = vpop.permute.xlu0 %1277 }
 0x2a8   :  { %v7388_v28 = vpop.f32.mrb[22].mxu1  ;;  %v7425_v21 = vpop.permute.xlu1 %1275 }
 0x2a9   :  { %v606_v57 = vpop.f32.mrb[23].mxu1 }
 0x2aa   :  { %v996_v51 = vpop.f32.mrb[44].mxu0 }
 0x2ab   :  { %1169 = vrot.lane.b32.xlu0 %v996_v51, %s6838_s4  ;;  %v998_v23 = vpop.f32.mrb[45].mxu0 }
 0x2ac   :  { %v7393_v58 = vpop.f32.mrb[24].mxu1 }
 0x2ad   :  { %v611_v31 = vpop.f32.mrb[25].mxu1 }
 0x2ae   :  { %v1001_v25 = vpop.f32.mrb[46].mxu0  ;;  %v7437_v31 = vpop.permute.xlu0 %1281 }
 0x2af   :  { %1171 = vrot.lane.b32.xlu1 %v1001_v25, %s6838_s4  ;;  %v1003_v54 = vpop.f32.mrb[47].mxu0 }
 0x2b0   :  { %v7398_v33 = vpop.f32.mrb[26].mxu1 }
 0x2b1   :  { %v616_v7 = vpop.f32.mrb[27].mxu1 }
 0x2b2   :  { %v1006_v56 = vpop.f32.mrb[48].mxu0 }
 0x2b3   :  { %1173 = vrot.lane.b32.xlu0 %v1006_v56, %s6838_s4  ;;  %v1008_v29 = vpop.f32.mrb[49].mxu0 }
 0x2b4   :  { %v7405_v9 = vpop.f32.mrb[28].mxu1 }
 0x2b5   :  { %v621_v11 = vpop.f32.mrb[29].mxu1 }
 0x2b6   :  { %v1011_v59 = vpop.f32.mrb[50].mxu0 }
 0x2b7   :  { %1175 = vrot.lane.b32.xlu1 %v1011_v59, %s6838_s4  ;;  %v1013_v32 = vpop.f32.mrb[51].mxu0  ;;  %v7435_v59 = vpop.permute.xlu1 %1279 }
 0x2b8   :  { %v7410_v37 = vpop.f32.mrb[30].mxu1 }
 0x2b9   :  { %v626_v41 = vpop.f32.mrb[31].mxu1 }
 0x2ba   :  { %v1016_v62 = vpop.f32.mrb[52].mxu0 }
 0x2bb   :  { %1177 = vrot.lane.b32.xlu0 %v1016_v62, %s6838_s4  ;;  %v1018_v34 = vpop.f32.mrb[53].mxu0 }
 0x2bc   :  { %v7415_v43 = vpop.f32.mrb[32].mxu1 }
 0x2bd   :  { %v631_v45 = vpop.f32.mrb[33].mxu1 }
 0x2be   :  { %v1021_v6 = vpop.f32.mrb[54].mxu0 }
 0x2bf   :  { %1179 = vrot.lane.b32.xlu1 %v1021_v6, %s6838_s4  ;;  %v1023_v36 = vpop.f32.mrb[55].mxu0  ;;  %v7442_v6 = vpop.permute.xlu1 %1283 }
 0x2c0   :  { %v7422_v48 = vpop.f32.mrb[34].mxu1 }
 0x2c1   :  { %v636_v49 = vpop.f32.mrb[35].mxu1 }
 0x2c2   :  { %v1026_v40 = vpop.f32.mrb[56].mxu0 }
 0x2c3   :  { %1181 = vrot.lane.b32.xlu0 %v1026_v40, %s6838_s4  ;;  %v1028_v42 = vpop.f32.mrb[57].mxu0  ;;  %v7452_v49 = vpop.permute.xlu1 %1287 }
 0x2c4   :  { %v7427_v51 = vpop.f32.mrb[36].mxu1  ;;  %v7447_v42 = vpop.permute.xlu0 %1285 }
 0x2c5   :  { %v641_v23 = vpop.f32.mrb[37].mxu1 }
 0x2c6   :  { %v1031_v44 = vpop.f32.mrb[58].mxu0 }
 0x2c7   :  { %1183 = vrot.lane.b32.xlu1 %v1031_v44, %s6838_s4  ;;  %v1033_v46 = vpop.f32.mrb[59].mxu0 }
 0x2c8   :  { %v7432_v54 = vpop.f32.mrb[38].mxu1 }
 0x2c9   :  { %v646_v57 = vpop.f32.mrb[39].mxu1 }
 0x2ca   :  { %v1036_v19 = vpop.f32.mrb[60].mxu0  ;;  %v7459_v57 = vpop.permute.xlu1 %1291 }
 0x2cb   :  { %1185 = vrot.lane.b32.xlu0 %v1036_v19, %s6838_s4  ;;  %v1038_v50 = vpop.f32.mrb[61].mxu0 }
 0x2cc   :  { %v7439_v32 = vpop.f32.mrb[40].mxu1  ;;  %v7454_v50 = vpop.permute.xlu0 %1289 }
 0x2cd   :  { %v651_v7 = vpop.f32.mrb[41].mxu1 }
 0x2ce   :  { %v1041_v52 = vpop.f32.mrb[62].mxu0 }
 0x2cf   :  { %1187 = vrot.lane.b32.xlu1 %v1041_v52, %s6838_s4  ;;  %v1043_v25 = vpop.f32.mrb[63].mxu0 }
 0x2d0   :  { %v7444_v11 = vpop.f32.mrb[42].mxu1 }
 0x2d1   :  { %v656_v40 = vpop.f32.mrb[43].mxu1 }
 0x2d2   :  { %v1046_v56 = vpop.f32.mrb[64].mxu0 }
 0x2d3   :  { %1189 = vrot.lane.b32.xlu0 %v1046_v56, %s6838_s4  ;;  %v1048_v29 = vpop.f32.mrb[65].mxu0 }
 0x2d4   :  { %v7449_v44 = vpop.f32.mrb[44].mxu1 }
 0x2d5   :  { %v661_v46 = vpop.f32.mrb[45].mxu1 }
 0x2d6   :  { %v1051_v62 = vpop.f32.mrb[66].mxu0 }
 0x2d7   :  { %1191 = vrot.lane.b32.xlu1 %v1051_v62, %s6838_s4  ;;  %v1053_v34 = vpop.f32.mrb[67].mxu0 }
 0x2d8   :  { %v7456_v52 = vpop.f32.mrb[46].mxu1 }
 0x2d9   :  { %v666_v25 = vpop.f32.mrb[47].mxu1 }
 0x2da   :  { %v1056_v36 = vpop.f32.mrb[68].mxu0 }
 0x2db   :  { %1193 = vrot.lane.b32.xlu0 %v1056_v36, %s6838_s4  ;;  %v1058_v41 = vpop.f32.mrb[69].mxu0  ;;  %v7464_v36 = vpop.permute.xlu0 %1293 }
 0x2dc   :  { %v7461_v29 = vpop.f32.mrb[48].mxu1 }
 0x2dd   :  { %v671_v7 = vpop.f32.mrb[49].mxu1 }
 0x2de   :  { %v1061_v45 = vpop.f32.mrb[70].mxu0 }
 0x2df   :  { %1195 = vrot.lane.b32.xlu1 %v1061_v45, %s6838_s4  ;;  %v1063_v19 = vpop.f32.mrb[71].mxu0 }
 0x2e0   :  { %v7466_v40 = vpop.f32.mrb[50].mxu1  ;;  %v7469_v19 = vpop.permute.xlu1 %1295 }
 0x2e1   :  { %v676_v45 = vpop.f32.mrb[51].mxu1 }
 0x2e2   :  { %v1066_v23 = vpop.f32.mrb[72].mxu0 }
 0x2e3   :  { %1197 = vrot.lane.b32.xlu0 %v1066_v23, %s6838_s4  ;;  %v1068_v56 = vpop.f32.mrb[73].mxu0  ;;  %v7471_v23 = vpop.permute.xlu0 %1297 }
 0x2e4   :  { %v7473_v25 = vpop.f32.mrb[52].mxu1 }
 0x2e5   :  { %9708 = vst [vmem:[#allocation14_spill] sm:$0xff] %v7473_v25  ;;  %v681_v7 = vpop.f32.mrb[53].mxu1 }
 0x2e6   :  { %v1071_v62 = vpop.f32.mrb[74].mxu0 }
 0x2e7   :  { %1199 = vrot.lane.b32.xlu1 %v1071_v62, %s6838_s4  ;;  %v1073_v34 = vpop.f32.mrb[75].mxu0 }
 0x2e8   :  { %v7476_v34 = vpop.permute.xlu1 %1299  ;;  %v7478_v38 = vpop.f32.mrb[54].mxu1 }
 0x2e9   :  { %9709 = vst [vmem:[#allocation15_spill] sm:$0xff] %v7478_v38  ;;  %v686_v45 = vpop.f32.mrb[55].mxu1 }
 0x2ea   :  { %v1076_v41 = vpop.f32.mrb[76].mxu0 }
 0x2eb   :  { %1201 = vrot.lane.b32.xlu0 %v1076_v41, %s6838_s4  ;;  %v1078_v46 = vpop.f32.mrb[77].mxu0 }
 0x2ec   :  { %v7481_v46 = vpop.permute.xlu0 %1301  ;;  %v7483_v63 = vpop.f32.mrb[56].mxu1 }
 0x2ed   :  { %9710 = vst [vmem:[#allocation16_spill] sm:$0xff] %v7483_v63  ;;  %v691_v61 = vpop.f32.mrb[57].mxu1 }
 0x2ee   :  { %v1081_v56 = vpop.f32.mrb[78].mxu0 }
 0x2ef   :  { %1203 = vrot.lane.b32.xlu1 %v1081_v56, %s6838_s4  ;;  %v1083_v62 = vpop.f32.mrb[79].mxu0  ;;  %v7486_v56 = vpop.permute.xlu1 %1303 }
 0x2f0   :  { %v7488_v62 = vpop.permute.xlu0 %1305  ;;  %v7490_v24 = vpop.f32.mrb[58].mxu1 }
 0x2f1   :  { %9711 = vst [vmem:[#allocation17_spill] sm:$0xff] %v7488_v62  ;;  %9712 = vst [vmem:[#allocation18_spill] sm:$0xff] %v7490_v24  ;;  %v696_v45 = vpop.f32.mrb[59].mxu1 }
 0x2f2   :  { %v1086_v3 = vpop.f32.mrb[80].mxu0 }
 0x2f3   :  { %1205 = vrot.lane.b32.xlu0 %v1086_v3, %s6838_s4  ;;  %v1088_v41 = vpop.f32.mrb[81].mxu0 }
 0x2f4   :  { %v7493_v41 = vpop.permute.xlu1 %1307  ;;  %v7495_v38 = vpop.f32.mrb[60].mxu1 }
 0x2f5   :  { %9713 = vst [vmem:[#allocation19_spill] sm:$0xff] %v7495_v38  ;;  %v701_v61 = vpop.f32.mrb[61].mxu1 }
 0x2f6   :  { %v1091_v5 = vpop.f32.mrb[82].mxu0 }
 0x2f7   :  { %1207 = vrot.lane.b32.xlu1 %v1091_v5, %s6838_s4  ;;  %v1093_v7 = vpop.f32.mrb[83].mxu0 }
 0x2f8   :  { %v7498_v7 = vpop.permute.xlu0 %1309  ;;  %v7500_v25 = vpop.f32.mrb[62].mxu1 }
 0x2f9   :  { %9714 = vst [vmem:[#allocation20_spill] sm:$0xff] %v7500_v25  ;;  %v706_v24 = vpop.f32.mrb[63].mxu1 }
 0x2fa   :  { %v1096_v2 = vpop.f32.mrb[84].mxu0 }
 0x2fb   :  { %1209 = vrot.lane.b32.xlu0 %v1096_v2, %s6838_s4  ;;  %v1098_v3 = vpop.f32.mrb[85].mxu0  ;;  %v7503_v2 = vpop.permute.xlu1 %1311 }
 0x2fe   :  { %v1101_v63 = vpop.f32.mrb[86].mxu0 }
 0x2ff   :  { %1211 = vrot.lane.b32.xlu1 %v1101_v63, %s6838_s4  ;;  %v1103_v5 = vpop.f32.mrb[87].mxu0 }
 0x302   :  { %v1106_v62 = vpop.f32.mrb[88].mxu0 }
 0x303   :  { %1213 = vrot.lane.b32.xlu0 %v1106_v62, %s6838_s4  ;;  %v1108_v45 = vpop.f32.mrb[89].mxu0 }
 0x305   :  { %v1158_v3 = vpop.permute.xlu0 %1157 }
 0x306   :  { %v1349_v61 = vsel %vm97_vm0, %v7352_v8, %v1158_v3  ;;  %v1111_v38 = vpop.f32.mrb[90].mxu0 }
 0x307   :  { %1215 = vrot.lane.b32.xlu1 %v1111_v38, %s6838_s4  ;;  %v1113_v63 = vpop.f32.mrb[91].mxu0  ;;  %v1382_v5 = vsel %vm1381_vm1, %v1349_v61, %v7379_v53  ;;  %v6619_v61 = vld [vmem:[%s9589_s2 + $0xf0] sm:$0xff] }
 0x308   :  { %5623 = vmatprep.mubr.msk.f32.mxu1 %vm1433_vm2, %v1382_v5 }
 0x309   :  { %v1160_v24 = vpop.permute.xlu1 %1159 }
 0x30a   :  { %v1350_v62 = vsel %vm97_vm0, %v7354_v1, %v1160_v24  ;;  %v1116_v45 = vpop.f32.mrb[92].mxu0  ;;  %v6621_v24 = vld [vmem:[%s9589_s2] sm:$0xff] }
 0x30b   :  { %v1383_v25 = vsel %vm1381_vm1, %v1350_v62, %v7384_v55  ;;  %1217 = vrot.lane.b32.xlu0 %v1116_v45, %s6838_s4  ;;  %v1118_v8 = vpop.f32.mrb[93].mxu0  ;;  %v6622_v45 = vld [vmem:[%s9589_s2 + $0x8] sm:$0xff] }
 0x30c   :  { %5624 = vmatmul.mubr.msk.f32.vlgmr.msra.gmra.mrb[64].mxu1 %vm1433_vm2, %v1383_v25 }
 0x30d   :  { %v1162_v38 = vpop.permute.xlu0 %1161 }
 0x30e   :  { %v1351_v3 = vsel %vm97_vm0, %v7356_v10, %v1162_v38  ;;  %v1121_v53 = vpop.f32.mrb[94].mxu0  ;;  %v6620_v10 = vld [vmem:[%s9589_s2 + $0xf8] sm:$0xff] }
 0x30f   :  { %1313 = vrot.lane.b32.xlu0 %v6619_v61, %s6837_s24  ;;  %1219 = vrot.lane.b32.xlu1 %v1121_v53, %s6838_s4  ;;  %v1123_v1 = vpop.f32.mrb[95].mxu0  ;;  %v1384_v55 = vsel %vm1381_vm1, %v1351_v3, %v7386_v27 }
 0x310   :  { %5626 = vmatprep.mubr.msk.f32.mxu1 %vm1433_vm2, %v1384_v55 }
 0x311   :  { %v1164_v25 = vpop.permute.xlu1 %1163 }
 0x312   :  { %v1352_v63 = vsel %vm97_vm0, %v7358_v4, %v1164_v25 }
 0x313   :  { %1315 = vrot.lane.b32.xlu1 %v6620_v10, %s6837_s24  ;;  %v1385_v5 = vsel %vm1381_vm1, %v1352_v63, %v7391_v30  ;;  %2331 = vrot.lane.b32.xlu0 %v6621_v24, %s6838_s4 }
 0x314   :  { %5627 = vmatmul.mubr.msk.f32.gmra.mrb[66].mxu1 %vm1433_vm2, %v1385_v5 }
 0x315   :  { %v1166_v27 = vpop.permute.xlu0 %1165 }
 0x316   :  { %v1353_v4 = vsel %vm97_vm0, %v7361_v13, %v1166_v27  ;;  %v6623_v13 = vld [vmem:[%s9589_s2 + $0x10] sm:$0xff] }
 0x317   :  { %v1386_v62 = vsel %vm1381_vm1, %v1353_v4, %v7396_v60  ;;  %2333 = vrot.lane.b32.xlu0 %v6622_v45, %s6838_s4 }
 0x318   :  { %5629 = vmatprep.mubr.msk.f32.mxu1 %vm1433_vm2, %v1386_v62 }
 0x319   :  { %v1168_v30 = vpop.permute.xlu1 %1167 }
 0x31a   :  { %v1354_v8 = vsel %vm97_vm0, %v7364_v14, %v1168_v30  ;;  %v6624_v14 = vld [vmem:[%s9589_s2 + $0x18] sm:$0xff] }
 0x31b   :  { %v1387_v38 = vsel %vm1381_vm1, %v1354_v8, %v7401_v35  ;;  %2335 = vrot.lane.b32.xlu0 %v6623_v13, %s6838_s4 }
 0x31c   :  { %5630 = vmatmul.mubr.msk.f32.gmra.mrb[68].mxu1 %vm1433_vm2, %v1387_v38 }
 0x31d   :  { %v1170_v60 = vpop.permute.xlu0 %1169 }
 0x31e   :  { %v1355_v3 = vsel %vm97_vm0, %v7367_v16, %v1170_v60  ;;  %v6625_v16 = vld [vmem:[%s9589_s2 + $0x20] sm:$0xff] }
 0x31f   :  { %v1388_v53 = vsel %vm1381_vm1, %v1355_v3, %v7403_v0  ;;  %2337 = vrot.lane.b32.xlu0 %v6624_v14, %s6838_s4 }
 0x320   :  { %5632 = vmatprep.mubr.msk.f32.mxu1 %vm1433_vm2, %v1388_v53 }
 0x321   :  { %v1172_v35 = vpop.permute.xlu1 %1171 }
 0x322   :  { %v1356_v61 = vsel %vm97_vm0, %v7370_v18, %v1172_v35  ;;  %v6626_v18 = vld [vmem:[%s9589_s2 + $0x28] sm:$0xff] }
 0x323   :  { %v1389_v1 = vsel %vm1381_vm1, %v1356_v61, %v7408_v12  ;;  %2339 = vrot.lane.b32.xlu0 %v6625_v16, %s6838_s4 }
 0x324   :  { %5633 = vmatmul.mubr.msk.f32.gmra.mrb[70].mxu1 %vm1433_vm2, %v1389_v1 }
 0x325   :  { %v1174_v0 = vpop.permute.xlu0 %1173 }
 0x326   :  { %v1357_v55 = vsel %vm97_vm0, %v7373_v20, %v1174_v0  ;;  %v6627_v20 = vld [vmem:[%s9589_s2 + $0x30] sm:$0xff] }
 0x327   :  { %v1390_v25 = vsel %vm1381_vm1, %v1357_v55, %v7413_v15  ;;  %2341 = vrot.lane.b32.xlu0 %v6626_v18, %s6838_s4 }
 0x328   :  { %5635 = vmatprep.mubr.msk.f32.mxu1 %vm1433_vm2, %v1390_v25 }
 0x329   :  { %v1176_v12 = vpop.permute.xlu1 %1175 }
 0x32a   :  { %v1358_v63 = vsel %vm97_vm0, %v7376_v22, %v1176_v12  ;;  %v6628_v22 = vld [vmem:[%s9589_s2 + $0x38] sm:$0xff] }
 0x32b   :  { %v1391_v10 = vsel %vm1381_vm1, %v1358_v63, %v7418_v17  ;;  %2343 = vrot.lane.b32.xlu0 %v6627_v20, %s6838_s4  ;;  %v9715_v20 = vld [vmem:[#allocation14_spill] sm:$0xff] }
 0x32c   :  { %5636 = vmatmul.mubr.msk.f32.gmra.mrb[72].mxu1 %vm1433_vm2, %v1391_v10 }
 0x32d   :  { %v1178_v15 = vpop.permute.xlu0 %1177 }
 0x32e   :  { %v1359_v5 = vsel %vm97_vm0, %v7381_v39, %v1178_v15  ;;  %v6629_v39 = vld [vmem:[%s9589_s2 + $0x40] sm:$0xff] }
 0x32f   :  { %v1392_v24 = vsel %vm1381_vm1, %v1359_v5, %v7420_v47  ;;  %2345 = vrot.lane.b32.xlu0 %v6628_v22, %s6838_s4  ;;  %v9716_v5 = vld [vmem:[#allocation17_spill] sm:$0xff] }
 0x330   :  { %5638 = vmatprep.mubr.msk.f32.mxu1 %vm1433_vm2, %v1392_v24  ;;  %v9717_v24 = vld [vmem:[#allocation15_spill] sm:$0xff] }
 0x331   :  { %v1180_v17 = vpop.permute.xlu1 %1179 }
 0x332   :  { %v1360_v27 = vsel %vm97_vm0, %v7388_v28, %v1180_v17  ;;  %v6630_v28 = vld [vmem:[%s9589_s2 + $0x48] sm:$0xff]  ;;  %v9718_v17 = vld [vmem:[#allocation16_spill] sm:$0xff] }
 0x333   :  { %v1393_v4 = vsel %vm1381_vm1, %v1360_v27, %v7425_v21  ;;  %2347 = vrot.lane.b32.xlu0 %v6629_v39, %s6838_s4 }
 0x334   :  { %5639 = vmatmul.mubr.msk.f32.gmra.mrb[74].mxu1 %vm1433_vm2, %v1393_v4 }
 0x335   :  { %v1182_v47 = vpop.permute.xlu0 %1181 }
 0x336   :  { %v1361_v62 = vsel %vm97_vm0, %v7393_v58, %v1182_v47  ;;  %v6631_v58 = vld [vmem:[%s9589_s2 + $0x50] sm:$0xff] }
 0x337   :  { %v1394_v45 = vsel %vm1381_vm1, %v1361_v62, %v7430_v26  ;;  %2349 = vrot.lane.b32.xlu0 %v6630_v28, %s6838_s4  ;;  %v9719_v47 = vld [vmem:[#allocation18_spill] sm:$0xff]  ;;  %v9720_v28 = vld [vmem:[#allocation19_spill] sm:$0xff] }
 0x338   :  { %5641 = vmatprep.mubr.msk.f32.mxu1 %vm1433_vm2, %v1394_v45 }
 0x339   :  { %v1184_v21 = vpop.permute.xlu1 %1183 }
 0x33a   :  { %v1362_v30 = vsel %vm97_vm0, %v7398_v33, %v1184_v21  ;;  %v6632_v33 = vld [vmem:[%s9589_s2 + $0x58] sm:$0xff] }
 0x33b   :  { %v1395_v8 = vsel %vm1381_vm1, %v1362_v30, %v7435_v59  ;;  %2351 = vrot.lane.b32.xlu0 %v6631_v58, %s6838_s4 }
 0x33c   :  { %5642 = vmatmul.mubr.msk.f32.gmra.mrb[76].mxu1 %vm1433_vm2, %v1395_v8 }
 0x33d   :  { %v1186_v26 = vpop.permute.xlu0 %1185 }
 0x33e   :  { %v1363_v38 = vsel %vm97_vm0, %v7405_v9, %v1186_v26  ;;  %v6633_v9 = vld [vmem:[%s9589_s2 + $0x60] sm:$0xff] }
 0x33f   :  { %v1396_v13 = vsel %vm1381_vm1, %v1363_v38, %v7437_v31  ;;  %2353 = vrot.lane.b32.xlu0 %v6632_v33, %s6838_s4  ;;  %v7733_v33 = vld [vmem:[%s9593_s6] ss:$0 sm:$0xff] }
 0x340   :  { %5644 = vmatprep.mubr.msk.f32.mxu1 %vm1433_vm2, %v1396_v13 }
 0x341   :  { %v1188_v59 = vpop.permute.xlu1 %1187 }
 0x342   :  { %v1364_v60 = vsel %vm97_vm0, %v7410_v37, %v1188_v59  ;;  %v6634_v37 = vld [vmem:[%s9589_s2 + $0x68] sm:$0xff] }
 0x343   :  { %v1397_v3 = vsel %vm1381_vm1, %v1364_v60, %v7442_v6  ;;  %2355 = vrot.lane.b32.xlu0 %v6633_v9, %s6838_s4 }
 0x344   :  { %5645 = vmatmul.mubr.msk.f32.gmra.mrb[78].mxu1 %vm1433_vm2, %v1397_v3 }
 0x345   :  { %v1190_v31 = vpop.permute.xlu0 %1189 }
 0x346   :  { %v1365_v53 = vsel %vm97_vm0, %v7415_v43, %v1190_v31 }
 0x347   :  { %v1398_v14 = vsel %vm1381_vm1, %v1365_v53, %v7447_v42  ;;  %2357 = vrot.lane.b32.xlu0 %v6634_v37, %s6838_s4 }
 0x348   :  { %5647 = vmatprep.mubr.msk.f32.mxu1 %vm1433_vm2, %v1398_v14 }
 0x349   :  { %v1192_v6 = vpop.permute.xlu1 %1191 }
 0x34a   :  { %v1366_v35 = vsel %vm97_vm0, %v7422_v48, %v1192_v6 }
 0x34b   :  { %v1399_v61 = vsel %vm1381_vm1, %v1366_v35, %v7452_v49 }
 0x34c   :  { %5648 = vmatmul.mubr.msk.f32.gmra.mrb[80].mxu1 %vm1433_vm2, %v1399_v61 }
 0x34d   :  { %v1194_v43 = vpop.permute.xlu0 %1193 }
 0x34e   :  { %v1367_v42 = vsel %vm97_vm0, %v7427_v51, %v1194_v43 }
 0x34f   :  { %v1400_v1 = vsel %vm1381_vm1, %v1367_v42, %v7454_v50 }
 0x350   :  { %5650 = vmatprep.mubr.msk.f32.mxu1 %vm1433_vm2, %v1400_v1 }
 0x351   :  { %v1196_v16 = vpop.permute.xlu1 %1195 }
 0x352   :  { %v1368_v0 = vsel %vm97_vm0, %v7432_v54, %v1196_v16 }
 0x353   :  { %v1401_v48 = vsel %vm1381_vm1, %v1368_v0, %v7459_v57 }
 0x354   :  { %5651 = vmatmul.mubr.msk.f32.gmra.mrb[82].mxu1 %vm1433_vm2, %v1401_v48 }
 0x355   :  { %v1198_v49 = vpop.permute.xlu0 %1197 }
 0x356   :  { %v1369_v55 = vsel %vm97_vm0, %v7439_v32, %v1198_v49 }
 0x357   :  { %v1402_v51 = vsel %vm1381_vm1, %v1369_v55, %v7464_v36 }
 0x358   :  { %5653 = vmatprep.mubr.msk.f32.mxu1 %vm1433_vm2, %v1402_v51 }
 0x359   :  { %v1200_v50 = vpop.permute.xlu1 %1199 }
 0x35a   :  { %v1370_v25 = vsel %vm97_vm0, %v7444_v11, %v1200_v50 }
 0x35b   :  { %v1403_v54 = vsel %vm1381_vm1, %v1370_v25, %v7469_v19 }
 0x35c   :  { %5654 = vmatmul.mubr.msk.f32.gmra.mrb[84].mxu1 %vm1433_vm2, %v1403_v54 }
 0x35d   :  { %v1202_v57 = vpop.permute.xlu0 %1201 }
 0x35e   :  { %v1371_v18 = vsel %vm97_vm0, %v7449_v44, %v1202_v57 }
 0x35f   :  { %v1404_v32 = vsel %vm1381_vm1, %v1371_v18, %v7471_v23 }
 0x360   :  { %5656 = vmatprep.mubr.msk.f32.mxu1 %vm1433_vm2, %v1404_v32 }
 0x361   :  { %v1204_v36 = vpop.permute.xlu1 %1203 }
 0x362   :  { %v1372_v12 = vsel %vm97_vm0, %v7456_v52, %v1204_v36 }
 0x363   :  { %v1405_v11 = vsel %vm1381_vm1, %v1372_v12, %v7476_v34 }
 0x364   :  { %5657 = vmatmul.mubr.msk.f32.gmra.mrb[86].mxu1 %vm1433_vm2, %v1405_v11 }
 0x365   :  { %v1206_v19 = vpop.permute.xlu0 %1205 }
 0x366   :  { %v1373_v63 = vsel %vm97_vm0, %v7461_v29, %v1206_v19 }
 0x367   :  { %v1406_v44 = vsel %vm1381_vm1, %v1373_v63, %v7481_v46 }
 0x368   :  { %5659 = vmatprep.mubr.msk.f32.mxu1 %vm1433_vm2, %v1406_v44 }
 0x369   :  { %v1208_v23 = vpop.permute.xlu1 %1207 }
 0x36a   :  { %v1374_v10 = vsel %vm97_vm0, %v7466_v40, %v1208_v23 }
 0x36b   :  { %v1407_v52 = vsel %vm1381_vm1, %v1374_v10, %v7486_v56 }
 0x36c   :  { %5660 = vmatmul.mubr.msk.f32.gmra.mrb[88].mxu1 %vm1433_vm2, %v1407_v52 }
 0x36d   :  { %v1210_v34 = vpop.permute.xlu0 %1209 }
 0x36e   :  { %v1375_v15 = vsel %vm97_vm0, %v9715_v20, %v1210_v34 }
 0x36f   :  { %v1408_v29 = vsel %vm1381_vm1, %v1375_v15, %v9716_v5 }
 0x370   :  { %5662 = vmatprep.mubr.msk.f32.mxu1 %vm1433_vm2, %v1408_v29 }
 0x371   :  { %v1212_v46 = vpop.permute.xlu1 %1211 }
 0x372   :  { %v1376_v22 = vsel %vm97_vm0, %v9717_v24, %v1212_v46 }
 0x373   :  { %v1409_v40 = vsel %vm1381_vm1, %v1376_v22, %v7493_v41 }
 0x374   :  { %5663 = vmatmul.mubr.msk.f32.gmra.mrb[90].mxu1 %vm1433_vm2, %v1409_v40 }
 0x375   :  { %v1214_v56 = vpop.permute.xlu0 %1213 }
 0x376   :  { %v1377_v27 = vsel %vm97_vm0, %v9718_v17, %v1214_v56 }
 0x377   :  { %v1410_v4 = vsel %vm1381_vm1, %v1377_v27, %v7498_v7  ;;  %v9721_v7 = vld [vmem:[#allocation20_spill] sm:$0xff] }
 0x378   :  { %5665 = vmatprep.mubr.msk.f32.mxu1 %vm1433_vm2, %v1410_v4 }
 0x379   :  { %v1216_v39 = vpop.permute.xlu1 %1215 }
 0x37a   :  { %v1378_v62 = vsel %vm97_vm0, %v9719_v47, %v1216_v39 }
 0x37b   :  { %v1411_v45 = vsel %vm1381_vm1, %v1378_v62, %v7503_v2  ;;  %v6635_v2 = vld [vmem:[#allocation2 + $0x8] sm:$0xff] }
 0x37c   :  { %5666 = vmatmul.mubr.msk.f32.gmra.mrb[92].mxu1 %vm1433_vm2, %v1411_v45 }
 0x37d   :  { %v1218_v41 = vpop.permute.xlu0 %1217 }
 0x37e   :  { %v1379_v21 = vsel %vm97_vm0, %v9720_v28, %v1218_v41 }
 0x381   :  { %v1314_v30 = vpop.permute.xlu0 %1313  ;;  %v1220_v8 = vpop.permute.xlu1 %1219 }
 0x382   :  { %v1412_v58 = vsel %vm1381_vm1, %v1379_v21, %v1314_v30  ;;  %v1380_v26 = vsel %vm97_vm0, %v9721_v7, %v1220_v8 }
 0x383   :  { %5668 = vmatprep.mubr.msk.f32.mxu1 %vm1433_vm2, %v1412_v58 }
 0x385   :  { %v1316_v38 = vpop.permute.xlu1 %1315  ;;  %v7785_v50 = vpop.permute.xlu0 %2331 }
 0x386   :  { %v1413_v13 = vsel %vm1381_vm1, %v1380_v26, %v1316_v38 }
 0x387   :  { %5669 = vmatmul.mubr.msk.f32.gmra.mrb[94].mxu1 %vm1433_vm2, %v1413_v13 }
 0x388   :  { %3100 = vmatprep.mubr.f32.mxu1 %v6635_v2 }
 0x389   :  { %v7793_v32 = vpop.permute.xlu0 %2333 }
 0x38d   :  { %v7799_v12 = vpop.permute.xlu0 %2335 }
 0x391   :  { %v7811_v44 = vpop.permute.xlu0 %2337 }
 0x395   :  { %v7823_v20 = vpop.permute.xlu0 %2339 }
 0x399   :  { %v7831_v24 = vpop.permute.xlu0 %2341 }
 0x39d   :  { %v7837_v40 = vpop.permute.xlu0 %2343 }
 0x3a1   :  { %v7849_v4 = vpop.permute.xlu0 %2345 }
 0x3a5   :  { %v7862_v28 = vpop.permute.xlu0 %2347 }
 0x3a6   :  { %9722 = vst [vmem:[#allocation14_spill] sm:$0xff] %v7862_v28 }
 0x3a9   :  { %v7871_v26 = vpop.permute.xlu0 %2349 }
 0x3aa   :  { %9723 = vst [vmem:[#allocation17_spill] sm:$0xff] %v7871_v26 }
 0x3ad   :  { %v7878_v2 = vpop.permute.xlu0 %2351 }
 0x3ae   :  { %9724 = vst [vmem:[#allocation15_spill] sm:$0xff] %v7878_v2 }
 0x3df   :  { %v5625_v59 = vpop.f32.mrb[64].mxu1 }
 0x3e0   :  { %v7736_v60 = vadd.f32 %v5625_v59, %v7733_v33  ;;  %v1596_v3 = vpop.f32.mrb[65].mxu1 }
 0x3e1   :  { %v7739_v9 = vadd.f32 %v7733_v33, %v1596_v3 }
 0x3e2   :  { %1981 = vrot.lane.b32.xlu1 %v7736_v60, %s6838_s4  ;;  %v5256_v41 = vmul.f32 -1.442695, %v7736_v60 }
 0x3e3   :  { %1979 = vrot.lane.b32.xlu0 %v7739_v9, %s6838_s4  ;;  %v5255_v58 = vmul.f32 -1.442695, %v7739_v9 }
 0x3e4   :  { %6235 = vpow2.f32 %v5256_v41 }
 0x3e5   :  { %6237 = vpow2.f32 %v5255_v58 }
 0x3e7   :  { %v5628_v31 = vpop.f32.mrb[66].mxu1 }
 0x3e8   :  { %v7746_v53 = vadd.f32 %v5628_v31, %v7733_v33  ;;  %v1606_v14 = vpop.f32.mrb[67].mxu1 }
 0x3e9   :  { %v7749_v37 = vadd.f32 %v7733_v33, %v1606_v14 }
 0x3ea   :  { %1985 = vrot.lane.b32.xlu1 %v7746_v53, %s6838_s4  ;;  %v5258_v38 = vmul.f32 -1.442695, %v7746_v53 }
 0x3eb   :  { %1983 = vrot.lane.b32.xlu0 %v7749_v37, %s6838_s4 }
 0x3ec   :  { %6239 = vpow2.f32 %v5258_v38 }
 0x3ee   :  { %v6236_v14 = vpop.eup %6235 }
 0x3ef   :  { %v5631_v6 = vpop.f32.mrb[68].mxu1 }
 0x3f0   :  { %v7756_v35 = vadd.f32 %v5631_v6, %v7733_v33  ;;  %v1616_v61 = vpop.f32.mrb[69].mxu1  ;;  %v5257_v6 = vmul.f32 -1.442695, %v7749_v37 }
 0x3f1   :  { %v7759_v43 = vadd.f32 %v7733_v33, %v1616_v61 }
 0x3f2   :  { %1989 = vrot.lane.b32.xlu1 %v7756_v35, %s6838_s4  ;;  %v5260_v61 = vmul.f32 -1.442695, %v7756_v35  ;;  %6241 = vpow2.f32 %v5257_v6 }
 0x3f3   :  { %1987 = vrot.lane.b32.xlu0 %v7759_v43, %s6838_s4 }
 0x3f4   :  { %6243 = vpow2.f32 %v5260_v61 }
 0x3f7   :  { %v5634_v42 = vpop.f32.mrb[70].mxu1 }
 0x3f8   :  { %v7766_v1 = vadd.f32 %v5634_v42, %v7733_v33  ;;  %v1626_v16 = vpop.f32.mrb[71].mxu1  ;;  %v1852_v42 = vadd.f32 1.0, %v6236_v14 }
 0x3f9   :  { %v7769_v0 = vadd.f32 %v7733_v33, %v1626_v16  ;;  %v5259_v16 = vmul.f32 -1.442695, %v7759_v43 }
 0x3fa   :  { %1993 = vrot.lane.b32.xlu1 %v7766_v1, %s6838_s4  ;;  %6245 = vrcp.f32 %v1852_v42 }
 0x3fb   :  { %1991 = vrot.lane.b32.xlu0 %v7769_v0, %s6838_s4  ;;  %6247 = vpow2.f32 %v5259_v16 }
 0x3ff   :  { %v5637_v48 = vpop.f32.mrb[72].mxu1 }
 0x400   :  { %v7776_v49 = vadd.f32 %v5637_v48, %v7733_v33  ;;  %v1636_v55 = vpop.f32.mrb[73].mxu1  ;;  %v7893_v48 = vpop.permute.xlu0 %2353 }
 0x401   :  { %v7779_v51 = vadd.f32 %v7733_v33, %v1636_v55  ;;  %9725 = vst [vmem:[#allocation16_spill] sm:$0xff] %v7893_v48  ;;  %v6238_v55 = vpop.eup %6237 }
 0x402   :  { %1997 = vrot.lane.b32.xlu1 %v7776_v49, %s6838_s4  ;;  %v5264_v6 = vmul.f32 -1.442695, %v7776_v49 }
 0x403   :  { %1995 = vrot.lane.b32.xlu0 %v7779_v51, %s6838_s4 }
 0x407   :  { %v5640_v25 = vpop.f32.mrb[74].mxu1 }
 0x408   :  { %v7788_v54 = vadd.f32 %v5640_v25, %v7733_v33  ;;  %v1646_v57 = vpop.f32.mrb[75].mxu1 }
 0x409   :  { %v7791_v18 = vadd.f32 %v7733_v33, %v1646_v57 }
 0x40a   :  { %2001 = vrot.lane.b32.xlu1 %v7788_v54, %s6838_s4 }
 0x40b   :  { %1999 = vrot.lane.b32.xlu0 %v7791_v18, %s6838_s4 }
 0x40f   :  { %v5643_v36 = vpop.f32.mrb[76].mxu1 }
 0x410   :  { %v7802_v11 = vadd.f32 %v5643_v36, %v7733_v33  ;;  %v1656_v19 = vpop.f32.mrb[77].mxu1 }
 0x411   :  { %v7805_v63 = vadd.f32 %v7733_v33, %v1656_v19 }
 0x412   :  { %2005 = vrot.lane.b32.xlu1 %v7802_v11, %s6838_s4 }
 0x413   :  { %2003 = vrot.lane.b32.xlu0 %v7805_v63, %s6838_s4 }
 0x417   :  { %v5646_v23 = vpop.f32.mrb[78].mxu1 }
 0x418   :  { %v7814_v10 = vadd.f32 %v5646_v23, %v7733_v33  ;;  %v1666_v52 = vpop.f32.mrb[79].mxu1  ;;  %v6240_v23 = vpop.eup %6239 }
 0x419   :  { %v7817_v34 = vadd.f32 %v7733_v33, %v1666_v52  ;;  %v1851_v52 = vadd.f32 1.0, %v6238_v55  ;;  %v5263_v55 = vmul.f32 -1.442695, %v7779_v51 }
 0x41a   :  { %2009 = vrot.lane.b32.xlu1 %v7814_v10, %s6838_s4 }
 0x41b   :  { %2007 = vrot.lane.b32.xlu0 %v7817_v34, %s6838_s4  ;;  %6249 = vrcp.f32 %v1851_v52 }
 0x41f   :  { %v5649_v15 = vpop.f32.mrb[80].mxu1 }
 0x420   :  { %v7826_v5 = vadd.f32 %v5649_v15, %v7733_v33  ;;  %v1676_v29 = vpop.f32.mrb[81].mxu1  ;;  %v5262_v15 = vmul.f32 -1.442695, %v7766_v1 }
 0x421   :  { %v7829_v46 = vadd.f32 %v7733_v33, %v1676_v29  ;;  %v7906_v29 = vpop.permute.xlu0 %2355 }
 0x422   :  { %2013 = vrot.lane.b32.xlu1 %v7826_v5, %s6838_s4  ;;  %9726 = vst [vmem:[#allocation18_spill] sm:$0xff] %v7906_v29  ;;  %6251 = vpow2.f32 %v5262_v15 }
 0x423   :  { %2011 = vrot.lane.b32.xlu0 %v7829_v46, %s6838_s4 }
 0x425   :  { %v7915_v38 = vpop.permute.xlu0 %2357 }
 0x426   :  { %9727 = vst [vmem:[#allocation19_spill] sm:$0xff] %v7915_v38 }
 0x427   :  { %v5652_v22 = vpop.f32.mrb[82].mxu1 }
 0x428   :  { %v7840_v56 = vadd.f32 %v5652_v22, %v7733_v33  ;;  %v1686_v17 = vpop.f32.mrb[83].mxu1  ;;  %v1854_v22 = vadd.f32 1.0, %v6240_v23 }
 0x429   :  { %v7843_v27 = vadd.f32 %v7733_v33, %v1686_v17  ;;  %v5261_v17 = vmul.f32 -1.442695, %v7769_v0 }
 0x42a   :  { %2017 = vrot.lane.b32.xlu1 %v7840_v56, %s6838_s4  ;;  %6253 = vrcp.f32 %v1854_v22 }
 0x42b   :  { %2015 = vrot.lane.b32.xlu0 %v7843_v27, %s6838_s4  ;;  %6255 = vpow2.f32 %v5261_v17 }
 0x42f   :  { %v5655_v39 = vpop.f32.mrb[84].mxu1 }
 0x430   :  { %v7852_v47 = vadd.f32 %v5655_v39, %v7733_v33  ;;  %v1696_v62 = vpop.f32.mrb[85].mxu1 }
 0x431   :  { %v7855_v45 = vadd.f32 %v7733_v33, %v1696_v62  ;;  %v6242_v62 = vpop.eup %6241 }
 0x432   :  { %2021 = vrot.lane.b32.xlu1 %v7852_v47, %s6838_s4  ;;  %v6244_v58 = vpop.eup %6243 }
 0x433   :  { %2019 = vrot.lane.b32.xlu0 %v7855_v45, %s6838_s4  ;;  %v1856_v42 = vadd.f32 1.0, %v6244_v58  ;;  %v5266_v58 = vmul.f32 -1.442695, %v7788_v54 }
 0x437   :  { %v5658_v21 = vpop.f32.mrb[86].mxu1 }
 0x438   :  { %v7865_v30 = vadd.f32 %v5658_v21, %v7733_v33  ;;  %v1706_v8 = vpop.f32.mrb[87].mxu1 }
 0x439   :  { %v7869_v7 = vadd.f32 %v7733_v33, %v1706_v8 }
 0x43a   :  { %2025 = vrot.lane.b32.xlu1 %v7865_v30, %s6838_s4 }
 0x43b   :  { %2023 = vrot.lane.b32.xlu0 %v7869_v7, %s6838_s4 }
 0x43f   :  { %v5661_v13 = vpop.f32.mrb[88].mxu1 }
 0x440   :  { %v7881_v59 = vadd.f32 %v5661_v13, %v7733_v33  ;;  %v1716_v3 = vpop.f32.mrb[89].mxu1  ;;  %v7919_v13 = vpop.eup %6245 }
 0x441   :  { %v7884_v31 = vadd.f32 %v7733_v33, %v1716_v3  ;;  %v1853_v3 = vadd.f32 1.0, %v6242_v62  ;;  %v6248_v14 = vpop.eup %6247 }
 0x442   :  { %2029 = vrot.lane.b32.xlu1 %v7881_v59, %s6838_s4  ;;  %v7927_v23 = vpop.eup %6249 }
 0x443   :  { %2027 = vrot.lane.b32.xlu0 %v7884_v31, %s6838_s4  ;;  %6257 = vrcp.f32 %v1853_v3  ;;  %v6252_v15 = vpop.eup %6251 }
 0x444   :  { %6259 = vpow2.f32 %v5264_v6  ;;  %v7930_v17 = vpop.eup %6253 }
 0x445   :  { %6261 = vrcp.f32 %v1856_v42 }
 0x446   :  { %6263 = vpow2.f32 %v5263_v55 }
 0x447   :  { %v5664_v25 = vpop.f32.mrb[90].mxu1 }
 0x448   :  { %v7896_v57 = vadd.f32 %v5664_v25, %v7733_v33  ;;  %v1726_v36 = vpop.f32.mrb[91].mxu1 }
 0x449   :  { %v7899_v19 = vadd.f32 %v7733_v33, %v1726_v36  ;;  %v1855_v36 = vadd.f32 1.0, %v6248_v14  ;;  %v1858_v14 = vadd.f32 1.0, %v6252_v15 }
 0x44a   :  { %2033 = vrot.lane.b32.xlu1 %v7896_v57, %s6838_s4 }
 0x44b   :  { %2031 = vrot.lane.b32.xlu0 %v7899_v19, %s6838_s4  ;;  %6265 = vrcp.f32 %v1855_v36 }
 0x44c   :  { %6267 = vpow2.f32 %v5266_v58 }
 0x44d   :  { %6269 = vrcp.f32 %v1858_v14 }
 0x44f   :  { %v5667_v39 = vpop.f32.mrb[92].mxu1 }
 0x450   :  { %v7910_v41 = vadd.f32 %v5667_v39, %v7733_v33  ;;  %v1736_v21 = vpop.f32.mrb[93].mxu1 }
 0x451   :  { %v7913_v8 = vadd.f32 %v7733_v33, %v1736_v21  ;;  %v6256_v21 = vpop.eup %6255 }
 0x452   :  { %2037 = vrot.lane.b32.xlu1 %v7910_v41, %s6838_s4  ;;  %v1857_v42 = vadd.f32 1.0, %v6256_v21 }
 0x453   :  { %2035 = vrot.lane.b32.xlu0 %v7913_v8, %s6838_s4 }
 0x454   :  { %v1982_v61 = vpop.permute.xlu1 %1981 }
 0x455   :  { %v2076_v16 = vmul.f32 %v7919_v13, %v1982_v61  ;;  %v1980_v25 = vpop.permute.xlu0 %1979  ;;  %v5265_v61 = vmul.f32 -1.442695, %v7791_v18 }
 0x456   :  { %v2075_v52 = vmul.f32 %v7927_v23, %v1980_v25  ;;  %v7945_v25 = vpop.eup %6257 }
 0x457   :  { %2141 = vrot.lane.b32.xlu1 %v2076_v16, %s6837_s24  ;;  %v6260_v36 = vpop.eup %6259  ;;  %6271 = vpow2.f32 %v5265_v61 }
 0x458   :  { %6273 = vrcp.f32 %v1857_v42  ;;  %v1860_v58 = vadd.f32 1.0, %v6260_v36 }
 0x45a   :  { %v5670_v22 = vpop.f32.mrb[94].mxu1 }
 0x45b   :  { %v7933_v39 = vadd.f32 %v5670_v22, %v7733_v33  ;;  %v1746_v62 = vpop.f32.mrb[95].mxu1  ;;  %2139 = vrot.lane.b32.xlu1 %v2075_v52, %s6837_s24  ;;  %v7949_v52 = vpop.eup %6261 }
 0x45c   :  { %v1986_v3 = vpop.permute.xlu1 %1985  ;;  %v7942_v16 = vadd.f32 %v7733_v33, %v1746_v62  ;;  %v6264_v22 = vpop.eup %6263  ;;  %v5268_v33 = vmul.f32 -1.442695, %v7802_v11 }
 0x45d   :  { %v2078_v6 = vmul.f32 %v7930_v17, %v1986_v3  ;;  %2041 = vrot.lane.b32.xlu0 %v7933_v39, %s6838_s4  ;;  %v1984_v55 = vpop.permute.xlu0 %1983  ;;  %v7953_v21 = vpop.eup %6265  ;;  %v1859_v29 = vadd.f32 1.0, %v6264_v22 }
 0x45e   :  { %v2077_v15 = vmul.f32 %v7945_v25, %v1984_v55  ;;  %6275 = vpow2.f32 %v5268_v33  ;;  %v6268_v42 = vpop.eup %6267  ;;  %v5269_v33 = vmul.f32 -1.442695, %v7817_v34 }
 0x45f   :  { %2145 = vrot.lane.b32.xlu1 %v2078_v6, %s6837_s24  ;;  %v5267_v6 = vmul.f32 -1.442695, %v7805_v63  ;;  %6277 = vrcp.f32 %v1860_v58  ;;  %v7961_v55 = vpop.eup %6269  ;;  %v1862_v2 = vadd.f32 1.0, %v6268_v42  ;;  %v5272_v42 = vmul.f32 -1.442695, %v7826_v5 }
 0x461   :  { %2039 = vrot.lane.b32.xlu0 %v7942_v16, %s6838_s4  ;;  %6279 = vpow2.f32 %v5267_v6  ;;  %v6272_v36 = vpop.eup %6271 }
 0x462   :  { %6281 = vrcp.f32 %v1859_v29  ;;  %v7964_v38 = vpop.eup %6273 }
 0x464   :  { %v1990_v62 = vpop.permute.xlu1 %1989 }
 0x465   :  { %v2080_v3 = vmul.f32 %v7949_v52, %v1990_v62  ;;  %2143 = vrot.lane.b32.xlu0 %v2077_v15, %s6837_s24  ;;  %v1988_v14 = vpop.permute.xlu0 %1987  ;;  %v5270_v15 = vmul.f32 -1.442695, %v7814_v10 }
 0x466   :  { %v2079_v61 = vmul.f32 %v7953_v21, %v1988_v14 }
 0x467   :  { %2149 = vrot.lane.b32.xlu1 %v2080_v3, %s6837_s24  ;;  %v1861_v3 = vadd.f32 1.0, %v6272_v36  ;;  %6283 = vpow2.f32 %v5270_v15  ;;  %v5271_v15 = vmul.f32 -1.442695, %v7829_v46 }
 0x468   :  { %6285 = vrcp.f32 %v1862_v2  ;;  %v6276_v29 = vpop.eup %6275 }
 0x469   :  { %2147 = vrot.lane.b32.xlu0 %v2079_v61, %s6837_s24  ;;  %6287 = vpow2.f32 %v5269_v33  ;;  %v7971_v6 = vpop.eup %6277  ;;  %v1864_v28 = vadd.f32 1.0, %v6276_v29  ;;  %v5274_v29 = vmul.f32 -1.442695, %v7840_v56 }
 0x46a   :  { %9728 = vst [vmem:[#allocation20_spill] sm:$0xff] %v7971_v6  ;;  %6289 = vrcp.f32 %v1861_v3 }
 0x46b   :  { %v6280_v61 = vpop.eup %6279  ;;  %6291 = vpow2.f32 %v5272_v42  ;;  %v5273_v42 = vmul.f32 -1.442695, %v7843_v27 }
 0x46c   :  { %v1994_v62 = vpop.permute.xlu1 %1993  ;;  %v7974_v48 = vpop.eup %6281  ;;  %v1863_v2 = vadd.f32 1.0, %v6280_v61  ;;  %6293 = vrcp.f32 %v1864_v28 }
 0x46d   :  { %v2082_v22 = vmul.f32 %v7961_v55, %v1994_v62  ;;  %v1992_v14 = vpop.permute.xlu0 %1991  ;;  %9729 = vst [vmem:[#allocation21_spill] sm:$0xff] %v7974_v48  ;;  %6295 = vpow2.f32 %v5271_v15 }
 0x46e   :  { %v2081_v58 = vmul.f32 %v7964_v38, %v1992_v14  ;;  %6297 = vrcp.f32 %v1863_v2 }
 0x46f   :  { %2153 = vrot.lane.b32.xlu1 %v2082_v22, %s6837_s24  ;;  %6299 = vpow2.f32 %v5274_v29  ;;  %v5275_v29 = vmul.f32 -1.442695, %v7855_v45 }
 0x470   :  { %2151 = vrot.lane.b32.xlu0 %v2081_v58, %s6837_s24 }
 0x471   :  { %v6284_v33 = vpop.eup %6283 }
 0x472   :  { %v7981_v58 = vpop.eup %6285 }
 0x473   :  { %9730 = vst [vmem:[#allocation22_spill] sm:$0xff] %v7981_v58  ;;  %v6288_v3 = vpop.eup %6287 }
 0x474   :  { %v1998_v62 = vpop.permute.xlu1 %1997  ;;  %v7984_v26 = vpop.eup %6289  ;;  %v1865_v28 = vadd.f32 1.0, %v6288_v3 }
 0x475   :  { %v2084_v36 = vmul.f32 %v7971_v6, %v1998_v62  ;;  %v1996_v14 = vpop.permute.xlu0 %1995  ;;  %9731 = vst [vmem:[#allocation23_spill] sm:$0xff] %v7984_v26  ;;  %v1866_v6 = vadd.f32 1.0, %v6284_v33  ;;  %v6292_v15 = vpop.eup %6291  ;;  %v5276_v33 = vmul.f32 -1.442695, %v7852_v47 }
 0x476   :  { %v2083_v22 = vmul.f32 %v7974_v48, %v1996_v14  ;;  %v1868_v48 = vadd.f32 1.0, %v6292_v15 }
 0x477   :  { %2157 = vrot.lane.b32.xlu1 %v2084_v36, %s6837_s24  ;;  %6301 = vrcp.f32 %v1866_v6 }
 0x478   :  { %2155 = vrot.lane.b32.xlu0 %v2083_v22, %s6837_s24  ;;  %6303 = vpow2.f32 %v5273_v42  ;;  %v7991_v22 = vpop.eup %6293 }
 0x479   :  { %9732 = vst [vmem:[#allocation24_spill] sm:$0xff] %v7991_v22  ;;  %6305 = vrcp.f32 %v1865_v28  ;;  %v6296_v2 = vpop.eup %6295  ;;  %v5278_v28 = vmul.f32 -1.442695, %v7865_v30 }
 0x47a   :  { %v1867_v6 = vadd.f32 1.0, %v6296_v2  ;;  %6307 = vpow2.f32 %v5276_v33  ;;  %v5277_v33 = vmul.f32 -1.442695, %v7869_v7 }
 0x47b   :  { %6309 = vrcp.f32 %v1868_v48 }
 0x47c   :  { %v2002_v62 = vpop.permute.xlu1 %2001  ;;  %6311 = vpow2.f32 %v5275_v29 }
 0x47d   :  { %v2086_v61 = vmul.f32 %v7981_v58, %v2002_v62  ;;  %v2000_v14 = vpop.permute.xlu0 %1999  ;;  %v7994_v58 = vpop.eup %6297  ;;  %6313 = vrcp.f32 %v1867_v6  ;;  %v5280_v6 = vmul.f32 -1.442695, %v7881_v59 }
 0x47e   :  { %v2085_v36 = vmul.f32 %v7984_v26, %v2000_v14  ;;  %9733 = vst [vmem:[#allocation25_spill] sm:$0xff] %v7994_v58  ;;  %v6300_v42 = vpop.eup %6299  ;;  %6315 = vpow2.f32 %v5278_v28 }
 0x47f   :  { %2161 = vrot.lane.b32.xlu1 %v2086_v61, %s6837_s24  ;;  %v1870_v26 = vadd.f32 1.0, %v6300_v42 }
 0x480   :  { %2159 = vrot.lane.b32.xlu0 %v2085_v36, %s6837_s24 }
 0x481   :  { %v8001_v36 = vpop.eup %6301  ;;  %6317 = vrcp.f32 %v1870_v26 }
 0x482   :  { %9734 = vst [vmem:[#allocation26_spill] sm:$0xff] %v8001_v36  ;;  %v6304_v15 = vpop.eup %6303  ;;  %6319 = vpow2.f32 %v5277_v33 }
 0x483   :  { %v1869_v48 = vadd.f32 1.0, %v6304_v15 }
 0x484   :  { %v2006_v62 = vpop.permute.xlu1 %2005 }
 0x485   :  { %v2088_v3 = vmul.f32 %v7991_v22, %v2006_v62  ;;  %v2004_v14 = vpop.permute.xlu0 %2003  ;;  %v8004_v22 = vpop.eup %6305  ;;  %6321 = vrcp.f32 %v1869_v48 }
 0x486   :  { %v2087_v61 = vmul.f32 %v7994_v58, %v2004_v14  ;;  %9735 = vst [vmem:[#allocation27_spill] sm:$0xff] %v8004_v22  ;;  %v6308_v29 = vpop.eup %6307  ;;  %6323 = vpow2.f32 %v5280_v6 }
 0x487   :  { %2165 = vrot.lane.b32.xlu1 %v2088_v3, %s6837_s24  ;;  %v1872_v58 = vadd.f32 1.0, %v6308_v29 }
 0x488   :  { %2163 = vrot.lane.b32.xlu0 %v2087_v61, %s6837_s24  ;;  %v8011_v61 = vpop.eup %6309 }
 0x489   :  { %9736 = vst [vmem:[#allocation28_spill] sm:$0xff] %v8011_v61  ;;  %v6312_v42 = vpop.eup %6311  ;;  %6325 = vrcp.f32 %v1872_v58 }
 0x48a   :  { %v1871_v26 = vadd.f32 1.0, %v6312_v42 }
 0x48c   :  { %v2010_v62 = vpop.permute.xlu1 %2009 }
 0x48d   :  { %v2090_v2 = vmul.f32 %v8001_v36, %v2010_v62  ;;  %v2008_v14 = vpop.permute.xlu0 %2007  ;;  %v8014_v36 = vpop.eup %6313 }
 0x48e   :  { %v2089_v3 = vmul.f32 %v8004_v22, %v2008_v14  ;;  %9737 = vst [vmem:[#allocation29_spill] sm:$0xff] %v8014_v36  ;;  %v6316_v33 = vpop.eup %6315  ;;  %v5282_v22 = vmul.f32 -1.442695, %v7896_v57 }
 0x48f   :  { %2169 = vrot.lane.b32.xlu1 %v2090_v2, %s6837_s24  ;;  %v5279_v2 = vmul.f32 -1.442695, %v7884_v31  ;;  %v1874_v29 = vadd.f32 1.0, %v6316_v33 }
 0x490   :  { %2167 = vrot.lane.b32.xlu0 %v2089_v3, %s6837_s24  ;;  %v8021_v3 = vpop.eup %6317 }
 0x491   :  { %6327 = vpow2.f32 %v5279_v2  ;;  %9738 = vst [vmem:[#allocation30_spill] sm:$0xff] %v8021_v3  ;;  %v6320_v48 = vpop.eup %6319 }
 0x492   :  { %6329 = vrcp.f32 %v1871_v26 }
 0x493   :  { %6331 = vrcp.f32 %v1874_v29  ;;  %v5283_v29 = vmul.f32 -1.442695, %v7913_v8 }
 0x494   :  { %v2014_v62 = vpop.permute.xlu1 %2013  ;;  %6333 = vpow2.f32 %v5282_v22 }
 0x495   :  { %v2092_v15 = vmul.f32 %v8011_v61, %v2014_v62  ;;  %v2012_v28 = vpop.permute.xlu0 %2011  ;;  %v8023_v61 = vpop.eup %6321 }
 0x496   :  { %v2091_v14 = vmul.f32 %v8014_v36, %v2012_v28  ;;  %9739 = vst [vmem:[#allocation31_spill] sm:$0xff] %v8023_v61  ;;  %v6324_v58 = vpop.eup %6323  ;;  %v5284_v36 = vmul.f32 -1.442695, %v7910_v41 }
 0x497   :  { %2173 = vrot.lane.b32.xlu1 %v2092_v15, %s6837_s24  ;;  %v5281_v15 = vmul.f32 -1.442695, %v7899_v19  ;;  %v8031_v2 = vpop.eup %6325  ;;  %v1876_v33 = vadd.f32 1.0, %v6324_v58 }
 0x498   :  { %2171 = vrot.lane.b32.xlu0 %v2091_v14, %s6837_s24  ;;  %v1873_v14 = vadd.f32 1.0, %v6320_v48  ;;  %9740 = vst [vmem:[#allocation32_spill] sm:$0xff] %v8031_v2 }
 0x499   :  { %6335 = vpow2.f32 %v5281_v15 }
 0x49a   :  { %6337 = vrcp.f32 %v1873_v14 }
 0x49b   :  { %v6328_v26 = vpop.eup %6327  ;;  %6339 = vrcp.f32 %v1876_v33 }
 0x49c   :  { %v2018_v62 = vpop.permute.xlu1 %2017  ;;  %6341 = vpow2.f32 %v5284_v36  ;;  %v5286_v36 = vmul.f32 -1.442695, %v7933_v39 }
 0x49d   :  { %v2094_v42 = vmul.f32 %v8021_v3, %v2018_v62  ;;  %v2016_v6 = vpop.permute.xlu0 %2015  ;;  %v8033_v3 = vpop.eup %6329  ;;  %6343 = vpow2.f32 %v5283_v29 }
 0x49e   :  { %v2093_v28 = vmul.f32 %v8023_v61, %v2016_v6  ;;  %v8041_v22 = vpop.eup %6331 }
 0x49f   :  { %2177 = vrot.lane.b32.xlu1 %v2094_v42, %s6837_s24  ;;  %9741 = vst [vmem:[#allocation33_spill] sm:$0xff] %v8041_v22  ;;  %v6334_v15 = vpop.eup %6333 }
 0x4a0   :  { %2175 = vrot.lane.b32.xlu0 %v2093_v28, %s6837_s24  ;;  %v1875_v28 = vadd.f32 1.0, %v6328_v26 }
 0x4a2   :  { %6345 = vrcp.f32 %v1875_v28  ;;  %v5285_v28 = vmul.f32 -1.442695, %v7942_v16 }
 0x4a3   :  { %v6336_v14 = vpop.eup %6335 }
 0x4a4   :  { %v2022_v62 = vpop.permute.xlu1 %2021 }
 0x4a5   :  { %v2096_v48 = vmul.f32 %v8031_v2, %v2022_v62  ;;  %v2020_v6 = vpop.permute.xlu0 %2019  ;;  %v8043_v62 = vpop.eup %6337 }
 0x4a6   :  { %v2095_v42 = vmul.f32 %v8033_v3, %v2020_v6  ;;  %9742 = vst [vmem:[#allocation34_spill] sm:$0xff] %v8043_v62  ;;  %v1878_v6 = vadd.f32 1.0, %v6334_v15  ;;  %v8050_v33 = vpop.eup %6339 }
 0x4a7   :  { %2181 = vrot.lane.b32.xlu1 %v2096_v48, %s6837_s24  ;;  %v1877_v48 = vadd.f32 1.0, %v6336_v14  ;;  %9743 = vst [vmem:[#allocation35_spill] sm:$0xff] %v8050_v33  ;;  %v6342_v29 = vpop.eup %6341 }
 0x4a8   :  { %2179 = vrot.lane.b32.xlu0 %v2095_v42, %s6837_s24  ;;  %6347 = vrcp.f32 %v1878_v6  ;;  %v6344_v42 = vpop.eup %6343 }
 0x4a9   :  { %6349 = vrcp.f32 %v1877_v48 }
 0x4aa   :  { %6351 = vpow2.f32 %v5286_v36 }
 0x4ab   :  { %6353 = vpow2.f32 %v5285_v28 }
 0x4ac   :  { %v2026_v58 = vpop.permute.xlu1 %2025  ;;  %v8053_v15 = vpop.eup %6345 }
 0x4ad   :  { %v2098_v2 = vmul.f32 %v8041_v22, %v2026_v58  ;;  %v2024_v61 = vpop.permute.xlu0 %2023  ;;  %v1879_v22 = vadd.f32 1.0, %v6344_v42 }
 0x4ae   :  { %v2097_v26 = vmul.f32 %v8043_v62, %v2024_v61 }
 0x4af   :  { %2185 = vrot.lane.b32.xlu1 %v2098_v2, %s6837_s24  ;;  %v1880_v2 = vadd.f32 1.0, %v6342_v29 }
 0x4b0   :  { %2183 = vrot.lane.b32.xlu0 %v2097_v26, %s6837_s24 }
 0x4b1   :  { %6355 = vrcp.f32 %v1880_v2 }
 0x4b2   :  { %6357 = vrcp.f32 %v1879_v22  ;;  %v8059_v6 = vpop.eup %6347 }
 0x4b3   :  { %9744 = vst [vmem:[#allocation36_spill] sm:$0xff] %v8059_v6  ;;  %v8061_v48 = vpop.eup %6349 }
 0x4b4   :  { %v2030_v58 = vpop.permute.xlu1 %2029  ;;  %9745 = vst [vmem:[#allocation37_spill] sm:$0xff] %v8061_v48 }
 0x4b5   :  { %v2100_v61 = vmul.f32 %v8050_v33, %v2030_v58  ;;  %v2028_v14 = vpop.permute.xlu0 %2027  ;;  %v6352_v33 = vpop.eup %6351 }
 0x4b6   :  { %v2099_v62 = vmul.f32 %v8053_v15, %v2028_v14  ;;  %v1882_v42 = vadd.f32 1.0, %v6352_v33  ;;  %v6354_v28 = vpop.eup %6353 }
 0x4b7   :  { %2189 = vrot.lane.b32.xlu1 %v2100_v61, %s6837_s24  ;;  %v1881_v14 = vadd.f32 1.0, %v6354_v28 }
 0x4b8   :  { %2187 = vrot.lane.b32.xlu0 %v2099_v62, %s6837_s24  ;;  %6359 = vrcp.f32 %v1882_v42 }
 0x4b9   :  { %6361 = vrcp.f32 %v1881_v14 }
 0x4bb   :  { %v8067_v62 = vpop.eup %6355 }
 0x4bc   :  { %v2034_v26 = vpop.permute.xlu1 %2033  ;;  %v8069_v61 = vpop.eup %6357 }
 0x4bd   :  { %v2102_v36 = vmul.f32 %v8059_v6, %v2034_v26  ;;  %v2032_v58 = vpop.permute.xlu0 %2031 }
 0x4be   :  { %v2101_v29 = vmul.f32 %v8061_v48, %v2032_v58 }
 0x4bf   :  { %2193 = vrot.lane.b32.xlu1 %v2102_v36, %s6837_s24 }
 0x4c0   :  { %2191 = vrot.lane.b32.xlu0 %v2101_v29, %s6837_s24 }
 0x4c2   :  { %v8077_v48 = vpop.eup %6359 }
 0x4c4   :  { %v2038_v22 = vpop.permute.xlu1 %2037 }
 0x4c5   :  { %v2104_v2 = vmul.f32 %v8067_v62, %v2038_v22  ;;  %v2036_v26 = vpop.permute.xlu0 %2035 }
 0x4c6   :  { %v2103_v6 = vmul.f32 %v8069_v61, %v2036_v26 }
 0x4c7   :  { %2197 = vrot.lane.b32.xlu1 %v2104_v2, %s6837_s24 }
 0x4c8   :  { %2195 = vrot.lane.b32.xlu0 %v2103_v6, %s6837_s24  ;;  %v8082_v6 = vpop.eup %6361 }
 0x4c9   :  { %v2142_v36 = vpop.permute.xlu1 %2141 }
 0x4ca   :  { %v2236_v33 = vadd.f32 %v2142_v36, %v7736_v60 }
 0x4cc   :  { %6363 = vtanh.f32 %v2236_v33 }
 0x4cd   :  { %v2140_v58 = vpop.permute.xlu1 %2139 }
 0x4ce   :  { %v2235_v29 = vadd.f32 %v2140_v58, %v7739_v9 }
 0x4cf   :  { %v2042_v42 = vpop.permute.xlu0 %2041 }
 0x4d0   :  { %6365 = vtanh.f32 %v2235_v29  ;;  %v2106_v28 = vmul.f32 %v8077_v48, %v2042_v42  ;;  %v6636_v29 = vld [vmem:[%s9589_s2 + $0x70] sm:$0xff] }
 0x4d1   :  { %v2146_v22 = vpop.permute.xlu1 %2145 }
 0x4d2   :  { %v2238_v26 = vadd.f32 %v2146_v22, %v7746_v53  ;;  %2201 = vrot.lane.b32.xlu1 %v2106_v28, %s6837_s24 }
 0x4d3   :  { %v2040_v14 = vpop.permute.xlu0 %2039 }
 0x4d4   :  { %6367 = vtanh.f32 %v2238_v26  ;;  %v2105_v60 = vmul.f32 %v8082_v6, %v2040_v14  ;;  %v6638_v14 = vld [vmem:[%s9589_s2 + $0x80] sm:$0xff] }
 0x4d6   :  { %v6364_v2 = vpop.eup %6363  ;;  %2199 = vrot.lane.b32.xlu0 %v2105_v60, %s6837_s24 }
 0x4d7   :  { %v2144_v9 = vpop.permute.xlu0 %2143  ;;  %2493 = vrot.lane.b32.xlu1 %v6364_v2, %s6836_s23 }
 0x4d8   :  { %v2237_v36 = vadd.f32 %v2144_v9, %v7749_v37  ;;  %v6637_v37 = vld [vmem:[%s9589_s2 + $0x78] sm:$0xff]  ;;  %v6639_v9 = vld [vmem:[%s9589_s2 + $0x88] sm:$0xff] }
 0x4d9   :  { %v2150_v33 = vpop.permute.xlu1 %2149 }
 0x4da   :  { %v6366_v58 = vpop.eup %6365  ;;  %6369 = vtanh.f32 %v2237_v36  ;;  %v2240_v53 = vadd.f32 %v2150_v33, %v7756_v35  ;;  %2359 = vrot.lane.b32.xlu0 %v6636_v29, %s6838_s4 }
 0x4db   :  { %v2148_v42 = vpop.permute.xlu0 %2147  ;;  %2491 = vrot.lane.b32.xlu1 %v6366_v58, %s6836_s23  ;;  %v6640_v58 = vld [vmem:[%s9589_s2 + $0x90] sm:$0xff] }
 0x4dc   :  { %6371 = vtanh.f32 %v2240_v53  ;;  %v2239_v22 = vadd.f32 %v2148_v42, %v7759_v43  ;;  %v6641_v42 = vld [vmem:[%s9589_s2 + $0x98] sm:$0xff] }
 0x4de   :  { %v6368_v28 = vpop.eup %6367  ;;  %2361 = vrot.lane.b32.xlu0 %v6637_v37, %s6838_s4  ;;  %6373 = vtanh.f32 %v2239_v22  ;;  %v6642_v37 = vld [vmem:[%s9589_s2 + $0xa0] sm:$0xff] }
 0x4df   :  { %2497 = vrot.lane.b32.xlu1 %v6368_v28, %s6836_s23 }
 0x4e1   :  { %v2154_v35 = vpop.permute.xlu1 %2153 }
 0x4e2   :  { %v2242_v26 = vadd.f32 %v2154_v35, %v7766_v1  ;;  %2363 = vrot.lane.b32.xlu0 %v6638_v14, %s6838_s4  ;;  %v2152_v60 = vpop.permute.xlu0 %2151  ;;  %v6643_v14 = vld [vmem:[%s9589_s2 + $0xa8] sm:$0xff] }
 0x4e3   :  { %v2241_v2 = vadd.f32 %v2152_v60, %v7769_v0 }
 0x4e4   :  { %v6370_v43 = vpop.eup %6369  ;;  %6375 = vtanh.f32 %v2242_v26 }
 0x4e5   :  { %2495 = vrot.lane.b32.xlu1 %v6370_v43, %s6836_s23  ;;  %6377 = vtanh.f32 %v2241_v2  ;;  %v6644_v2 = vld [vmem:[%s9589_s2 + $0xb0] sm:$0xff] }
 0x4e6   :  { %2365 = vrot.lane.b32.xlu0 %v6639_v9, %s6838_s4  ;;  %v6372_v1 = vpop.eup %6371 }
 0x4e8   :  { %v6374_v53 = vpop.eup %6373 }
 0x4e9   :  { %2501 = vrot.lane.b32.xlu1 %v6372_v1, %s6836_s23  ;;  %v2158_v36 = vpop.permute.xlu1 %2157 }
 0x4ea   :  { %v2244_v33 = vadd.f32 %v2158_v36, %v7776_v49  ;;  %2367 = vrot.lane.b32.xlu0 %v6640_v58, %s6838_s4  ;;  %v2156_v0 = vpop.permute.xlu0 %2155  ;;  %v6645_v36 = vld [vmem:[%s9589_s2 + $0xb8] sm:$0xff] }
 0x4eb   :  { %v2243_v29 = vadd.f32 %v2156_v0, %v7779_v51  ;;  %v6646_v0 = vld [vmem:[%s9589_s2 + $0xc0] sm:$0xff] }
 0x4ec   :  { %6379 = vtanh.f32 %v2244_v33 }
 0x4ed   :  { %2499 = vrot.lane.b32.xlu1 %v6374_v53, %s6836_s23  ;;  %6381 = vtanh.f32 %v2243_v29 }
 0x4ee   :  { %2369 = vrot.lane.b32.xlu0 %v6641_v42, %s6838_s4  ;;  %v6376_v49 = vpop.eup %6375  ;;  %v6647_v42 = vld [vmem:[%s9589_s2 + $0xc8] sm:$0xff] }
 0x4ef   :  { %v6378_v35 = vpop.eup %6377 }
 0x4f1   :  { %2505 = vrot.lane.b32.xlu1 %v6376_v49, %s6836_s23  ;;  %v2162_v28 = vpop.permute.xlu1 %2161 }
 0x4f2   :  { %v2246_v22 = vadd.f32 %v2162_v28, %v7788_v54  ;;  %2371 = vrot.lane.b32.xlu0 %v6642_v37, %s6838_s4  ;;  %v2160_v51 = vpop.permute.xlu0 %2159 }
 0x4f3   :  { %v2245_v26 = vadd.f32 %v2160_v51, %v7791_v18 }
 0x4f4   :  { %6383 = vtanh.f32 %v2246_v22  ;;  %v6648_v22 = vld [vmem:[%s9589_s2 + $0xd0] sm:$0xff] }
 0x4f5   :  { %2503 = vrot.lane.b32.xlu1 %v6378_v35, %s6836_s23  ;;  %6385 = vtanh.f32 %v2245_v26  ;;  %v6649_v35 = vld [vmem:[%s9589_s2 + $0xd8] sm:$0xff] }
 0x4f6   :  { %2373 = vrot.lane.b32.xlu0 %v6643_v14, %s6838_s4  ;;  %v6380_v54 = vpop.eup %6379 }
 0x4f7   :  { %v6382_v9 = vpop.eup %6381 }
 0x4f9   :  { %2509 = vrot.lane.b32.xlu1 %v6380_v54, %s6836_s23  ;;  %v2166_v60 = vpop.permute.xlu1 %2165  ;;  %v6650_v54 = vld [vmem:[%s9589_s2 + $0xe0] sm:$0xff] }
 0x4fa   :  { %v2248_v43 = vadd.f32 %v2166_v60, %v7802_v11  ;;  %2375 = vrot.lane.b32.xlu0 %v6644_v2, %s6838_s4  ;;  %v2164_v18 = vpop.permute.xlu0 %2163  ;;  %v6651_v2 = vld [vmem:[%s9589_s2 + $0xe8] sm:$0xff] }
 0x4fb   :  { %v2247_v1 = vadd.f32 %v2164_v18, %v7805_v63 }
 0x4fc   :  { %6387 = vtanh.f32 %v2248_v43 }
 0x4fd   :  { %2507 = vrot.lane.b32.xlu1 %v6382_v9, %s6836_s23  ;;  %6389 = vtanh.f32 %v2247_v1  ;;  %v6652_v1 = vld [vmem:[%s9589_s2 + $0xf0] sm:$0xff] }
 0x4fe   :  { %2377 = vrot.lane.b32.xlu0 %v6645_v36, %s6838_s4  ;;  %v6384_v11 = vpop.eup %6383 }
 0x4ff   :  { %v6386_v53 = vpop.eup %6385 }
 0x501   :  { %2513 = vrot.lane.b32.xlu1 %v6384_v11, %s6836_s23  ;;  %v2170_v33 = vpop.permute.xlu1 %2169 }
 0x502   :  { %v2250_v58 = vadd.f32 %v2170_v33, %v7814_v10  ;;  %2379 = vrot.lane.b32.xlu0 %v6646_v0, %s6838_s4  ;;  %v2168_v63 = vpop.permute.xlu0 %2167  ;;  %v6653_v33 = vld [vmem:[%s9589_s2 + $0xf8] sm:$0xff] }
 0x503   :  { %v2249_v29 = vadd.f32 %v2168_v63, %v7817_v34 }
 0x504   :  { %6391 = vtanh.f32 %v2250_v58 }
 0x505   :  { %2511 = vrot.lane.b32.xlu1 %v6386_v53, %s6836_s23  ;;  %6393 = vtanh.f32 %v2249_v29 }
 0x506   :  { %2381 = vrot.lane.b32.xlu0 %v6647_v42, %s6838_s4  ;;  %v6388_v10 = vpop.eup %6387 }
 0x507   :  { %v6390_v37 = vpop.eup %6389 }
 0x509   :  { %2517 = vrot.lane.b32.xlu1 %v6388_v10, %s6836_s23  ;;  %v2174_v49 = vpop.permute.xlu1 %2173 }
 0x50a   :  { %v2252_v28 = vadd.f32 %v2174_v49, %v7826_v5  ;;  %2383 = vrot.lane.b32.xlu0 %v6648_v22, %s6838_s4  ;;  %v2172_v34 = vpop.permute.xlu0 %2171 }
 0x50b   :  { %v2251_v51 = vadd.f32 %v2172_v34, %v7829_v46 }
 0x50c   :  { %6395 = vtanh.f32 %v2252_v28 }
 0x50d   :  { %2515 = vrot.lane.b32.xlu1 %v6390_v37, %s6836_s23  ;;  %6397 = vtanh.f32 %v2251_v51 }
 0x50e   :  { %2385 = vrot.lane.b32.xlu0 %v6649_v35, %s6838_s4  ;;  %v6392_v5 = vpop.eup %6391 }
 0x50f   :  { %v6394_v60 = vpop.eup %6393 }
 0x511   :  { %2521 = vrot.lane.b32.xlu1 %v6392_v5, %s6836_s23  ;;  %v2178_v26 = vpop.permute.xlu1 %2177 }
 0x512   :  { %v2254_v14 = vadd.f32 %v2178_v26, %v7840_v56  ;;  %2387 = vrot.lane.b32.xlu0 %v6650_v54, %s6838_s4  ;;  %v2176_v46 = vpop.permute.xlu0 %2175 }
 0x513   :  { %v2253_v43 = vadd.f32 %v2176_v46, %v7843_v27 }
 0x514   :  { %6399 = vtanh.f32 %v2254_v14 }
 0x515   :  { %2519 = vrot.lane.b32.xlu1 %v6394_v60, %s6836_s23  ;;  %6401 = vtanh.f32 %v2253_v43 }
 0x516   :  { %2389 = vrot.lane.b32.xlu0 %v6651_v2, %s6838_s4  ;;  %v6396_v56 = vpop.eup %6395 }
 0x517   :  { %v6398_v36 = vpop.eup %6397 }
 0x519   :  { %2525 = vrot.lane.b32.xlu1 %v6396_v56, %s6836_s23  ;;  %v2182_v18 = vpop.permute.xlu1 %2181 }
 0x51a   :  { %v2256_v9 = vadd.f32 %v2182_v18, %v7852_v47  ;;  %2391 = vrot.lane.b32.xlu0 %v6652_v1, %s6838_s4  ;;  %v2180_v27 = vpop.permute.xlu0 %2179 }
 0x51b   :  { %v2255_v11 = vadd.f32 %v2180_v27, %v7855_v45 }
 0x51c   :  { %6403 = vtanh.f32 %v2256_v9 }
 0x51d   :  { %2523 = vrot.lane.b32.xlu1 %v6398_v36, %s6836_s23  ;;  %6405 = vtanh.f32 %v2255_v11  ;;  %v2300_v11 = vsub.f32 1.0, %v7919_v13 }
 0x51e   :  { %2393 = vrot.lane.b32.xlu0 %v6653_v33, %s6838_s4  ;;  %v6400_v47 = vpop.eup %6399  ;;  %v2301_v33 = vsub.f32 1.0, %v7945_v25 }
 0x51f   :  { %v6402_v53 = vpop.eup %6401 }
 0x521   :  { %2529 = vrot.lane.b32.xlu1 %v6400_v47, %s6836_s23  ;;  %v2186_v58 = vpop.permute.xlu1 %2185 }
 0x522   :  { %v2258_v0 = vadd.f32 %v2186_v58, %v7865_v30  ;;  %v2184_v63 = vpop.permute.xlu0 %2183 }
 0x523   :  { %v2257_v45 = vadd.f32 %v2184_v63, %v7869_v7  ;;  %v2429_v63 = vmul.f32 %v7799_v12, %v2301_v33  ;;  %v2303_v12 = vsub.f32 1.0, %v7953_v21  ;;  %v9757_v33 = vld [vmem:[#allocation16_spill] sm:$0xff] }
 0x524   :  { %6407 = vtanh.f32 %v2258_v0 }
 0x525   :  { %2527 = vrot.lane.b32.xlu1 %v6402_v53, %s6836_s23  ;;  %6409 = vtanh.f32 %v2257_v45 }
 0x526   :  { %v6404_v29 = vpop.eup %6403 }
 0x527   :  { %v6406_v28 = vpop.eup %6405 }
 0x529   :  { %2533 = vrot.lane.b32.xlu1 %v6404_v29, %s6836_s23  ;;  %v2190_v42 = vpop.permute.xlu1 %2189 }
 0x52a   :  { %v2260_v10 = vadd.f32 %v2190_v42, %v7881_v59  ;;  %v2188_v49 = vpop.permute.xlu0 %2187 }
 0x52b   :  { %v2259_v30 = vadd.f32 %v2188_v49, %v7884_v31 }
 0x52c   :  { %6411 = vtanh.f32 %v2260_v10 }
 0x52d   :  { %2531 = vrot.lane.b32.xlu1 %v6406_v28, %s6836_s23  ;;  %6413 = vtanh.f32 %v2259_v30  ;;  %v2431_v30 = vmul.f32 %v7823_v20, %v2303_v12 }
 0x52e   :  { %v6408_v22 = vpop.eup %6407 }
 0x52f   :  { %v6410_v51 = vpop.eup %6409 }
 0x531   :  { %2537 = vrot.lane.b32.xlu1 %v6408_v22, %s6836_s23  ;;  %v2194_v34 = vpop.permute.xlu1 %2193  ;;  %v2306_v22 = vsub.f32 1.0, %v7961_v55 }
 0x532   :  { %v2262_v7 = vadd.f32 %v2194_v34, %v7896_v57  ;;  %v2192_v37 = vpop.permute.xlu0 %2191 }
 0x533   :  { %v2261_v59 = vadd.f32 %v2192_v37, %v7899_v19 }
 0x534   :  { %6415 = vtanh.f32 %v2262_v7 }
 0x535   :  { %2535 = vrot.lane.b32.xlu1 %v6410_v51, %s6836_s23  ;;  %6417 = vtanh.f32 %v2261_v59  ;;  %v2434_v59 = vmul.f32 %v7849_v4, %v2306_v22 }
 0x536   :  { %v6412_v35 = vpop.eup %6411 }
 0x537   :  { %v6414_v14 = vpop.eup %6413 }
 0x539   :  { %2541 = vrot.lane.b32.xlu1 %v6412_v35, %s6836_s23  ;;  %v2198_v5 = vpop.permute.xlu1 %2197 }
 0x53a   :  { %v2264_v31 = vadd.f32 %v2198_v5, %v7910_v41  ;;  %v2196_v26 = vpop.permute.xlu0 %2195 }
 0x53b   :  { %v2263_v57 = vadd.f32 %v2196_v26, %v7913_v8  ;;  %v2299_v8 = vsub.f32 1.0, %v7927_v23  ;;  %v9748_v26 = vld [vmem:[#allocation20_spill] sm:$0xff] }
 0x53c   :  { %6419 = vtanh.f32 %v2264_v31 }
 0x53d   :  { %2539 = vrot.lane.b32.xlu1 %v6414_v14, %s6836_s23  ;;  %6421 = vtanh.f32 %v2263_v57  ;;  %v2427_v1 = vmul.f32 %v7785_v50, %v2299_v8  ;;  %v2428_v50 = vmul.f32 %v7793_v32, %v2300_v11  ;;  %v2308_v14 = vsub.f32 1.0, %v9748_v26  ;;  %v9754_v8 = vld [vmem:[#allocation22_spill] sm:$0xff]  ;;  %v9756_v11 = vld [vmem:[#allocation23_spill] sm:$0xff] }
 0x53e   :  { %v6416_v54 = vpop.eup %6415 }
 0x53f   :  { %v6418_v46 = vpop.eup %6417 }
 0x541   :  { %2545 = vrot.lane.b32.xlu1 %v6416_v54, %s6836_s23  ;;  %v9750_v54 = vld [vmem:[#allocation21_spill] sm:$0xff] }
 0x544   :  { %v2202_v19 = vpop.permute.xlu1 %2201 }
 0x545   :  { %v2266_v60 = vadd.f32 %v2202_v19, %v7933_v39  ;;  %2543 = vrot.lane.b32.xlu1 %v6418_v46, %s6836_s23  ;;  %v2307_v46 = vsub.f32 1.0, %v9750_v54  ;;  %v9751_v19 = vld [vmem:[#allocation17_spill] sm:$0xff] }
 0x546   :  { %v6420_v43 = vpop.eup %6419 }
 0x547   :  { %6423 = vtanh.f32 %v2266_v60  ;;  %v6422_v18 = vpop.eup %6421  ;;  %v2436_v60 = vmul.f32 %v9751_v19, %v2308_v14  ;;  %v9768_v19 = vld [vmem:[#allocation27_spill] sm:$0xff] }
 0x548   :  { %v2200_v41 = vpop.permute.xlu0 %2199 }
 0x549   :  { %v2265_v2 = vadd.f32 %v2200_v41, %v7942_v16  ;;  %2549 = vrot.lane.b32.xlu1 %v6420_v43, %s6836_s23  ;;  %v2494_v56 = vpop.permute.xlu1 %2493 }
 0x54a   :  { %v2588_v47 = vmul.f32 %v7919_v13, %v2494_v56  ;;  %v2304_v13 = vsub.f32 1.0, %v7949_v52 }
 0x54b   :  { %6425 = vtanh.f32 %v2265_v2 }
 0x54c   :  { %v8232_v53 = vadd.f32 %v2588_v47, %v2428_v50  ;;  %v8238_v10 = vpop.permute.xlu0 %2359 }
 0x54d   :  { %2547 = vrot.lane.b32.xlu1 %v6422_v18, %s6836_s23  ;;  %v2492_v9 = vpop.permute.xlu1 %2491  ;;  %v2310_v18 = vsub.f32 1.0, %v9754_v8 }
 0x54e   :  { %v2587_v39 = vmul.f32 %v7927_v23, %v2492_v9  ;;  %v2302_v23 = vsub.f32 1.0, %v7930_v17 }
 0x54f   :  { %v2438_v47 = vmul.f32 %v9757_v33, %v2310_v18  ;;  %v9772_v33 = vld [vmem:[#allocation29_spill] sm:$0xff] }
 0x550   :  { %v8220_v27 = vadd.f32 %v2587_v39, %v2427_v1  ;;  %v2430_v42 = vmul.f32 %v7811_v44, %v2302_v23  ;;  %v2432_v44 = vmul.f32 %v7831_v24, %v2304_v13  ;;  %v2362_v34 = vpop.permute.xlu0 %2361  ;;  %v2305_v24 = vsub.f32 1.0, %v7964_v38 }
 0x551   :  { %v6424_v36 = vpop.eup %6423  ;;  %v2498_v16 = vpop.permute.xlu1 %2497 }
 0x552   :  { %2553 = vrot.lane.b32.xlu1 %v6424_v36, %s6836_s23  ;;  %2683 = vrot.lane.b32.xlu0 %v8220_v27, %s6836_s23  ;;  %v2590_v45 = vmul.f32 %v7930_v17, %v2498_v16  ;;  %v2433_v31 = vmul.f32 %v7837_v40, %v2305_v24  ;;  %v2309_v16 = vsub.f32 1.0, %v9756_v11 }
 0x554   :  { %v8245_v28 = vadd.f32 %v2590_v45, %v2430_v42  ;;  %v8267_v20 = vpop.permute.xlu0 %2363  ;;  %v9760_v45 = vld [vmem:[#allocation24_spill] sm:$0xff] }
 0x555   :  { %v6426_v58 = vpop.eup %6425 }
 0x556   :  { %2551 = vrot.lane.b32.xlu1 %v6426_v58, %s6836_s23 }
 0x557   :  { %v2496_v0 = vpop.permute.xlu1 %2495 }
 0x558   :  { %v2589_v29 = vmul.f32 %v7945_v25, %v2496_v0  ;;  %v2366_v43 = vpop.permute.xlu0 %2365  ;;  %v9759_v0 = vld [vmem:[#allocation15_spill] sm:$0xff] }
 0x55a   :  { %v8240_v32 = vadd.f32 %v2589_v29, %v2429_v63  ;;  %2685 = vrot.lane.b32.xlu1 %v8232_v53, %s6836_s23  ;;  %v2437_v63 = vmul.f32 %v9759_v0, %v2309_v16  ;;  %v2312_v29 = vsub.f32 1.0, %v9760_v45 }
 0x55b   :  { %v2502_v49 = vpop.permute.xlu1 %2501 }
 0x55c   :  { %v2592_v17 = vmul.f32 %v7949_v52, %v2502_v49  ;;  %2687 = vrot.lane.b32.xlu0 %v8240_v32, %s6836_s23  ;;  %v8290_v1 = vpop.permute.xlu0 %2367 }
 0x55e   :  { %2689 = vrot.lane.b32.xlu1 %v8245_v28, %s6836_s23  ;;  %v8255_v7 = vadd.f32 %v2592_v17, %v2432_v44  ;;  %v9762_v17 = vld [vmem:[#allocation25_spill] sm:$0xff] }
 0x55f   :  { %v2500_v25 = vpop.permute.xlu1 %2499  ;;  %v2311_v44 = vsub.f32 1.0, %v9762_v17 }
 0x560   :  { %v2591_v37 = vmul.f32 %v7953_v21, %v2500_v25  ;;  %v2370_v42 = vpop.permute.xlu0 %2369  ;;  %v9763_v25 = vld [vmem:[#allocation19_spill] sm:$0xff] }
 0x562   :  { %v8258_v51 = vadd.f32 %v2591_v37, %v2431_v30  ;;  %2693 = vrot.lane.b32.xlu1 %v8255_v7, %s6836_s23  ;;  %v2440_v30 = vmul.f32 %v9763_v25, %v2312_v29 }
 0x563   :  { %v2506_v52 = vpop.permute.xlu1 %2505 }
 0x564   :  { %9746 = vst [vmem:[#allocation38_spill] sm:$0xff] %v8258_v51  ;;  %v2594_v35 = vmul.f32 %v7961_v55, %v2506_v52  ;;  %2691 = vrot.lane.b32.xlu0 %v8258_v51, %s6836_s23  ;;  %v2372_v37 = vpop.permute.xlu0 %2371 }
 0x566   :  { %v8269_v5 = vadd.f32 %v2594_v35, %v2434_v59  ;;  %v9765_v59 = vld [vmem:[#allocation18_spill] sm:$0xff] }
 0x567   :  { %v2504_v21 = vpop.permute.xlu1 %2503  ;;  %v2439_v35 = vmul.f32 %v9765_v59, %v2311_v44  ;;  %v9776_v44 = vld [vmem:[#allocation31_spill] sm:$0xff] }
 0x568   :  { %9747 = vst [vmem:[#allocation39_spill] sm:$0xff] %v8269_v5  ;;  %v2593_v57 = vmul.f32 %v7964_v38, %v2504_v21  ;;  %2697 = vrot.lane.b32.xlu1 %v8269_v5, %s6836_s23  ;;  %v9753_v38 = vld [vmem:[#allocation14_spill] sm:$0xff]  ;;  %v2317_v25 = vsub.f32 1.0, %v9776_v44 }
 0x569   :  { %v2435_v56 = vmul.f32 %v9753_v38, %v2307_v46 }
 0x56a   :  { %v8276_v4 = vadd.f32 %v2593_v57, %v2433_v31  ;;  %v9766_v31 = vld [vmem:[#allocation26_spill] sm:$0xff] }
 0x56b   :  { %v2510_v55 = vpop.permute.xlu1 %2509 }
 0x56c   :  { %9749 = vst [vmem:[#allocation20_spill] sm:$0xff] %v8276_v4  ;;  %v2596_v41 = vmul.f32 %v9748_v26, %v2510_v55  ;;  %2695 = vrot.lane.b32.xlu0 %v8276_v4, %s6836_s23  ;;  %v2314_v26 = vsub.f32 1.0, %v9766_v31 }
 0x56e   :  { %v8283_v40 = vadd.f32 %v2596_v41, %v2436_v60  ;;  %v2442_v55 = vmul.f32 %v2362_v34, %v2314_v26  ;;  %v2313_v60 = vsub.f32 1.0, %v9768_v19 }
 0x56f   :  { %v2508_v2 = vpop.permute.xlu1 %2507 }
 0x570   :  { %9752 = vst [vmem:[#allocation21_spill] sm:$0xff] %v8283_v40  ;;  %v2595_v9 = vmul.f32 %v9750_v54, %v2508_v2  ;;  %2701 = vrot.lane.b32.xlu1 %v8283_v40, %s6836_s23  ;;  %v2374_v54 = vpop.permute.xlu0 %2373  ;;  %v2441_v38 = vmul.f32 %v8238_v10, %v2313_v60 }
 0x572   :  { %v8292_v39 = vadd.f32 %v2595_v9, %v2435_v56 }
 0x573   :  { %v2514_v36 = vpop.permute.xlu1 %2513 }
 0x574   :  { %9755 = vst [vmem:[#allocation17_spill] sm:$0xff] %v8292_v39  ;;  %v2598_v58 = vmul.f32 %v9754_v8, %v2514_v36  ;;  %2699 = vrot.lane.b32.xlu0 %v8292_v39, %s6836_s23  ;;  %v9770_v8 = vld [vmem:[#allocation28_spill] sm:$0xff]  ;;  %v2376_v18 = vpop.permute.xlu0 %2375 }
 0x575   :  { %v2316_v34 = vsub.f32 1.0, %v9770_v8 }
 0x576   :  { %v8299_v50 = vadd.f32 %v2598_v58, %v2438_v47  ;;  %v2315_v47 = vsub.f32 1.0, %v9772_v33 }
 0x577   :  { %v2512_v23 = vpop.permute.xlu1 %2511 }
 0x578   :  { %9758 = vst [vmem:[#allocation14_spill] sm:$0xff] %v8299_v50  ;;  %v2597_v13 = vmul.f32 %v9756_v11, %v2512_v23  ;;  %2705 = vrot.lane.b32.xlu1 %v8299_v50, %s6836_s23  ;;  %v2444_v11 = vmul.f32 %v2366_v43, %v2316_v34  ;;  %v2443_v23 = vmul.f32 %v8267_v20, %v2315_v47  ;;  %v2378_v0 = vpop.permute.xlu0 %2377 }
 0x57a   :  { %v8306_v49 = vadd.f32 %v2597_v13, %v2437_v63 }
 0x57b   :  { %v2518_v12 = vpop.permute.xlu1 %2517 }
 0x57c   :  { %9761 = vst [vmem:[#allocation22_spill] sm:$0xff] %v8306_v49  ;;  %v2600_v22 = vmul.f32 %v9760_v45, %v2518_v12  ;;  %2703 = vrot.lane.b32.xlu0 %v8306_v49, %s6836_s23  ;;  %v9774_v45 = vld [vmem:[#allocation30_spill] sm:$0xff]  ;;  %v2380_v20 = vpop.permute.xlu0 %2379 }
 0x57d   :  { %v2318_v43 = vsub.f32 1.0, %v9774_v45 }
 0x57e   :  { %v8313_v52 = vadd.f32 %v2600_v22, %v2440_v30 }
 0x57f   :  { %v2516_v24 = vpop.permute.xlu1 %2515  ;;  %v2446_v12 = vmul.f32 %v2370_v42, %v2318_v43 }
 0x580   :  { %9764 = vst [vmem:[#allocation23_spill] sm:$0xff] %v8313_v52  ;;  %v2599_v21 = vmul.f32 %v9762_v17, %v2516_v24  ;;  %2709 = vrot.lane.b32.xlu1 %v8313_v52, %s6836_s23  ;;  %v2445_v24 = vmul.f32 %v8290_v1, %v2317_v25 }
 0x582   :  { %v8320_v14 = vadd.f32 %v2599_v21, %v2439_v35  ;;  %v9778_v35 = vld [vmem:[#allocation32_spill] sm:$0xff] }
 0x583   :  { %v2522_v57 = vpop.permute.xlu1 %2521  ;;  %v2320_v42 = vsub.f32 1.0, %v9778_v35 }
 0x584   :  { %9767 = vst [vmem:[#allocation16_spill] sm:$0xff] %v8320_v14  ;;  %v2602_v46 = vmul.f32 %v9766_v31, %v2522_v57  ;;  %2707 = vrot.lane.b32.xlu0 %v8320_v14, %s6836_s23  ;;  %v2382_v57 = vpop.permute.xlu0 %2381 }
 0x585   :  { %v2448_v26 = vmul.f32 %v2374_v54, %v2320_v42 }
 0x586   :  { %v8326_v41 = vadd.f32 %v2602_v46, %v2442_v55  ;;  %v2319_v46 = vsub.f32 1.0, %v8033_v3 }
 0x587   :  { %v2520_v2 = vpop.permute.xlu1 %2519 }
 0x588   :  { %9769 = vst [vmem:[#allocation15_spill] sm:$0xff] %v8326_v41  ;;  %v2601_v56 = vmul.f32 %v9768_v19, %v2520_v2  ;;  %2713 = vrot.lane.b32.xlu1 %v8326_v41, %s6836_s23  ;;  %v2447_v60 = vmul.f32 %v2372_v37, %v2319_v46  ;;  %v2384_v54 = vpop.permute.xlu0 %2383  ;;  %v9790_v46 = vld [vmem:[#allocation37_spill] sm:$0xff] }
 0x58a   :  { %v8333_v9 = vadd.f32 %v2601_v56, %v2441_v38  ;;  %v9781_v38 = vld [vmem:[#allocation33_spill] sm:$0xff] }
 0x58b   :  { %v2526_v36 = vpop.permute.xlu1 %2525  ;;  %v2322_v56 = vsub.f32 1.0, %v9781_v38 }
 0x58c   :  { %9771 = vst [vmem:[#allocation24_spill] sm:$0xff] %v8333_v9  ;;  %v2604_v16 = vmul.f32 %v9770_v8, %v2526_v36  ;;  %2711 = vrot.lane.b32.xlu0 %v8333_v9, %s6836_s23 }
 0x58d   :  { %v2450_v36 = vmul.f32 %v2378_v0, %v2322_v56 }
 0x58e   :  { %v8339_v10 = vadd.f32 %v2604_v16, %v2444_v11  ;;  %v9783_v16 = vld [vmem:[#allocation34_spill] sm:$0xff] }
 0x58f   :  { %v2524_v58 = vpop.permute.xlu1 %2523 }
 0x590   :  { %9773 = vst [vmem:[#allocation25_spill] sm:$0xff] %v8339_v10  ;;  %v2603_v63 = vmul.f32 %v9772_v33, %v2524_v58  ;;  %2717 = vrot.lane.b32.xlu1 %v8339_v10, %s6836_s23  ;;  %v2321_v33 = vsub.f32 1.0, %v9783_v16  ;;  %v2386_v58 = vpop.permute.xlu0 %2385 }
 0x592   :  { %v8346_v29 = vadd.f32 %v2603_v63, %v2443_v23  ;;  %v2449_v47 = vmul.f32 %v2376_v18, %v2321_v33  ;;  %v9785_v63 = vld [vmem:[#allocation35_spill] sm:$0xff]  ;;  %v2327_v33 = vsub.f32 1.0, %v8069_v61 }
 0x593   :  { %v2530_v13 = vpop.permute.xlu1 %2529 }
 0x594   :  { %9775 = vst [vmem:[#allocation19_spill] sm:$0xff] %v8346_v29  ;;  %v2606_v17 = vmul.f32 %v9774_v45, %v2530_v13  ;;  %2715 = vrot.lane.b32.xlu0 %v8346_v29, %s6836_s23  ;;  %v2324_v45 = vsub.f32 1.0, %v9785_v63  ;;  %v2388_v18 = vpop.permute.xlu0 %2387 }
 0x596   :  { %v8352_v30 = vadd.f32 %v2606_v17, %v2446_v12  ;;  %v2452_v13 = vmul.f32 %v2382_v57, %v2324_v45  ;;  %v2323_v17 = vsub.f32 1.0, %v8053_v15  ;;  %v2330_v45 = vsub.f32 1.0, %v8077_v48 }
 0x597   :  { %v2528_v22 = vpop.permute.xlu1 %2527 }
 0x598   :  { %9777 = vst [vmem:[#allocation18_spill] sm:$0xff] %v8352_v30  ;;  %v2605_v59 = vmul.f32 %v9776_v44, %v2528_v22  ;;  %2721 = vrot.lane.b32.xlu1 %v8352_v30, %s6836_s23  ;;  %v2451_v22 = vmul.f32 %v2380_v20, %v2323_v17  ;;  %v2390_v57 = vpop.permute.xlu0 %2389  ;;  %v2329_v17 = vsub.f32 1.0, %v8082_v6 }
 0x59a   :  { %v8359_v21 = vadd.f32 %v2605_v59, %v2445_v24  ;;  %v9788_v59 = vld [vmem:[#allocation36_spill] sm:$0xff] }
 0x59b   :  { %v2534_v31 = vpop.permute.xlu1 %2533 }
 0x59c   :  { %9779 = vst [vmem:[#allocation26_spill] sm:$0xff] %v8359_v21  ;;  %v2608_v55 = vmul.f32 %v9778_v35, %v2534_v31  ;;  %2719 = vrot.lane.b32.xlu0 %v8359_v21, %s6836_s23  ;;  %v2326_v35 = vsub.f32 1.0, %v9788_v59  ;;  %v2392_v56 = vpop.permute.xlu0 %2391 }
 0x59e   :  { %v8365_v1 = vadd.f32 %v2608_v55, %v2448_v26  ;;  %v2454_v26 = vmul.f32 %v2386_v58, %v2326_v35 }
 0x59f   :  { %v2532_v19 = vpop.permute.xlu1 %2531 }
 0x5a0   :  { %9780 = vst [vmem:[#allocation27_spill] sm:$0xff] %v8365_v1  ;;  %v2607_v2 = vmul.f32 %v8033_v3, %v2532_v19  ;;  %2725 = vrot.lane.b32.xlu1 %v8365_v1, %s6836_s23  ;;  %v2325_v19 = vsub.f32 1.0, %v9790_v46  ;;  %v2394_v58 = vpop.permute.xlu0 %2393 }
 0x5a2   :  { %v8371_v8 = vadd.f32 %v2607_v2, %v2447_v60  ;;  %v2453_v60 = vmul.f32 %v2384_v54, %v2325_v19 }
 0x5a3   :  { %v2538_v34 = vpop.permute.xlu1 %2537 }
 0x5a4   :  { %9782 = vst [vmem:[#allocation28_spill] sm:$0xff] %v8371_v8  ;;  %v2610_v11 = vmul.f32 %v9781_v38, %v2538_v34  ;;  %2723 = vrot.lane.b32.xlu0 %v8371_v8, %s6836_s23  ;;  %v2328_v38 = vsub.f32 1.0, %v8067_v62 }
 0x5a6   :  { %v8377_v37 = vadd.f32 %v2610_v11, %v2450_v36  ;;  %v2456_v11 = vmul.f32 %v2390_v57, %v2328_v38 }
 0x5a7   :  { %v2536_v3 = vpop.permute.xlu1 %2535 }
 0x5a8   :  { %9784 = vst [vmem:[#allocation29_spill] sm:$0xff] %v8377_v37  ;;  %v2609_v23 = vmul.f32 %v9783_v16, %v2536_v3  ;;  %2729 = vrot.lane.b32.xlu1 %v8377_v37, %s6836_s23 }
 0x5aa   :  { %v8383_v0 = vadd.f32 %v2609_v23, %v2449_v47  ;;  %v2455_v47 = vmul.f32 %v2388_v18, %v2327_v33 }
 0x5ab   :  { %v2542_v43 = vpop.permute.xlu1 %2541 }
 0x5ac   :  { %9786 = vst [vmem:[#allocation30_spill] sm:$0xff] %v8383_v0  ;;  %v2612_v12 = vmul.f32 %v9785_v63, %v2542_v43  ;;  %2727 = vrot.lane.b32.xlu0 %v8383_v0, %s6836_s23 }
 0x5ae   :  { %v8389_v44 = vadd.f32 %v2612_v12, %v2452_v13  ;;  %v2458_v13 = vmul.f32 %v2394_v58, %v2330_v45 }
 0x5af   :  { %v2540_v25 = vpop.permute.xlu1 %2539 }
 0x5b0   :  { %9787 = vst [vmem:[#allocation31_spill] sm:$0xff] %v8389_v44  ;;  %v2611_v24 = vmul.f32 %v8053_v15, %v2540_v25  ;;  %2733 = vrot.lane.b32.xlu1 %v8389_v44, %s6836_s23  ;;  %v2457_v25 = vmul.f32 %v2392_v56, %v2329_v17 }
 0x5b2   :  { %v8395_v42 = vadd.f32 %v2611_v24, %v2451_v22 }
 0x5b3   :  { %v2546_v31 = vpop.permute.xlu1 %2545 }
 0x5b4   :  { %9789 = vst [vmem:[#allocation32_spill] sm:$0xff] %v8395_v42  ;;  %v2614_v55 = vmul.f32 %v9788_v59, %v2546_v31  ;;  %2731 = vrot.lane.b32.xlu0 %v8395_v42, %s6836_s23 }
 0x5b6   :  { %v8401_v20 = vadd.f32 %v2614_v55, %v2454_v26 }
 0x5b7   :  { %v2544_v15 = vpop.permute.xlu1 %2543 }
 0x5b8   :  { %9791 = vst [vmem:[#allocation33_spill] sm:$0xff] %v8401_v20  ;;  %v2613_v2 = vmul.f32 %v9790_v46, %v2544_v15  ;;  %2737 = vrot.lane.b32.xlu1 %v8401_v20, %s6836_s23 }
 0x5ba   :  { %v8407_v34 = vadd.f32 %v2613_v2, %v2453_v60 }
 0x5bb   :  { %v2550_v36 = vpop.permute.xlu1 %2549 }
 0x5bc   :  { %9792 = vst [vmem:[#allocation34_spill] sm:$0xff] %v8407_v34  ;;  %v2616_v16 = vmul.f32 %v8067_v62, %v2550_v36  ;;  %2735 = vrot.lane.b32.xlu0 %v8407_v34, %s6836_s23 }
 0x5be   :  { %v8413_v54 = vadd.f32 %v2616_v16, %v2456_v11 }
 0x5bf   :  { %v2548_v3 = vpop.permute.xlu1 %2547 }
 0x5c0   :  { %9793 = vst [vmem:[#allocation35_spill] sm:$0xff] %v8413_v54  ;;  %v2615_v23 = vmul.f32 %v8069_v61, %v2548_v3  ;;  %2741 = vrot.lane.b32.xlu1 %v8413_v54, %s6836_s23 }
 0x5c2   :  { %v8418_v63 = vadd.f32 %v2615_v23, %v2455_v47 }
 0x5c4   :  { %9794 = vst [vmem:[#allocation36_spill] sm:$0xff] %v8418_v63  ;;  %v2684_v62 = vpop.permute.xlu0 %2683  ;;  %2739 = vrot.lane.b32.xlu0 %v8418_v63, %s6836_s23  ;;  %v2554_v43 = vpop.permute.xlu1 %2553 }
 0x5c5   :  { %v2618_v12 = vmul.f32 %v8077_v48, %v2554_v43  ;;  %5679 = vmatprep.mubr.msk.f32.mxu0 %vm97_vm0, %v2684_v62 }
 0x5c7   :  { %v8426_v61 = vadd.f32 %v2618_v12, %v2458_v13 }
 0x5c8   :  { %v2552_v18 = vpop.permute.xlu1 %2551 }
 0x5c9   :  { %9795 = vst [vmem:[#allocation37_spill] sm:$0xff] %v8426_v61  ;;  %v2617_v22 = vmul.f32 %v8082_v6, %v2552_v18  ;;  %2745 = vrot.lane.b32.xlu1 %v8426_v61, %s6836_s23 }
 0x5cb   :  { %v8431_v24 = vadd.f32 %v2617_v22, %v2457_v25  ;;  %v6654_v22 = vld [vmem:[#allocation4 + $0x8] sm:$0xff] }
 0x5cc   :  { %v2686_v59 = vpop.permute.xlu1 %2685 }
 0x5cd   :  { %9796 = vst [vmem:[#allocation40_spill] sm:$0xff] %v8431_v24  ;;  %2743 = vrot.lane.b32.xlu0 %v8431_v24, %s6836_s23  ;;  %5680 = vmatmul.mubr.msk.f32.vlgmr.msra.gmra.mrb[96].mxu0 %vm97_vm0, %v2686_v59 }
 0x5ce   :  { %v2688_v48 = vpop.permute.xlu0 %2687 }
 0x5cf   :  { %5682 = vmatprep.mubr.msk.f32.mxu0 %vm97_vm0, %v2688_v48  ;;  %v8469_v48 = vld [vmem:[%s9592_s5] ss:$0 sm:$0xff] }
 0x5d0   :  { %v2690_v35 = vpop.permute.xlu1 %2689 }
 0x5d1   :  { %5683 = vmatmul.mubr.msk.f32.gmra.mrb[98].mxu0 %vm97_vm0, %v2690_v35 }
 0x5d4   :  { %v2694_v26 = vpop.permute.xlu1 %2693 }
 0x5d6   :  { %v2692_v31 = vpop.permute.xlu0 %2691 }
 0x5d7   :  { %5685 = vmatprep.mubr.msk.f32.mxu0 %vm97_vm0, %v2692_v31 }
 0x5d8   :  { %5686 = vmatmul.mubr.msk.f32.gmra.mrb[100].mxu0 %vm97_vm0, %v2694_v26 }
 0x5da   :  { %v2698_v57 = vpop.permute.xlu1 %2697 }
 0x5de   :  { %v2696_v6 = vpop.permute.xlu0 %2695 }
 0x5df   :  { %5688 = vmatprep.mubr.msk.f32.mxu0 %vm97_vm0, %v2696_v6 }
 0x5e0   :  { %5689 = vmatmul.mubr.msk.f32.gmra.mrb[102].mxu0 %vm97_vm0, %v2698_v57 }
 0x5e2   :  { %v2702_v46 = vpop.permute.xlu1 %2701 }
 0x5e6   :  { %v2700_v55 = vpop.permute.xlu0 %2699 }
 0x5e7   :  { %5691 = vmatprep.mubr.msk.f32.mxu0 %vm97_vm0, %v2700_v55 }
 0x5e8   :  { %5692 = vmatmul.mubr.msk.f32.gmra.mrb[104].mxu0 %vm97_vm0, %v2702_v46 }
 0x5ea   :  { %v2706_v15 = vpop.permute.xlu1 %2705 }
 0x5ee   :  { %v2704_v19 = vpop.permute.xlu0 %2703 }
 0x5ef   :  { %5694 = vmatprep.mubr.msk.f32.mxu0 %vm97_vm0, %v2704_v19 }
 0x5f0   :  { %5695 = vmatmul.mubr.msk.f32.gmra.mrb[106].mxu0 %vm97_vm0, %v2706_v15 }
 0x5f2   :  { %v2710_v2 = vpop.permute.xlu1 %2709 }
 0x5f6   :  { %v2708_v60 = vpop.permute.xlu0 %2707 }
 0x5f7   :  { %5697 = vmatprep.mubr.msk.f32.mxu0 %vm97_vm0, %v2708_v60  ;;  %v9797_v60 = vmov 0.0|0.0  }
 0x5f8   :  { %5698 = vmatmul.mubr.msk.f32.gmra.mrb[108].mxu0 %vm97_vm0, %v2710_v2 }
 0x5fa   :  { %v2714_v56 = vpop.permute.xlu1 %2713 }
 0x5fe   :  { %v2712_v38 = vpop.permute.xlu0 %2711 }
 0x5ff   :  { %5700 = vmatprep.mubr.msk.f32.mxu0 %vm97_vm0, %v2712_v38 }
 0x600   :  { %5701 = vmatmul.mubr.msk.f32.gmra.mrb[110].mxu0 %vm97_vm0, %v2714_v56 }
 0x602   :  { %v2718_v11 = vpop.permute.xlu1 %2717 }
 0x606   :  { %v2716_v36 = vpop.permute.xlu0 %2715 }
 0x607   :  { %5703 = vmatprep.mubr.msk.f32.mxu0 %vm97_vm0, %v2716_v36 }
 0x608   :  { %5704 = vmatmul.mubr.msk.f32.gmra.mrb[112].mxu0 %vm97_vm0, %v2718_v11 }
 0x60a   :  { %v2722_v33 = vpop.permute.xlu1 %2721 }
 0x60e   :  { %v2720_v16 = vpop.permute.xlu0 %2719 }
 0x60f   :  { %5706 = vmatprep.mubr.msk.f32.mxu0 %vm97_vm0, %v2720_v16 }
 0x610   :  { %5707 = vmatmul.mubr.msk.f32.gmra.mrb[114].mxu0 %vm97_vm0, %v2722_v33 }
 0x612   :  { %v2726_v47 = vpop.permute.xlu1 %2725 }
 0x616   :  { %v2724_v3 = vpop.permute.xlu0 %2723 }
 0x617   :  { %5709 = vmatprep.mubr.msk.f32.mxu0 %vm97_vm0, %v2724_v3 }
 0x618   :  { %5710 = vmatmul.mubr.msk.f32.gmra.mrb[116].mxu0 %vm97_vm0, %v2726_v47 }
 0x61a   :  { %v2730_v23 = vpop.permute.xlu1 %2729 }
 0x61e   :  { %v2728_v58 = vpop.permute.xlu0 %2727 }
 0x61f   :  { %5712 = vmatprep.mubr.msk.f32.mxu0 %vm97_vm0, %v2728_v58 }
 0x620   :  { %5713 = vmatmul.mubr.msk.f32.gmra.mrb[118].mxu0 %vm97_vm0, %v2730_v23 }
 0x622   :  { %v2734_v62 = vpop.permute.xlu1 %2733 }
 0x626   :  { %v2732_v45 = vpop.permute.xlu0 %2731 }
 0x627   :  { %5715 = vmatprep.mubr.msk.f32.mxu0 %vm97_vm0, %v2732_v45 }
 0x628   :  { %5716 = vmatmul.mubr.msk.f32.gmra.mrb[120].mxu0 %vm97_vm0, %v2734_v62 }
 0x62a   :  { %v2738_v13 = vpop.permute.xlu1 %2737 }
 0x62e   :  { %v2736_v43 = vpop.permute.xlu0 %2735 }
 0x62f   :  { %5718 = vmatprep.mubr.msk.f32.mxu0 %vm97_vm0, %v2736_v43 }
 0x630   :  { %5719 = vmatmul.mubr.msk.f32.gmra.mrb[122].mxu0 %vm97_vm0, %v2738_v13 }
 0x632   :  { %v2742_v17 = vpop.permute.xlu1 %2741 }
 0x636   :  { %v2740_v12 = vpop.permute.xlu0 %2739 }
 0x637   :  { %5721 = vmatprep.mubr.msk.f32.mxu0 %vm97_vm0, %v2740_v12 }
 0x638   :  { %5722 = vmatmul.mubr.msk.f32.gmra.mrb[124].mxu0 %vm97_vm0, %v2742_v17 }
 0x63b   :  { %v2746_v25 = vpop.permute.xlu1 %2745 }
 0x63f   :  { %v2744_v18 = vpop.permute.xlu0 %2743 }
 0x640   :  { %5724 = vmatprep.mubr.msk.f32.mxu0 %vm97_vm0, %v2744_v18 }
 0x641   :  { %5725 = vmatmul.mubr.msk.f32.gmra.mrb[126].mxu0 %vm97_vm0, %v2746_v25 }
 0x642   :  { %3453 = vmatprep.mubr.f32.mxu0 %v6654_v22 }
 0x6a0   :  { %v5681_v59 = vpop.f32.mrb[96].mxu0 }
 0x6a1   :  { %v2883_v35 = vadd.f32 %v8469_v48, %v5681_v59  ;;  %v2877_v31 = vpop.f32.mrb[97].mxu0 }
 0x6a2   :  { %v2878_v26 = vadd.f32 %v8469_v48, %v2877_v31 }
 0x6a4   :  { %v6155_v6 = vpack.i.bf16 %v2883_v35, %v2878_v26  ;;  %v5936_v57 = vpack.c.bf16 %v2883_v35, %v2878_v26  ;;  %v5684_v55 = vpop.f32.mrb[98].mxu0 }
 0x6a5   :  { %v2893_v46 = vadd.f32 %v8469_v48, %v5684_v55  ;;  %v2887_v19 = vpop.f32.mrb[99].mxu0 }
 0x6a6   :  { %v2888_v15 = vadd.f32 %v8469_v48, %v2887_v19  ;;  %6156 = vrot.lane.b32.xlu0 %v6155_v6, %s6836_s23  ;;  %5937 = vmatpush1.bf16.msra.mxu1 %v5936_v57 }
 0x6a7   :  { %5938 = vmatprep.subr.bf16.mxu1 %v9797_v60 }
 0x6a8   :  { %v6160_v2 = vpack.i.bf16 %v2893_v46, %v2888_v15  ;;  %v5939_v38 = vpack.c.bf16 %v2893_v46, %v2888_v15 }
 0x6aa   :  { %6161 = vrot.lane.b32.xlu1 %v6160_v2, %s6836_s23  ;;  %5940 = vmatpush1.bf16.msra.mxu1 %v5939_v38 }
 0x6ab   :  { %v5687_v56 = vpop.f32.mrb[100].mxu0  ;;  %5941 = vmatprep.subr.bf16.mxu1 %v9797_v60 }
 0x6ac   :  { %v2903_v36 = vadd.f32 %v8469_v48, %v5687_v56  ;;  %v2897_v11 = vpop.f32.mrb[101].mxu0 }
 0x6ad   :  { %v2898_v16 = vadd.f32 %v8469_v48, %v2897_v11 }
 0x6af   :  { %v6165_v33 = vpack.i.bf16 %v2903_v36, %v2898_v16  ;;  %v5942_v3 = vpack.c.bf16 %v2903_v36, %v2898_v16 }
 0x6b1   :  { %6166 = vrot.lane.b32.xlu0 %v6165_v33, %s6836_s23  ;;  %5943 = vmatpush1.bf16.msra.mxu1 %v5942_v3 }
 0x6b2   :  { %5944 = vmatprep.subr.bf16.mxu1 %v9797_v60 }
 0x6b3   :  { %v5690_v47 = vpop.f32.mrb[102].mxu0 }
 0x6b4   :  { %v2913_v58 = vadd.f32 %v8469_v48, %v5690_v47  ;;  %v2907_v23 = vpop.f32.mrb[103].mxu0 }
 0x6b5   :  { %v2908_v45 = vadd.f32 %v8469_v48, %v2907_v23 }
 0x6b7   :  { %v6170_v62 = vpack.i.bf16 %v2913_v58, %v2908_v45  ;;  %v5945_v43 = vpack.c.bf16 %v2913_v58, %v2908_v45 }
 0x6b9   :  { %6171 = vrot.lane.b32.xlu1 %v6170_v62, %s6836_s23  ;;  %5946 = vmatpush1.bf16.msra.mxu1 %v5945_v43 }
 0x6ba   :  { %5947 = vmatprep.subr.bf16.mxu1 %v9797_v60 }
 0x6bb   :  { %v5693_v13 = vpop.f32.mrb[104].mxu0 }
 0x6bc   :  { %v2923_v12 = vadd.f32 %v8469_v48, %v5693_v13  ;;  %v2917_v17 = vpop.f32.mrb[105].mxu0 }
 0x6bd   :  { %v2918_v18 = vadd.f32 %v8469_v48, %v2917_v17 }
 0x6bf   :  { %v6175_v25 = vpack.i.bf16 %v2923_v12, %v2918_v18  ;;  %v5948_v22 = vpack.c.bf16 %v2923_v12, %v2918_v18 }
 0x6c1   :  { %6176 = vrot.lane.b32.xlu0 %v6175_v25, %s6836_s23  ;;  %5949 = vmatpush1.bf16.msra.mxu1 %v5948_v22 }
 0x6c2   :  { %5950 = vmatprep.subr.bf16.mxu1 %v9797_v60 }
 0x6c3   :  { %v5696_v59 = vpop.f32.mrb[106].mxu0 }
 0x6c4   :  { %v2933_v35 = vadd.f32 %v8469_v48, %v5696_v59  ;;  %v2927_v31 = vpop.f32.mrb[107].mxu0 }
 0x6c5   :  { %v2928_v26 = vadd.f32 %v8469_v48, %v2927_v31 }
 0x6c7   :  { %v6180_v6 = vpack.i.bf16 %v2933_v35, %v2928_v26  ;;  %v5951_v57 = vpack.c.bf16 %v2933_v35, %v2928_v26 }
 0x6c9   :  { %6181 = vrot.lane.b32.xlu1 %v6180_v6, %s6836_s23  ;;  %5952 = vmatpush1.bf16.msra.mxu1 %v5951_v57 }
 0x6ca   :  { %5953 = vmatprep.subr.bf16.mxu1 %v9797_v60 }
 0x6cb   :  { %v5699_v55 = vpop.f32.mrb[108].mxu0 }
 0x6cc   :  { %v2943_v46 = vadd.f32 %v8469_v48, %v5699_v55  ;;  %v2937_v19 = vpop.f32.mrb[109].mxu0 }
 0x6cd   :  { %v2938_v15 = vadd.f32 %v8469_v48, %v2937_v19 }
 0x6cf   :  { %v6185_v2 = vpack.i.bf16 %v2943_v46, %v2938_v15  ;;  %v5954_v38 = vpack.c.bf16 %v2943_v46, %v2938_v15 }
 0x6d1   :  { %6186 = vrot.lane.b32.xlu0 %v6185_v2, %s6836_s23  ;;  %5955 = vmatpush1.bf16.msra.mxu1 %v5954_v38 }
 0x6d2   :  { %5956 = vmatprep.subr.bf16.mxu1 %v9797_v60 }
 0x6d3   :  { %v5702_v56 = vpop.f32.mrb[110].mxu0 }
 0x6d4   :  { %v2953_v36 = vadd.f32 %v8469_v48, %v5702_v56  ;;  %v2947_v11 = vpop.f32.mrb[111].mxu0 }
 0x6d5   :  { %v2948_v16 = vadd.f32 %v8469_v48, %v2947_v11 }
 0x6d7   :  { %v6190_v33 = vpack.i.bf16 %v2953_v36, %v2948_v16  ;;  %v5957_v3 = vpack.c.bf16 %v2953_v36, %v2948_v16 }
 0x6d9   :  { %6191 = vrot.lane.b32.xlu1 %v6190_v33, %s6836_s23  ;;  %5958 = vmatpush1.bf16.msra.mxu1 %v5957_v3 }
 0x6da   :  { %5959 = vmatprep.subr.bf16.mxu1 %v9797_v60 }
 0x6db   :  { %v5705_v47 = vpop.f32.mrb[112].mxu0 }
 0x6dc   :  { %v2963_v58 = vadd.f32 %v8469_v48, %v5705_v47  ;;  %v2957_v23 = vpop.f32.mrb[113].mxu0 }
 0x6dd   :  { %v2958_v45 = vadd.f32 %v8469_v48, %v2957_v23 }
 0x6df   :  { %v6195_v62 = vpack.i.bf16 %v2963_v58, %v2958_v45  ;;  %v5960_v43 = vpack.c.bf16 %v2963_v58, %v2958_v45 }
 0x6e1   :  { %6196 = vrot.lane.b32.xlu0 %v6195_v62, %s6836_s23  ;;  %5961 = vmatpush1.bf16.msra.mxu1 %v5960_v43 }
 0x6e2   :  { %5962 = vmatprep.subr.bf16.mxu1 %v9797_v60 }
 0x6e3   :  { %v5708_v13 = vpop.f32.mrb[114].mxu0 }
 0x6e4   :  { %v2973_v12 = vadd.f32 %v8469_v48, %v5708_v13  ;;  %v2967_v17 = vpop.f32.mrb[115].mxu0 }
 0x6e5   :  { %v2968_v18 = vadd.f32 %v8469_v48, %v2967_v17 }
 0x6e7   :  { %v6200_v25 = vpack.i.bf16 %v2973_v12, %v2968_v18  ;;  %v5963_v22 = vpack.c.bf16 %v2973_v12, %v2968_v18 }
 0x6e9   :  { %6201 = vrot.lane.b32.xlu1 %v6200_v25, %s6836_s23  ;;  %5964 = vmatpush1.bf16.msra.mxu1 %v5963_v22 }
 0x6ea   :  { %5965 = vmatprep.subr.bf16.mxu1 %v9797_v60 }
 0x6eb   :  { %v5711_v59 = vpop.f32.mrb[116].mxu0 }
 0x6ec   :  { %v2983_v35 = vadd.f32 %v8469_v48, %v5711_v59  ;;  %v2977_v31 = vpop.f32.mrb[117].mxu0 }
 0x6ed   :  { %v2978_v26 = vadd.f32 %v8469_v48, %v2977_v31 }
 0x6ef   :  { %v6205_v6 = vpack.i.bf16 %v2983_v35, %v2978_v26  ;;  %v5966_v57 = vpack.c.bf16 %v2983_v35, %v2978_v26 }
 0x6f1   :  { %6206 = vrot.lane.b32.xlu0 %v6205_v6, %s6836_s23  ;;  %5967 = vmatpush1.bf16.msra.mxu1 %v5966_v57 }
 0x6f2   :  { %5968 = vmatprep.subr.bf16.mxu1 %v9797_v60 }
 0x6f3   :  { %v5714_v55 = vpop.f32.mrb[118].mxu0 }
 0x6f4   :  { %v2993_v46 = vadd.f32 %v8469_v48, %v5714_v55  ;;  %v2987_v19 = vpop.f32.mrb[119].mxu0 }
 0x6f5   :  { %v2988_v15 = vadd.f32 %v8469_v48, %v2987_v19 }
 0x6f7   :  { %v6210_v2 = vpack.i.bf16 %v2993_v46, %v2988_v15  ;;  %v5969_v38 = vpack.c.bf16 %v2993_v46, %v2988_v15 }
 0x6f9   :  { %6211 = vrot.lane.b32.xlu1 %v6210_v2, %s6836_s23  ;;  %5970 = vmatpush1.bf16.msra.mxu1 %v5969_v38  ;;  %v9798_v2 = vld [vmem:[#allocation8_spill] sm:$0xff] }
 0x6fa   :  { %5971 = vmatprep.subr.bf16.mxu1 %v9797_v60 }
 0x6fb   :  { %v5717_v56 = vpop.f32.mrb[120].mxu0 }
 0x6fc   :  { %v3003_v36 = vadd.f32 %v8469_v48, %v5717_v56  ;;  %v2997_v11 = vpop.f32.mrb[121].mxu0 }
 0x6fd   :  { %v2998_v16 = vadd.f32 %v8469_v48, %v2997_v11  ;;  %v6656_v11 = vld [vmem:[#allocation2] sm:$0xff] }
 0x6ff   :  { %v6215_v33 = vpack.i.bf16 %v3003_v36, %v2998_v16  ;;  %v5972_v3 = vpack.c.bf16 %v3003_v36, %v2998_v16  ;;  %v6657_v16 = vld [vmem:[#allocation2 + $0x18] sm:$0xff] }
 0x701   :  { %6216 = vrot.lane.b32.xlu0 %v6215_v33, %s6836_s23  ;;  %5973 = vmatpush1.bf16.msra.mxu1 %v5972_v3  ;;  %v6658_v3 = vld [vmem:[#allocation2 + $0x10] sm:$0xff] }
 0x702   :  { %5974 = vmatprep.subr.bf16.mxu1 %v9797_v60 }
 0x703   :  { %v5720_v47 = vpop.f32.mrb[122].mxu0 }
 0x704   :  { %v3013_v58 = vadd.f32 %v8469_v48, %v5720_v47  ;;  %v3007_v23 = vpop.f32.mrb[123].mxu0  ;;  %v9799_v47 = vld [vmem:[#allocation9_spill] sm:$0xff] }
 0x705   :  { %v3008_v45 = vadd.f32 %v8469_v48, %v3007_v23 }
 0x707   :  { %v6220_v62 = vpack.i.bf16 %v3013_v58, %v3008_v45  ;;  %v5975_v43 = vpack.c.bf16 %v3013_v58, %v3008_v45  ;;  %v6659_v45 = vld [vmem:[#allocation2 + $0x28] sm:$0xff] }
 0x709   :  { %6221 = vrot.lane.b32.xlu1 %v6220_v62, %s6836_s23  ;;  %5976 = vmatpush1.bf16.msra.mxu1 %v5975_v43  ;;  %v9800_v62 = vld [vmem:[#allocation10_spill] sm:$0xff] }
 0x70a   :  { %5977 = vmatprep.subr.bf16.mxu1 %v9797_v60 }
 0x70b   :  { %v5723_v13 = vpop.f32.mrb[124].mxu0 }
 0x70c   :  { %v3023_v12 = vadd.f32 %v8469_v48, %v5723_v13  ;;  %v3017_v17 = vpop.f32.mrb[125].mxu0  ;;  %v6660_v13 = vld [vmem:[#allocation2 + $0x20] sm:$0xff] }
 0x70d   :  { %v3018_v18 = vadd.f32 %v8469_v48, %v3017_v17 }
 0x70f   :  { %v6225_v25 = vpack.i.bf16 %v3023_v12, %v3018_v18  ;;  %v5978_v22 = vpack.c.bf16 %v3023_v12, %v3018_v18  ;;  %v6661_v12 = vld [vmem:[#allocation2 + $0x38] sm:$0xff]  ;;  %v6662_v18 = vld [vmem:[#allocation2 + $0x30] sm:$0xff] }
 0x711   :  { %6226 = vrot.lane.b32.xlu0 %v6225_v25, %s6836_s23  ;;  %5979 = vmatpush1.bf16.msra.mxu1 %v5978_v22  ;;  %v9801_v25 = vld [vmem:[#allocation11_spill] sm:$0xff] }
 0x712   :  { %5980 = vmatprep.subr.bf16.mxu1 %v9797_v60 }
 0x714   :  { %v5726_v59 = vpop.f32.mrb[126].mxu0 }
 0x715   :  { %v3033_v35 = vadd.f32 %v8469_v48, %v5726_v59  ;;  %3770 = vrot.lane.b32.xlu0 %v8333_v9, %s6838_s4  ;;  %v3027_v31 = vpop.f32.mrb[127].mxu0 }
 0x716   :  { %v3028_v26 = vadd.f32 %v8469_v48, %v3027_v31 }
 0x718   :  { %v6230_v6 = vpack.i.bf16 %v3033_v35, %v3028_v26  ;;  %v5981_v57 = vpack.c.bf16 %v3033_v35, %v3028_v26  ;;  %v6157_v55 = vpop.permute.xlu0 %6156  ;;  %v6663_v35 = vld [vmem:[#allocation2 + $0x48] sm:$0xff]  ;;  %v6664_v26 = vld [vmem:[#allocation2 + $0x40] sm:$0xff] }
 0x719   :  { %v6159_v46 = vunpack.i.h.bf16 %v6157_v55  ;;  %v6158_v19 = vunpack.i.l.bf16 %v6157_v55  ;;  %3774 = vrot.lane.b32.xlu0 %v8346_v29, %s6838_s4 }
 0x71a   :  { %6231 = vrot.lane.b32.xlu1 %v6230_v6, %s6836_s23  ;;  %5982 = vmatpush1.bf16.msra.mxu1 %v5981_v57  ;;  %v9802_v6 = vld [vmem:[#allocation12_spill] sm:$0xff]  ;;  %v6665_v57 = vld [vmem:[#allocation2 + $0x58] sm:$0xff] }
 0x71b   :  { %v5984_v15 = vpack.c.bf16 %v6159_v46, %v6158_v19  ;;  %6055 = vmatprep.subr.bf16.mxu1 %v9798_v2  ;;  %v6666_v46 = vld [vmem:[#allocation2 + $0x50] sm:$0xff]  ;;  %v9803_v19 = vld [vmem:[#allocation13_spill] sm:$0xff] }
 0x71c   :  { %v6162_v38 = vpop.permute.xlu1 %6161 }
 0x71d   :  { %v6164_v56 = vunpack.i.h.bf16 %v6162_v38  ;;  %v6163_v36 = vunpack.i.l.bf16 %v6162_v38  ;;  %5985 = vmatpush1.bf16.msra.mxu0 %v5984_v15  ;;  %3742 = vrot.lane.b32.xlu0 %v8220_v27, %s6838_s4 }
 0x71e   :  { %3772 = vrot.lane.b32.xlu1 %v8326_v41, %s6838_s4  ;;  %5986 = vmatprep.subr.bf16.mxu0 %v9797_v60 }
 0x71f   :  { %v5987_v48 = vpack.c.bf16 %v6164_v56, %v6163_v36  ;;  %3101 = vmatmul.mubr.f32.vlgmr.msra.gmra.mrb[96].mxu1 %v6656_v11  ;;  %v6667_v56 = vld [vmem:[#allocation2 + $0x68] sm:$0xff]  ;;  %v6669_v11 = vld [vmem:[#allocation2 + $0x78] sm:$0xff] }
 0x720   :  { %3105 = vmatprep.mubr.f32.mxu1 %v6657_v16  ;;  %6061 = vmatpush3.bf16.msra.mxu1 %v9798_v2 }
 0x721   :  { %3744 = vrot.lane.b32.xlu0 %v8232_v53, %s6838_s4  ;;  %5988 = vmatpush1.bf16.msra.mxu0 %v5987_v48  ;;  %v6668_v48 = vld [vmem:[#allocation2 + $0x60] sm:$0xff] }
 0x722   :  { %3776 = vrot.lane.b32.xlu1 %v8339_v10, %s6838_s4  ;;  %5989 = vmatprep.subr.bf16.mxu0 %v9797_v60 }
 0x723   :  { %v6167_v33 = vpop.permute.xlu0 %6166  ;;  %3106 = vmatmul.mubr.f32.gmra.mrb[98].mxu1 %v6658_v3  ;;  %6056 = vmatprep.subr.bf16.mxu1 %v9799_v47 }
 0x724   :  { %v6169_v58 = vunpack.i.h.bf16 %v6167_v33  ;;  %v6168_v23 = vunpack.i.l.bf16 %v6167_v33  ;;  %3110 = vmatprep.mubr.f32.mxu1 %v6659_v45  ;;  %6062 = vmatpush3.bf16.msra.mxu1 %v9799_v47  ;;  %v6670_v33 = vld [vmem:[#allocation2 + $0x70] sm:$0xff] }
 0x725   :  { %3746 = vrot.lane.b32.xlu0 %v8240_v32, %s6838_s4  ;;  %6057 = vmatprep.subr.bf16.mxu1 %v9800_v62 }
 0x726   :  { %v5990_v43 = vpack.c.bf16 %v6169_v58, %v6168_v23  ;;  %3778 = vrot.lane.b32.xlu1 %v8359_v21, %s6838_s4  ;;  %v6671_v23 = vld [vmem:[#allocation2 + $0x88] sm:$0xff] }
 0x727   :  { %3111 = vmatmul.mubr.f32.gmra.mrb[100].mxu1 %v6660_v13  ;;  %v6673_v13 = vld [vmem:[#allocation2 + $0x98] sm:$0xff] }
 0x728   :  { %5991 = vmatpush1.bf16.msra.mxu0 %v5990_v43  ;;  %3115 = vmatprep.mubr.f32.mxu1 %v6661_v12  ;;  %v6672_v43 = vld [vmem:[#allocation2 + $0x80] sm:$0xff] }
 0x729   :  { %3748 = vrot.lane.b32.xlu0 %v8245_v28, %s6838_s4  ;;  %5992 = vmatprep.subr.bf16.mxu0 %v9797_v60 }
 0x72a   :  { %3780 = vrot.lane.b32.xlu1 %v8352_v30, %s6838_s4  ;;  %6063 = vmatpush3.bf16.msra.mxu1 %v9800_v62 }
 0x72b   :  { %v6172_v17 = vpop.permute.xlu1 %6171  ;;  %3116 = vmatmul.mubr.f32.gmra.mrb[102].mxu1 %v6662_v18  ;;  %6058 = vmatprep.subr.bf16.mxu1 %v9801_v25 }
 0x72c   :  { %v6174_v22 = vunpack.i.h.bf16 %v6172_v17  ;;  %v6173_v59 = vunpack.i.l.bf16 %v6172_v17  ;;  %3120 = vmatprep.mubr.f32.mxu1 %v6663_v35  ;;  %v6674_v17 = vld [vmem:[#allocation2 + $0x90] sm:$0xff] }
 0x72d   :  { %3750 = vrot.lane.b32.xlu0 %v8258_v51, %s6838_s4 }
 0x72e   :  { %v5993_v31 = vpack.c.bf16 %v6174_v22, %v6173_v59  ;;  %3782 = vrot.lane.b32.xlu1 %v8371_v8, %s6838_s4  ;;  %6064 = vmatpush3.bf16.msra.mxu1 %v9801_v25  ;;  %v6675_v59 = vld [vmem:[#allocation2 + $0xa8] sm:$0xff] }
 0x72f   :  { %3121 = vmatmul.mubr.f32.gmra.mrb[104].mxu1 %v6664_v26  ;;  %6059 = vmatprep.subr.bf16.mxu1 %v9802_v6  ;;  %v6677_v26 = vld [vmem:[#allocation2 + $0xb8] sm:$0xff] }
 0x730   :  { %5994 = vmatpush1.bf16.msra.mxu0 %v5993_v31  ;;  %3125 = vmatprep.mubr.f32.mxu1 %v6665_v57  ;;  %v6676_v31 = vld [vmem:[#allocation2 + $0xa0] sm:$0xff] }
 0x731   :  { %3752 = vrot.lane.b32.xlu0 %v8255_v7, %s6838_s4  ;;  %5995 = vmatprep.subr.bf16.mxu0 %v9797_v60 }
 0x732   :  { %3784 = vrot.lane.b32.xlu1 %v8365_v1, %s6838_s4  ;;  %6065 = vmatpush3.bf16.msra.mxu1 %v9802_v6 }
 0x733   :  { %v6177_v55 = vpop.permute.xlu0 %6176  ;;  %3126 = vmatmul.mubr.f32.gmra.mrb[106].mxu1 %v6666_v46  ;;  %6060 = vmatprep.subr.bf16.mxu1 %v9803_v19 }
 0x734   :  { %v6179_v15 = vunpack.i.h.bf16 %v6177_v55  ;;  %v6178_v38 = vunpack.i.l.bf16 %v6177_v55  ;;  %3130 = vmatprep.mubr.f32.mxu1 %v6667_v56  ;;  %v6678_v55 = vld [vmem:[#allocation2 + $0xb0] sm:$0xff] }
 0x735   :  { %3754 = vrot.lane.b32.xlu0 %v8276_v4, %s6838_s4 }
 0x736   :  { %v5996_v36 = vpack.c.bf16 %v6179_v15, %v6178_v38  ;;  %3786 = vrot.lane.b32.xlu1 %v8383_v0, %s6838_s4  ;;  %6066 = vmatpush3.bf16.msra.mxu1 %v9803_v19  ;;  %v6679_v38 = vld [vmem:[#allocation2 + $0xc8] sm:$0xff] }
 0x737   :  { %3131 = vmatmul.mubr.f32.gmra.mrb[108].mxu1 %v6668_v48  ;;  %v6681_v48 = vld [vmem:[#allocation2 + $0xd8] sm:$0xff] }
 0x738   :  { %5997 = vmatpush1.bf16.msra.mxu0 %v5996_v36  ;;  %3135 = vmatprep.mubr.f32.mxu1 %v6669_v11  ;;  %v6680_v36 = vld [vmem:[#allocation2 + $0xc0] sm:$0xff] }
 0x739   :  { %3756 = vrot.lane.b32.xlu0 %v8269_v5, %s6838_s4  ;;  %5998 = vmatprep.subr.bf16.mxu0 %v9797_v60 }
 0x73a   :  { %3788 = vrot.lane.b32.xlu1 %v8377_v37, %s6838_s4 }
 0x73b   :  { %v6182_v16 = vpop.permute.xlu1 %6181  ;;  %3136 = vmatmul.mubr.f32.gmra.mrb[110].mxu1 %v6670_v33 }
 0x73c   :  { %v6184_v3 = vunpack.i.h.bf16 %v6182_v16  ;;  %v6183_v58 = vunpack.i.l.bf16 %v6182_v16  ;;  %3140 = vmatprep.mubr.f32.mxu1 %v6671_v23  ;;  %v6682_v16 = vld [vmem:[#allocation2 + $0xd0] sm:$0xff] }
 0x73d   :  { %3758 = vrot.lane.b32.xlu0 %v8292_v39, %s6838_s4 }
 0x73e   :  { %v5999_v45 = vpack.c.bf16 %v6184_v3, %v6183_v58  ;;  %3790 = vrot.lane.b32.xlu1 %v8395_v42, %s6838_s4  ;;  %v6683_v58 = vld [vmem:[#allocation2 + $0xe8] sm:$0xff] }
 0x73f   :  { %3141 = vmatmul.mubr.f32.gmra.mrb[112].mxu1 %v6672_v43  ;;  %v6685_v43 = vld [vmem:[#allocation2 + $0xf8] sm:$0xff] }
 0x740   :  { %6000 = vmatpush1.bf16.msra.mxu0 %v5999_v45  ;;  %3145 = vmatprep.mubr.f32.mxu1 %v6673_v13  ;;  %v6684_v45 = vld [vmem:[#allocation2 + $0xe0] sm:$0xff] }
 0x741   :  { %3760 = vrot.lane.b32.xlu0 %v8283_v40, %s6838_s4  ;;  %6001 = vmatprep.subr.bf16.mxu0 %v9797_v60 }
 0x742   :  { %3792 = vrot.lane.b32.xlu1 %v8389_v44, %s6838_s4 }
 0x743   :  { %v6187_v12 = vpop.permute.xlu0 %6186  ;;  %3146 = vmatmul.mubr.f32.gmra.mrb[114].mxu1 %v6674_v17 }
 0x744   :  { %v6189_v18 = vunpack.i.h.bf16 %v6187_v12  ;;  %v6188_v22 = vunpack.i.l.bf16 %v6187_v12  ;;  %3150 = vmatprep.mubr.f32.mxu1 %v6675_v59  ;;  %v6686_v12 = vld [vmem:[#allocation2 + $0xf0] sm:$0xff] }
 0x746   :  { %v6002_v35 = vpack.c.bf16 %v6189_v18, %v6188_v22  ;;  %3794 = vrot.lane.b32.xlu1 %v8407_v34, %s6838_s4  ;;  %v6687_v22 = vld [vmem:[#allocation2 + $0x108] sm:$0xff] }
 0x747   :  { %3151 = vmatmul.mubr.f32.gmra.mrb[116].mxu1 %v6676_v31  ;;  %v6689_v31 = vld [vmem:[#allocation2 + $0x118] sm:$0xff] }
 0x748   :  { %6003 = vmatpush1.bf16.msra.mxu0 %v6002_v35  ;;  %3155 = vmatprep.mubr.f32.mxu1 %v6677_v26  ;;  %v6688_v35 = vld [vmem:[#allocation2 + $0x100] sm:$0xff] }
 0x749   :  { %6004 = vmatprep.subr.bf16.mxu0 %v9797_v60 }
 0x74a   :  { %3796 = vrot.lane.b32.xlu1 %v8401_v20, %s6838_s4 }
 0x74b   :  { %v6192_v57 = vpop.permute.xlu1 %6191  ;;  %3156 = vmatmul.mubr.f32.gmra.mrb[118].mxu1 %v6678_v55 }
 0x74c   :  { %v6194_v46 = vunpack.i.h.bf16 %v6192_v57  ;;  %v6193_v15 = vunpack.i.l.bf16 %v6192_v57  ;;  %3160 = vmatprep.mubr.f32.mxu1 %v6679_v38  ;;  %v6690_v57 = vld [vmem:[#allocation2 + $0x110] sm:$0xff] }
 0x74e   :  { %v6005_v56 = vpack.c.bf16 %v6194_v46, %v6193_v15  ;;  %v6691_v15 = vld [vmem:[#allocation2 + $0x128] sm:$0xff] }
 0x74f   :  { %3161 = vmatmul.mubr.f32.gmra.mrb[120].mxu1 %v6680_v36  ;;  %v6693_v36 = vld [vmem:[#allocation2 + $0x138] sm:$0xff] }
 0x750   :  { %6006 = vmatpush1.bf16.msra.mxu0 %v6005_v56  ;;  %3165 = vmatprep.mubr.f32.mxu1 %v6681_v48  ;;  %v6692_v56 = vld [vmem:[#allocation2 + $0x120] sm:$0xff] }
 0x751   :  { %6007 = vmatprep.subr.bf16.mxu0 %v9797_v60 }
 0x753   :  { %v6197_v11 = vpop.permute.xlu0 %6196  ;;  %3166 = vmatmul.mubr.f32.gmra.mrb[122].mxu1 %v6682_v16 }
 0x754   :  { %v6199_v33 = vunpack.i.h.bf16 %v6197_v11  ;;  %v6198_v3 = vunpack.i.l.bf16 %v6197_v11  ;;  %3170 = vmatprep.mubr.f32.mxu1 %v6683_v58  ;;  %v6694_v11 = vld [vmem:[#allocation2 + $0x130] sm:$0xff] }
 0x756   :  { %v6008_v23 = vpack.c.bf16 %v6199_v33, %v6198_v3  ;;  %v6695_v3 = vld [vmem:[#allocation2 + $0x148] sm:$0xff] }
 0x757   :  { %3171 = vmatmul.mubr.f32.gmra.mrb[124].mxu1 %v6684_v45  ;;  %v6697_v45 = vld [vmem:[#allocation2 + $0x158] sm:$0xff] }
 0x758   :  { %6009 = vmatpush1.bf16.msra.mxu0 %v6008_v23  ;;  %3175 = vmatprep.mubr.f32.mxu1 %v6685_v43  ;;  %v6696_v23 = vld [vmem:[#allocation2 + $0x140] sm:$0xff] }
 0x759   :  { %6010 = vmatprep.subr.bf16.mxu0 %v9797_v60 }
 0x75b   :  { %v6202_v13 = vpop.permute.xlu1 %6201  ;;  %3176 = vmatmul.mubr.f32.gmra.mrb[126].mxu1 %v6686_v12 }
 0x75c   :  { %v6204_v17 = vunpack.i.h.bf16 %v6202_v13  ;;  %v6203_v18 = vunpack.i.l.bf16 %v6202_v13  ;;  %3180 = vmatprep.mubr.f32.mxu1 %v6687_v22  ;;  %v6698_v13 = vld [vmem:[#allocation2 + $0x150] sm:$0xff] }
 0x75e   :  { %v6011_v59 = vpack.c.bf16 %v6204_v17, %v6203_v18  ;;  %v6699_v18 = vld [vmem:[#allocation2 + $0x168] sm:$0xff] }
 0x75f   :  { %3181 = vmatmul.mubr.f32.gmra.mrb[128].mxu1 %v6688_v35  ;;  %v6701_v35 = vld [vmem:[#allocation2 + $0x178] sm:$0xff] }
 0x760   :  { %6012 = vmatpush1.bf16.msra.mxu0 %v6011_v59  ;;  %3185 = vmatprep.mubr.f32.mxu1 %v6689_v31  ;;  %v6700_v59 = vld [vmem:[#allocation2 + $0x160] sm:$0xff] }
 0x761   :  { %6013 = vmatprep.subr.bf16.mxu0 %v9797_v60 }
 0x763   :  { %v6207_v26 = vpop.permute.xlu0 %6206  ;;  %3186 = vmatmul.mubr.f32.gmra.mrb[130].mxu1 %v6690_v57 }
 0x764   :  { %v6209_v55 = vunpack.i.h.bf16 %v6207_v26  ;;  %v6208_v46 = vunpack.i.l.bf16 %v6207_v26  ;;  %3190 = vmatprep.mubr.f32.mxu1 %v6691_v15  ;;  %v6702_v26 = vld [vmem:[#allocation2 + $0x170] sm:$0xff] }
 0x766   :  { %v6014_v38 = vpack.c.bf16 %v6209_v55, %v6208_v46  ;;  %v6703_v46 = vld [vmem:[#allocation2 + $0x188] sm:$0xff] }
 0x767   :  { %3191 = vmatmul.mubr.f32.gmra.mrb[132].mxu1 %v6692_v56  ;;  %v6705_v56 = vld [vmem:[#allocation2 + $0x198] sm:$0xff] }
 0x768   :  { %6015 = vmatpush1.bf16.msra.mxu0 %v6014_v38  ;;  %3195 = vmatprep.mubr.f32.mxu1 %v6693_v36  ;;  %v6704_v38 = vld [vmem:[#allocation2 + $0x180] sm:$0xff] }
 0x769   :  { %6016 = vmatprep.subr.bf16.mxu0 %v9797_v60 }
 0x76b   :  { %v6212_v48 = vpop.permute.xlu1 %6211  ;;  %3196 = vmatmul.mubr.f32.gmra.mrb[134].mxu1 %v6694_v11 }
 0x76c   :  { %v6214_v16 = vunpack.i.h.bf16 %v6212_v48  ;;  %v6213_v33 = vunpack.i.l.bf16 %v6212_v48  ;;  %3200 = vmatprep.mubr.f32.mxu1 %v6695_v3  ;;  %v6706_v48 = vld [vmem:[#allocation2 + $0x190] sm:$0xff] }
 0x76e   :  { %v6017_v58 = vpack.c.bf16 %v6214_v16, %v6213_v33  ;;  %v6707_v33 = vld [vmem:[#allocation2 + $0x1a8] sm:$0xff] }
 0x76f   :  { %3201 = vmatmul.mubr.f32.gmra.mrb[136].mxu1 %v6696_v23  ;;  %v6709_v23 = vld [vmem:[#allocation2 + $0x1b8] sm:$0xff] }
 0x770   :  { %6018 = vmatpush1.bf16.msra.mxu0 %v6017_v58  ;;  %3205 = vmatprep.mubr.f32.mxu1 %v6697_v45  ;;  %v6708_v58 = vld [vmem:[#allocation2 + $0x1a0] sm:$0xff]  ;;  %v6710_v45 = vld [vmem:[#allocation2 + $0x1b0] sm:$0xff] }
 0x771   :  { %6019 = vmatprep.subr.bf16.mxu0 %v9797_v60 }
 0x773   :  { %v6217_v43 = vpop.permute.xlu0 %6216  ;;  %3206 = vmatmul.mubr.f32.gmra.mrb[138].mxu1 %v6698_v13  ;;  %v6711_v13 = vld [vmem:[#allocation2 + $0x1c8] sm:$0xff] }
 0x774   :  { %v6219_v12 = vunpack.i.h.bf16 %v6217_v43  ;;  %v6218_v17 = vunpack.i.l.bf16 %v6217_v43  ;;  %3210 = vmatprep.mubr.f32.mxu1 %v6699_v18 }
 0x776   :  { %v6020_v22 = vpack.c.bf16 %v6219_v12, %v6218_v17 }
 0x777   :  { %3211 = vmatmul.mubr.f32.gmra.mrb[140].mxu1 %v6700_v59  ;;  %v6713_v59 = vld [vmem:[#allocation2 + $0x1d8] sm:$0xff] }
 0x778   :  { %6021 = vmatpush1.bf16.msra.mxu0 %v6020_v22  ;;  %3215 = vmatprep.mubr.f32.mxu1 %v6701_v35  ;;  %v6712_v22 = vld [vmem:[#allocation2 + $0x1c0] sm:$0xff]  ;;  %v6714_v35 = vld [vmem:[#allocation2 + $0x1d0] sm:$0xff] }
 0x779   :  { %6022 = vmatprep.subr.bf16.mxu0 %v9797_v60 }
 0x77b   :  { %v6222_v31 = vpop.permute.xlu1 %6221  ;;  %3216 = vmatmul.mubr.f32.gmra.mrb[142].mxu1 %v6702_v26  ;;  %v6717_v26 = vld [vmem:[#allocation4 + $0x18] sm:$0xff] }
 0x77c   :  { %v6224_v57 = vunpack.i.h.bf16 %v6222_v31  ;;  %v6223_v55 = vunpack.i.l.bf16 %v6222_v31  ;;  %3220 = vmatprep.mubr.f32.mxu1 %v6703_v46  ;;  %v6715_v31 = vld [vmem:[#allocation4] sm:$0xff]  ;;  %v6720_v46 = vld [vmem:[#allocation2 + $0x1f8] sm:$0xff] }
 0x77e   :  { %v6023_v15 = vpack.c.bf16 %v6224_v57, %v6223_v55  ;;  %v6718_v57 = vld [vmem:[#allocation2 + $0x1e0] sm:$0xff]  ;;  %v6719_v55 = vld [vmem:[#allocation4 + $0x10] sm:$0xff] }
 0x77f   :  { %3221 = vmatmul.mubr.f32.gmra.mrb[144].mxu1 %v6704_v38  ;;  %v6722_v38 = vld [vmem:[#allocation2 + $0x1f0] sm:$0xff] }
 0x780   :  { %6024 = vmatpush1.bf16.msra.mxu0 %v6023_v15  ;;  %3225 = vmatprep.mubr.f32.mxu1 %v6705_v56  ;;  %v6721_v15 = vld [vmem:[#allocation4 + $0x28] sm:$0xff]  ;;  %v6723_v56 = vld [vmem:[#allocation4 + $0x20] sm:$0xff] }
 0x781   :  { %6025 = vmatprep.subr.bf16.mxu0 %v9797_v60 }
 0x783   :  { %v6227_v36 = vpop.permute.xlu0 %6226  ;;  %3226 = vmatmul.mubr.f32.gmra.mrb[146].mxu1 %v6706_v48  ;;  %v6726_v48 = vld [vmem:[#allocation4 + $0x48] sm:$0xff] }
 0x784   :  { %v6229_v11 = vunpack.i.h.bf16 %v6227_v36  ;;  %v6228_v16 = vunpack.i.l.bf16 %v6227_v36  ;;  %3230 = vmatprep.mubr.f32.mxu1 %v6707_v33  ;;  %v6724_v36 = vld [vmem:[#allocation4 + $0x38] sm:$0xff]  ;;  %v6731_v33 = vld [vmem:[#allocation4 + $0x60] sm:$0xff] }
 0x786   :  { %v6026_v3 = vpack.c.bf16 %v6229_v11, %v6228_v16  ;;  %v6728_v11 = vld [vmem:[#allocation4 + $0x58] sm:$0xff]  ;;  %v6729_v16 = vld [vmem:[#allocation4 + $0x50] sm:$0xff] }
 0x787   :  { %3231 = vmatmul.mubr.f32.gmra.mrb[148].mxu1 %v6708_v58  ;;  %v6734_v58 = vld [vmem:[#allocation4 + $0x88] sm:$0xff] }
 0x788   :  { %6027 = vmatpush1.bf16.msra.mxu0 %v6026_v3  ;;  %3235 = vmatprep.mubr.f32.mxu1 %v6709_v23  ;;  %v6732_v3 = vld [vmem:[#allocation4 + $0x78] sm:$0xff]  ;;  %v6735_v23 = vld [vmem:[#allocation4 + $0x80] sm:$0xff] }
 0x789   :  { %6028 = vmatprep.subr.bf16.mxu0 %v9797_v60  ;;  %v6716_v60 = vld [vmem:[#allocation2 + $0x1e8] sm:$0xff] }
 0x78b   :  { %3236 = vmatmul.mubr.f32.gmra.mrb[150].mxu1 %v6710_v45  ;;  %v6736_v45 = vld [vmem:[#allocation4 + $0x98] sm:$0xff] }
 0x78c   :  { %v6232_v43 = vpop.permute.xlu1 %6231  ;;  %3240 = vmatprep.mubr.f32.mxu1 %v6711_v13  ;;  %v6739_v13 = vld [vmem:[#allocation4 + $0xa0] sm:$0xff] }
 0x78d   :  { %v6234_v12 = vunpack.i.h.bf16 %v6232_v43  ;;  %v6233_v17 = vunpack.i.l.bf16 %v6232_v43  ;;  %v6738_v43 = vld [vmem:[#allocation4 + $0xa8] sm:$0xff] }
 0x78f   :  { %v6029_v18 = vpack.c.bf16 %v6234_v12, %v6233_v17  ;;  %3241 = vmatmul.mubr.f32.gmra.mrb[152].mxu1 %v6712_v22  ;;  %v6740_v12 = vld [vmem:[#allocation4 + $0xb8] sm:$0xff]  ;;  %v6742_v17 = vld [vmem:[#allocation4 + $0xc8] sm:$0xff] }
 0x790   :  { %3245 = vmatprep.mubr.f32.mxu1 %v6713_v59  ;;  %v6744_v22 = vld [vmem:[#allocation4 + $0xd8] sm:$0xff]  ;;  %v6745_v59 = vld [vmem:[#allocation4 + $0xd0] sm:$0xff] }
 0x791   :  { %6030 = vmatpush1.bf16.msra.mxu0 %v6029_v18  ;;  %v6743_v18 = vld [vmem:[#allocation4 + $0xc0] sm:$0xff] }
 0x792   :  { %6032 = vmatprep.subr.bf16.mxu0 %v9798_v2 }
 0x793   :  { %3246 = vmatmul.mubr.f32.gmra.mrb[154].mxu1 %v6714_v35  ;;  %v6746_v35 = vld [vmem:[#allocation4 + $0xe8] sm:$0xff] }
 0x794   :  { %3454 = vmatmul.mubr.f32.vlgmr.msra.gmra.mrb[128].mxu0 %v6715_v31  ;;  %3250 = vmatprep.mubr.f32.mxu1 %v6716_v60  ;;  %v6747_v31 = vld [vmem:[#allocation4 + $0xe0] sm:$0xff]  ;;  %v6748_v60 = vld [vmem:[#allocation4 + $0xf8] sm:$0xff] }
 0x795   :  { %3458 = vmatprep.mubr.f32.mxu0 %v6717_v26  ;;  %6034 = vmatpush3.bf16.msra.mxu0 %v9798_v2  ;;  %v6725_v2 = vld [vmem:[#allocation4 + $0x30] sm:$0xff] }
 0x796   :  { %6036 = vmatprep.subr.bf16.mxu0 %v9799_v47  ;;  %v6749_v26 = vld [vmem:[#allocation4 + $0xf0] sm:$0xff] }
 0x797   :  { %3251 = vmatmul.mubr.f32.gmra.mrb[156].mxu1 %v6718_v57  ;;  %v6750_v57 = vld [vmem:[#allocation4 + $0x108] sm:$0xff] }
 0x798   :  { %3459 = vmatmul.mubr.f32.gmra.mrb[130].mxu0 %v6719_v55  ;;  %3255 = vmatprep.mubr.f32.mxu1 %v6720_v46  ;;  %v6751_v55 = vld [vmem:[#allocation4 + $0x100] sm:$0xff]  ;;  %v6752_v46 = vld [vmem:[#allocation4 + $0x118] sm:$0xff] }
 0x799   :  { %3463 = vmatprep.mubr.f32.mxu0 %v6721_v15  ;;  %6038 = vmatpush3.bf16.msra.mxu0 %v9799_v47  ;;  %v6727_v47 = vld [vmem:[#allocation4 + $0x40] sm:$0xff]  ;;  %v6753_v15 = vld [vmem:[#allocation4 + $0x110] sm:$0xff] }
 0x79a   :  { %6040 = vmatprep.subr.bf16.mxu0 %v9800_v62 }
 0x79b   :  { %3256 = vmatmul.mubr.f32.gmra.mrb[158].mxu1 %v6722_v38  ;;  %v6754_v38 = vld [vmem:[#allocation4 + $0x128] sm:$0xff] }
 0x79c   :  { %3464 = vmatmul.mubr.f32.gmra.mrb[132].mxu0 %v6723_v56  ;;  %v6755_v56 = vld [vmem:[#allocation4 + $0x120] sm:$0xff] }
 0x79d   :  { %3468 = vmatprep.mubr.f32.mxu0 %v6724_v36  ;;  %6042 = vmatpush3.bf16.msra.mxu0 %v9800_v62  ;;  %v6730_v62 = vld [vmem:[#allocation4 + $0x68] sm:$0xff]  ;;  %v6756_v36 = vld [vmem:[#allocation4 + $0x138] sm:$0xff] }
 0x79e   :  { %6044 = vmatprep.subr.bf16.mxu0 %v9801_v25 }
 0x7a0   :  { %3469 = vmatmul.mubr.f32.gmra.mrb[134].mxu0 %v6725_v2  ;;  %v6757_v2 = vld [vmem:[#allocation4 + $0x130] sm:$0xff] }
 0x7a1   :  { %3473 = vmatprep.mubr.f32.mxu0 %v6726_v48  ;;  %6046 = vmatpush3.bf16.msra.mxu0 %v9801_v25  ;;  %v6733_v25 = vld [vmem:[#allocation4 + $0x70] sm:$0xff]  ;;  %v6758_v48 = vld [vmem:[#allocation4 + $0x148] sm:$0xff] }
 0x7a2   :  { %6048 = vmatprep.subr.bf16.mxu0 %v9802_v6 }
 0x7a4   :  { %3474 = vmatmul.mubr.f32.gmra.mrb[136].mxu0 %v6727_v47  ;;  %v6759_v47 = vld [vmem:[#allocation4 + $0x140] sm:$0xff] }
 0x7a5   :  { %3478 = vmatprep.mubr.f32.mxu0 %v6728_v11  ;;  %6050 = vmatpush3.bf16.msra.mxu0 %v9802_v6  ;;  %v6737_v6 = vld [vmem:[#allocation4 + $0x90] sm:$0xff]  ;;  %v6760_v11 = vld [vmem:[#allocation4 + $0x158] sm:$0xff] }
 0x7a6   :  { %6052 = vmatprep.subr.bf16.mxu0 %v9803_v19 }
 0x7a8   :  { %3479 = vmatmul.mubr.f32.gmra.mrb[138].mxu0 %v6729_v16  ;;  %v6761_v16 = vld [vmem:[#allocation4 + $0x150] sm:$0xff] }
 0x7a9   :  { %3483 = vmatprep.mubr.f32.mxu0 %v6730_v62  ;;  %6054 = vmatpush3.bf16.msra.mxu0 %v9803_v19  ;;  %v6741_v19 = vld [vmem:[#allocation4 + $0xb0] sm:$0xff]  ;;  %v6762_v62 = vld [vmem:[#allocation4 + $0x168] sm:$0xff] }
 0x7ac   :  { %3484 = vmatmul.mubr.f32.gmra.mrb[140].mxu0 %v6731_v33  ;;  %v6763_v33 = vld [vmem:[#allocation4 + $0x160] sm:$0xff] }
 0x7ad   :  { %3488 = vmatprep.mubr.f32.mxu0 %v6732_v3  ;;  %v6764_v3 = vld [vmem:[#allocation4 + $0x178] sm:$0xff] }
 0x7b0   :  { %3489 = vmatmul.mubr.f32.gmra.mrb[142].mxu0 %v6733_v25  ;;  %v6765_v25 = vld [vmem:[#allocation4 + $0x170] sm:$0xff] }
 0x7b1   :  { %3493 = vmatprep.mubr.f32.mxu0 %v6734_v58  ;;  %v6766_v58 = vld [vmem:[#allocation4 + $0x188] sm:$0xff] }
 0x7b4   :  { %3494 = vmatmul.mubr.f32.gmra.mrb[144].mxu0 %v6735_v23  ;;  %v6767_v23 = vld [vmem:[#allocation4 + $0x180] sm:$0xff] }
 0x7b5   :  { %3498 = vmatprep.mubr.f32.mxu0 %v6736_v45  ;;  %v6768_v45 = vld [vmem:[#allocation4 + $0x198] sm:$0xff] }
 0x7b8   :  { %3499 = vmatmul.mubr.f32.gmra.mrb[146].mxu0 %v6737_v6  ;;  %v6769_v6 = vld [vmem:[#allocation4 + $0x190] sm:$0xff] }
 0x7b9   :  { %3503 = vmatprep.mubr.f32.mxu0 %v6738_v43  ;;  %v6770_v43 = vld [vmem:[#allocation4 + $0x1a8] sm:$0xff] }
 0x7bc   :  { %3504 = vmatmul.mubr.f32.gmra.mrb[148].mxu0 %v6739_v13  ;;  %v6771_v13 = vld [vmem:[#allocation4 + $0x1a0] sm:$0xff] }
 0x7bd   :  { %3508 = vmatprep.mubr.f32.mxu0 %v6740_v12  ;;  %v6772_v12 = vld [vmem:[#allocation4 + $0x1b8] sm:$0xff] }
 0x7c0   :  { %3509 = vmatmul.mubr.f32.gmra.mrb[150].mxu0 %v6741_v19  ;;  %v6773_v19 = vld [vmem:[#allocation4 + $0x1b0] sm:$0xff] }
 0x7c1   :  { %3513 = vmatprep.mubr.f32.mxu0 %v6742_v17  ;;  %v6774_v17 = vld [vmem:[#allocation4 + $0x1c8] sm:$0xff] }
 0x7c4   :  { %3514 = vmatmul.mubr.f32.gmra.mrb[152].mxu0 %v6743_v18  ;;  %v6775_v18 = vld [vmem:[#allocation4 + $0x1c0] sm:$0xff] }
 0x7c5   :  { %3518 = vmatprep.mubr.f32.mxu0 %v6744_v22  ;;  %v6776_v22 = vld [vmem:[#allocation4 + $0x1d8] sm:$0xff] }
 0x7c8   :  { %3519 = vmatmul.mubr.f32.gmra.mrb[154].mxu0 %v6745_v59  ;;  %v6777_v59 = vld [vmem:[#allocation4 + $0x1d0] sm:$0xff] }
 0x7c9   :  { %3523 = vmatprep.mubr.f32.mxu0 %v6746_v35  ;;  %v6778_v35 = vld [vmem:[#allocation4 + $0x1e8] sm:$0xff] }
 0x7cc   :  { %3524 = vmatmul.mubr.f32.gmra.mrb[156].mxu0 %v6747_v31  ;;  %v6779_v31 = vld [vmem:[#allocation4 + $0x1e0] sm:$0xff] }
 0x7cd   :  { %3528 = vmatprep.mubr.f32.mxu0 %v6748_v60  ;;  %v6780_v60 = vld [vmem:[#allocation4 + $0x1f8] sm:$0xff] }
 0x7d0   :  { %3529 = vmatmul.mubr.f32.gmra.mrb[158].mxu0 %v6749_v26  ;;  %v6781_v26 = vld [vmem:[#allocation4 + $0x1f0] sm:$0xff] }
 0x7d1   :  { %3533 = vmatprep.mubr.f32.mxu0 %v6750_v57 }
 0x7d4   :  { %3534 = vmatmul.mubr.f32.gmra.mrb[160].mxu0 %v6751_v55 }
 0x7d5   :  { %3538 = vmatprep.mubr.f32.mxu0 %v6752_v46 }
 0x7d8   :  { %3539 = vmatmul.mubr.f32.gmra.mrb[162].mxu0 %v6753_v15 }
 0x7d9   :  { %3543 = vmatprep.mubr.f32.mxu0 %v6754_v38 }
 0x7dc   :  { %3544 = vmatmul.mubr.f32.gmra.mrb[164].mxu0 %v6755_v56 }
 0x7dd   :  { %3548 = vmatprep.mubr.f32.mxu0 %v6756_v36 }
 0x7e0   :  { %3549 = vmatmul.mubr.f32.gmra.mrb[166].mxu0 %v6757_v2 }
 0x7e1   :  { %3553 = vmatprep.mubr.f32.mxu0 %v6758_v48 }
 0x7e4   :  { %3554 = vmatmul.mubr.f32.gmra.mrb[168].mxu0 %v6759_v47 }
 0x7e5   :  { %3558 = vmatprep.mubr.f32.mxu0 %v6760_v11 }
 0x7e8   :  { %3559 = vmatmul.mubr.f32.gmra.mrb[170].mxu0 %v6761_v16 }
 0x7e9   :  { %3563 = vmatprep.mubr.f32.mxu0 %v6762_v62 }
 0x7ec   :  { %3564 = vmatmul.mubr.f32.gmra.mrb[172].mxu0 %v6763_v33 }
 0x7ed   :  { %3568 = vmatprep.mubr.f32.mxu0 %v6764_v3 }
 0x7f0   :  { %3569 = vmatmul.mubr.f32.gmra.mrb[174].mxu0 %v6765_v25 }
 0x7f1   :  { %3573 = vmatprep.mubr.f32.mxu0 %v6766_v58 }
 0x7f2   :  { %v8621_v57 = vpop.f32.mrb[96].mxu1 }
 0x7f3   :  { %v3104_v55 = vpop.f32.mrb[97].mxu1 }
 0x7f4   :  { %3574 = vmatmul.mubr.f32.gmra.mrb[176].mxu0 %v6767_v23 }
 0x7f5   :  { %3578 = vmatprep.mubr.f32.mxu0 %v6768_v45 }
 0x7f6   :  { %v8623_v46 = vpop.f32.mrb[98].mxu1 }
 0x7f7   :  { %v3109_v15 = vpop.f32.mrb[99].mxu1 }
 0x7f8   :  { %3579 = vmatmul.mubr.f32.gmra.mrb[178].mxu0 %v6769_v6 }
 0x7f9   :  { %3583 = vmatprep.mubr.f32.mxu0 %v6770_v43 }
 0x7fa   :  { %v8625_v38 = vpop.f32.mrb[100].mxu1 }
 0x7fb   :  { %v3114_v56 = vpop.f32.mrb[101].mxu1 }
 0x7fc   :  { %3584 = vmatmul.mubr.f32.gmra.mrb[180].mxu0 %v6771_v13 }
 0x7fd   :  { %3588 = vmatprep.mubr.f32.mxu0 %v6772_v12 }
 0x7fe   :  { %v8627_v36 = vpop.f32.mrb[102].mxu1 }
 0x7ff   :  { %v3119_v2 = vpop.f32.mrb[103].mxu1 }
 0x800   :  { %3589 = vmatmul.mubr.f32.gmra.mrb[182].mxu0 %v6773_v19 }
 0x801   :  { %3593 = vmatprep.mubr.f32.mxu0 %v6774_v17 }
 0x802   :  { %v8630_v11 = vpop.f32.mrb[104].mxu1 }
 0x803   :  { %v3124_v16 = vpop.f32.mrb[105].mxu1 }
 0x804   :  { %3594 = vmatmul.mubr.f32.gmra.mrb[184].mxu0 %v6775_v18 }
 0x805   :  { %3598 = vmatprep.mubr.f32.mxu0 %v6776_v22 }
 0x806   :  { %v8633_v3 = vpop.f32.mrb[106].mxu1 }
 0x807   :  { %v3129_v25 = vpop.f32.mrb[107].mxu1 }
 0x808   :  { %3599 = vmatmul.mubr.f32.gmra.mrb[186].mxu0 %v6777_v59 }
 0x809   :  { %3603 = vmatprep.mubr.f32.mxu0 %v6778_v35 }
 0x80a   :  { %v8636_v45 = vpop.f32.mrb[108].mxu1 }
 0x80b   :  { %v3134_v6 = vpop.f32.mrb[109].mxu1 }
 0x80c   :  { %3604 = vmatmul.mubr.f32.gmra.mrb[188].mxu0 %v6779_v31 }
 0x80d   :  { %3608 = vmatprep.mubr.f32.mxu0 %v6780_v60 }
 0x80e   :  { %v8639_v12 = vpop.f32.mrb[110].mxu1 }
 0x80f   :  { %v3139_v19 = vpop.f32.mrb[111].mxu1 }
 0x810   :  { %3609 = vmatmul.mubr.f32.gmra.mrb[190].mxu0 %v6781_v26 }
 0x812   :  { %v8642_v22 = vpop.f32.mrb[112].mxu1 }
 0x813   :  { %v3144_v59 = vpop.f32.mrb[113].mxu1 }
 0x816   :  { %v8645_v60 = vpop.f32.mrb[114].mxu1 }
 0x817   :  { %v3149_v26 = vpop.f32.mrb[115].mxu1 }
 0x818   :  { %v8661_v26 = vpop.permute.xlu0 %3770 }
 0x81a   :  { %v8648_v56 = vpop.f32.mrb[116].mxu1 }
 0x81b   :  { %v3154_v2 = vpop.f32.mrb[117].mxu1 }
 0x867   :  { %v3455_v48 = vpop.f32.mrb[128].mxu0 }
 0x868   :  { %3646 = vrot.lane.b32.xlu0 %v3455_v48, %s6838_s4  ;;  %v3457_v47 = vpop.f32.mrb[129].mxu0 }
 0x869   :  { %v8650_v47 = vpop.f32.mrb[118].mxu1 }
 0x86b   :  { %v3460_v62 = vpop.f32.mrb[130].mxu0 }
 0x86c   :  { %3648 = vrot.lane.b32.xlu0 %v3460_v62, %s6838_s4  ;;  %v3462_v33 = vpop.f32.mrb[131].mxu0  ;;  %v3159_v62 = vpop.f32.mrb[119].mxu1 }
 0x86d   :  { %v8653_v33 = vpop.f32.mrb[120].mxu1 }
 0x86e   :  { %v3164_v25 = vpop.f32.mrb[121].mxu1 }
 0x86f   :  { %v3465_v58 = vpop.f32.mrb[132].mxu0  ;;  %v8667_v25 = vpop.permute.xlu0 %3774 }
 0x870   :  { %3650 = vrot.lane.b32.xlu0 %v3465_v58, %s6838_s4  ;;  %v3467_v23 = vpop.f32.mrb[133].mxu0 }
 0x871   :  { %v8655_v23 = vpop.f32.mrb[122].mxu1 }
 0x873   :  { %v3470_v43 = vpop.f32.mrb[134].mxu0 }
 0x874   :  { %3652 = vrot.lane.b32.xlu0 %v3470_v43, %s6838_s4  ;;  %v3472_v13 = vpop.f32.mrb[135].mxu0  ;;  %v3169_v43 = vpop.f32.mrb[123].mxu1 }
 0x875   :  { %v8658_v13 = vpop.f32.mrb[124].mxu1 }
 0x876   :  { %v3174_v19 = vpop.f32.mrb[125].mxu1 }
 0x877   :  { %v3475_v17 = vpop.f32.mrb[136].mxu0 }
 0x878   :  { %3654 = vrot.lane.b32.xlu0 %v3475_v17, %s6838_s4  ;;  %v3477_v18 = vpop.f32.mrb[137].mxu0 }
 0x87b   :  { %v3480_v35 = vpop.f32.mrb[138].mxu0 }
 0x87c   :  { %3656 = vrot.lane.b32.xlu0 %v3480_v35, %s6838_s4  ;;  %v3482_v31 = vpop.f32.mrb[139].mxu0 }
 0x87f   :  { %v3485_v55 = vpop.f32.mrb[140].mxu0 }
 0x880   :  { %3658 = vrot.lane.b32.xlu0 %v3485_v55, %s6838_s4  ;;  %v3487_v15 = vpop.f32.mrb[141].mxu0 }
 0x881   :  { %v8663_v15 = vpop.f32.mrb[126].mxu1 }
 0x882   :  { %v3179_v2 = vpop.f32.mrb[127].mxu1 }
 0x883   :  { %v3490_v48 = vpop.f32.mrb[142].mxu0  ;;  %v8665_v62 = vpop.f32.mrb[128].mxu1 }
 0x884   :  { %3660 = vrot.lane.b32.xlu0 %v3490_v48, %s6838_s4  ;;  %v3492_v16 = vpop.f32.mrb[143].mxu0 }
 0x887   :  { %v3495_v58 = vpop.f32.mrb[144].mxu0 }
 0x888   :  { %3662 = vrot.lane.b32.xlu0 %v3495_v58, %s6838_s4  ;;  %v3497_v6 = vpop.f32.mrb[145].mxu0  ;;  %v3184_v58 = vpop.f32.mrb[129].mxu1 }
 0x88b   :  { %v3500_v17 = vpop.f32.mrb[146].mxu0 }
 0x88c   :  { %3664 = vrot.lane.b32.xlu0 %v3500_v17, %s6838_s4  ;;  %v3502_v18 = vpop.f32.mrb[147].mxu0  ;;  %v8669_v17 = vpop.permute.xlu0 %3742 }
 0x88f   :  { %v3505_v59 = vpop.f32.mrb[148].mxu0 }
 0x890   :  { %v3507_v35 = vpop.f32.mrb[149].mxu0  ;;  %v8675_v34 = vpop.permute.xlu0 %3744 }
 0x893   :  { %v3510_v31 = vpop.f32.mrb[150].mxu0 }
 0x894   :  { %v3512_v55 = vpop.f32.mrb[151].mxu0  ;;  %v8682_v42 = vpop.permute.xlu0 %3746 }
 0x895   :  { %v8672_v55 = vpop.f32.mrb[130].mxu1 }
 0x897   :  { %v3515_v48 = vpop.f32.mrb[152].mxu0 }
 0x898   :  { %v3517_v16 = vpop.f32.mrb[153].mxu0 }
 0x899   :  { %v3189_v16 = vpop.f32.mrb[131].mxu1 }
 0x89b   :  { %v3520_v6 = vpop.f32.mrb[154].mxu0 }
 0x89c   :  { %v3522_v43 = vpop.f32.mrb[155].mxu0 }
 0x89d   :  { %v8680_v43 = vpop.f32.mrb[132].mxu1 }
 0x89f   :  { %v3525_v19 = vpop.f32.mrb[156].mxu0 }
 0x8a0   :  { %3674 = vrot.lane.b32.xlu0 %v3525_v19, %s6838_s4  ;;  %v3527_v18 = vpop.f32.mrb[157].mxu0  ;;  %v3194_v19 = vpop.f32.mrb[133].mxu1 }
 0x8a1   :  { %v8694_v19 = vpop.permute.xlu0 %3748 }
 0x8a3   :  { %v3530_v35 = vpop.f32.mrb[158].mxu0 }
 0x8a4   :  { %3676 = vrot.lane.b32.xlu1 %v3530_v35, %s6838_s4  ;;  %v3532_v2 = vpop.f32.mrb[159].mxu0 }
 0x8a5   :  { %v8687_v2 = vpop.f32.mrb[134].mxu1 }
 0x8a6   :  { %v3199_v16 = vpop.f32.mrb[135].mxu1 }
 0x8a7   :  { %v3535_v20 = vpop.f32.mrb[160].mxu0 }
 0x8a8   :  { %3798 = vrot.lane.b32.xlu1 %v8418_v63, %s6838_s4  ;;  %3678 = vrot.lane.b32.xlu0 %v3535_v20, %s6838_s4  ;;  %v3537_v58 = vpop.f32.mrb[161].mxu0 }
 0x8a9   :  { %v8692_v58 = vpop.f32.mrb[136].mxu1 }
 0x8aa   :  { %v3204_v63 = vpop.f32.mrb[137].mxu1 }
 0x8ab   :  { %v3540_v18 = vpop.f32.mrb[162].mxu0 }
 0x8ac   :  { %3800 = vrot.lane.b32.xlu1 %v8413_v54, %s6838_s4  ;;  %3666 = vrot.lane.b32.xlu0 %v3505_v59, %s6838_s4  ;;  %v3542_v35 = vpop.f32.mrb[163].mxu0 }
 0x8ad   :  { %v8699_v35 = vpop.f32.mrb[138].mxu1 }
 0x8ae   :  { %v3209_v16 = vpop.f32.mrb[139].mxu1 }
 0x8af   :  { %v3545_v44 = vpop.f32.mrb[164].mxu0  ;;  %v8706_v63 = vpop.f32.mrb[140].mxu1 }
 0x8b0   :  { %3802 = vrot.lane.b32.xlu1 %v8431_v24, %s6838_s4  ;;  %3668 = vrot.lane.b32.xlu0 %v3510_v31, %s6838_s4  ;;  %v3547_v20 = vpop.f32.mrb[165].mxu0  ;;  %v8701_v24 = vpop.permute.xlu0 %3750 }
 0x8b1   :  { %v3214_v20 = vpop.f32.mrb[141].mxu1 }
 0x8b3   :  { %v3550_v0 = vpop.f32.mrb[166].mxu0 }
 0x8b4   :  { %3762 = vrot.lane.b32.xlu0 %v8306_v49, %s6838_s4  ;;  %3680 = vrot.lane.b32.xlu1 %v3540_v18, %s6838_s4  ;;  %v3552_v59 = vpop.f32.mrb[167].mxu0  ;;  %v8712_v16 = vpop.permute.xlu0 %3752 }
 0x8b5   :  { %v8710_v59 = vpop.f32.mrb[142].mxu1 }
 0x8b6   :  { %v3219_v8 = vpop.f32.mrb[143].mxu1 }
 0x8b7   :  { %v3555_v54 = vpop.f32.mrb[168].mxu0 }
 0x8b8   :  { %3764 = vrot.lane.b32.xlu0 %v8299_v50, %s6838_s4  ;;  %3682 = vrot.lane.b32.xlu1 %v3545_v44, %s6838_s4  ;;  %v3557_v31 = vpop.f32.mrb[169].mxu0  ;;  %v8718_v30 = vpop.permute.xlu0 %3754 }
 0x8b9   :  { %v8716_v31 = vpop.f32.mrb[144].mxu1 }
 0x8ba   :  { %v3224_v20 = vpop.f32.mrb[145].mxu1 }
 0x8bb   :  { %v3560_v37 = vpop.f32.mrb[170].mxu0 }
 0x8bc   :  { %3670 = vrot.lane.b32.xlu0 %v3515_v48, %s6838_s4  ;;  %3684 = vrot.lane.b32.xlu1 %v3550_v0, %s6838_s4  ;;  %v3562_v18 = vpop.f32.mrb[171].mxu0  ;;  %v8723_v48 = vpop.f32.mrb[146].mxu1 }
 0x8bd   :  { %v3229_v8 = vpop.f32.mrb[147].mxu1 }
 0x8be   :  { %v8735_v8 = vpop.permute.xlu1 %3772 }
 0x8bf   :  { %v3565_v1 = vpop.f32.mrb[172].mxu0 }
 0x8c0   :  { %3672 = vrot.lane.b32.xlu0 %v3520_v6, %s6838_s4  ;;  %3686 = vrot.lane.b32.xlu1 %v3555_v54, %s6838_s4  ;;  %v3567_v44 = vpop.f32.mrb[173].mxu0  ;;  %v8728_v6 = vpop.f32.mrb[148].mxu1 }
 0x8c1   :  { %v8730_v44 = vpop.permute.xlu0 %3756  ;;  %v3234_v20 = vpop.f32.mrb[149].mxu1 }
 0x8c3   :  { %v3570_v21 = vpop.f32.mrb[174].mxu0 }
 0x8c4   :  { %3766 = vrot.lane.b32.xlu0 %v8320_v14, %s6838_s4  ;;  %3688 = vrot.lane.b32.xlu1 %v3560_v37, %s6838_s4  ;;  %v3572_v0 = vpop.f32.mrb[175].mxu0 }
 0x8c5   :  { %v8733_v0 = vpop.f32.mrb[150].mxu1  ;;  %v8737_v41 = vpop.permute.xlu0 %3758 }
 0x8c6   :  { %v3239_v10 = vpop.f32.mrb[151].mxu1 }
 0x8c7   :  { %v3575_v18 = vpop.f32.mrb[176].mxu0 }
 0x8c8   :  { %3768 = vrot.lane.b32.xlu0 %v8313_v52, %s6838_s4  ;;  %3690 = vrot.lane.b32.xlu1 %v3565_v1, %s6838_s4  ;;  %v3577_v54 = vpop.f32.mrb[177].mxu0 }
 0x8c9   :  { %v8740_v54 = vpop.f32.mrb[152].mxu1  ;;  %v8747_v10 = vpop.permute.xlu0 %3760 }
 0x8ca   :  { %v3244_v14 = vpop.f32.mrb[153].mxu1 }
 0x8cb   :  { %v3580_v29 = vpop.f32.mrb[178].mxu0 }
 0x8cc   :  { %3692 = vrot.lane.b32.xlu1 %v3570_v21, %s6838_s4  ;;  %v3582_v37 = vpop.f32.mrb[179].mxu0  ;;  %v8743_v21 = vpop.permute.xlu1 %3776 }
 0x8cd   :  { %v8745_v37 = vpop.f32.mrb[154].mxu1 }
 0x8ce   :  { %v3249_v49 = vpop.f32.mrb[155].mxu1 }
 0x8cf   :  { %v3585_v9 = vpop.f32.mrb[180].mxu0 }
 0x8d0   :  { %3694 = vrot.lane.b32.xlu1 %v3575_v18, %s6838_s4  ;;  %v3587_v1 = vpop.f32.mrb[181].mxu0  ;;  %v8750_v18 = vpop.f32.mrb[156].mxu1 }
 0x8d1   :  { %v3254_v40 = vpop.f32.mrb[157].mxu1 }
 0x8d3   :  { %v3590_v52 = vpop.f32.mrb[182].mxu0 }
 0x8d4   :  { %3696 = vrot.lane.b32.xlu1 %v3580_v29, %s6838_s4  ;;  %v3592_v20 = vpop.f32.mrb[183].mxu0 }
 0x8d5   :  { %v8754_v20 = vpop.permute.xlu1 %3778 }
 0x8d7   :  { %v3595_v50 = vpop.f32.mrb[184].mxu0 }
 0x8d8   :  { %3698 = vrot.lane.b32.xlu1 %v3585_v9, %s6838_s4  ;;  %v3597_v39 = vpop.f32.mrb[185].mxu0 }
 0x8d9   :  { %v8760_v39 = vpop.f32.mrb[158].mxu1 }
 0x8da   :  { %v3647_v1 = vpop.permute.xlu0 %3646  ;;  %v3259_v51 = vpop.f32.mrb[159].mxu1 }
 0x8db   :  { %v3838_v14 = vsel %vm97_vm0, %v8621_v57, %v3647_v1  ;;  %v3600_v29 = vpop.f32.mrb[186].mxu0 }
 0x8dc   :  { %3700 = vrot.lane.b32.xlu1 %v3590_v52, %s6838_s4  ;;  %v3870_v4 = vsel %vm1381_vm1, %v3838_v14, %v8669_v17  ;;  %v3602_v49 = vpop.f32.mrb[187].mxu0  ;;  %v8768_v17 = vpop.permute.xlu1 %3780 }
 0x8dd   :  { %5751 = vmatprep.mubr.msk.f32.mxu0 %vm1433_vm2, %v3870_v4 }
 0x8de   :  { %v3649_v9 = vpop.permute.xlu0 %3648 }
 0x8df   :  { %v3839_v40 = vsel %vm97_vm0, %v8623_v46, %v3649_v9  ;;  %v3605_v5 = vpop.f32.mrb[188].mxu0 }
 0x8e0   :  { %v3871_v57 = vsel %vm1381_vm1, %v3839_v40, %v8675_v34  ;;  %3702 = vrot.lane.b32.xlu1 %v3595_v50, %s6838_s4  ;;  %v3607_v52 = vpop.f32.mrb[189].mxu0  ;;  %v8778_v49 = vpop.permute.xlu1 %3782 }
 0x8e1   :  { %5752 = vmatmul.mubr.msk.f32.vlgmr.msra.gmra.mrb[192].mxu0 %vm1433_vm2, %v3871_v57 }
 0x8e2   :  { %v3651_v1 = vpop.permute.xlu0 %3650 }
 0x8e3   :  { %v3840_v4 = vsel %vm97_vm0, %v8625_v38, %v3651_v1  ;;  %v3610_v14 = vpop.f32.mrb[190].mxu0 }
 0x8e4   :  { %3704 = vrot.lane.b32.xlu1 %v3600_v29, %s6838_s4  ;;  %v3872_v51 = vsel %vm1381_vm1, %v3840_v4, %v8682_v42  ;;  %v3612_v46 = vpop.f32.mrb[191].mxu0 }
 0x8e5   :  { %5754 = vmatprep.mubr.msk.f32.mxu0 %vm1433_vm2, %v3872_v51 }
 0x8e6   :  { %v3653_v34 = vpop.permute.xlu0 %3652 }
 0x8e7   :  { %v3841_v50 = vsel %vm97_vm0, %v8627_v36, %v3653_v34  ;;  %v8790_v36 = vpop.permute.xlu1 %3784 }
 0x8e8   :  { %3706 = vrot.lane.b32.xlu1 %v3605_v5, %s6838_s4  ;;  %v3873_v38 = vsel %vm1381_vm1, %v3841_v50, %v8694_v19 }
 0x8e9   :  { %5755 = vmatmul.mubr.msk.f32.gmra.mrb[194].mxu0 %vm1433_vm2, %v3873_v38 }
 0x8ea   :  { %v3655_v29 = vpop.permute.xlu0 %3654 }
 0x8eb   :  { %v3842_v42 = vsel %vm97_vm0, %v8630_v11, %v3655_v29  ;;  %v8801_v57 = vpop.permute.xlu1 %3786 }
 0x8ec   :  { %3708 = vrot.lane.b32.xlu1 %v3610_v14, %s6838_s4  ;;  %v3874_v9 = vsel %vm1381_vm1, %v3842_v42, %v8701_v24 }
 0x8ed   :  { %5757 = vmatprep.mubr.msk.f32.mxu0 %vm1433_vm2, %v3874_v9 }
 0x8ee   :  { %v3657_v40 = vpop.permute.xlu0 %3656 }
 0x8ef   :  { %v3843_v5 = vsel %vm97_vm0, %v8633_v3, %v3657_v40  ;;  %v8811_v4 = vpop.permute.xlu1 %3788 }
 0x8f0   :  { %3804 = vrot.lane.b32.xlu1 %v8426_v61, %s6838_s4  ;;  %v3875_v19 = vsel %vm1381_vm1, %v3843_v5, %v8712_v16 }
 0x8f1   :  { %5758 = vmatmul.mubr.msk.f32.gmra.mrb[196].mxu0 %vm1433_vm2, %v3875_v19 }
 0x8f2   :  { %v3659_v11 = vpop.permute.xlu0 %3658 }
 0x8f3   :  { %v3844_v24 = vsel %vm97_vm0, %v8636_v45, %v3659_v11  ;;  %v8820_v46 = vpop.permute.xlu1 %3790 }
 0x8f4   :  { %v3876_v52 = vsel %vm1381_vm1, %v3844_v24, %v8718_v30 }
 0x8f5   :  { %5760 = vmatprep.mubr.msk.f32.mxu0 %vm1433_vm2, %v3876_v52 }
 0x8f6   :  { %v3661_v3 = vpop.permute.xlu0 %3660 }
 0x8f7   :  { %v3845_v1 = vsel %vm97_vm0, %v8639_v12, %v3661_v3  ;;  %v8825_v34 = vpop.permute.xlu1 %3792 }
 0x8f8   :  { %v3877_v16 = vsel %vm1381_vm1, %v3845_v1, %v8730_v44 }
 0x8f9   :  { %5761 = vmatmul.mubr.msk.f32.gmra.mrb[198].mxu0 %vm1433_vm2, %v3877_v16 }
 0x8fa   :  { %v3663_v14 = vpop.permute.xlu0 %3662 }
 0x8fb   :  { %v3846_v45 = vsel %vm97_vm0, %v8642_v22, %v3663_v14  ;;  %v8827_v50 = vpop.permute.xlu1 %3794 }
 0x8fc   :  { %v3878_v30 = vsel %vm1381_vm1, %v3846_v45, %v8737_v41 }
 0x8fd   :  { %5763 = vmatprep.mubr.msk.f32.mxu0 %vm1433_vm2, %v3878_v30 }
 0x8fe   :  { %v3665_v51 = vpop.permute.xlu0 %3664 }
 0x8ff   :  { %v3847_v12 = vsel %vm97_vm0, %v8645_v60, %v3665_v51  ;;  %v8829_v22 = vpop.permute.xlu1 %3796 }
 0x900   :  { %v3879_v44 = vsel %vm1381_vm1, %v3847_v12, %v8747_v10 }
 0x901   :  { %5764 = vmatmul.mubr.msk.f32.gmra.mrb[200].mxu0 %vm1433_vm2, %v3879_v44 }
 0x912   :  { %v3675_v41 = vpop.permute.xlu0 %3674 }
 0x913   :  { %v3852_v38 = vsel %vm97_vm0, %v8658_v13, %v3675_v41 }
 0x914   :  { %v3884_v60 = vsel %vm1381_vm1, %v3852_v38, %v8661_v26 }
 0x915   :  { %5772 = vmatprep.mubr.msk.f32.mxu1 %vm1433_vm2, %v3884_v60 }
 0x916   :  { %v3677_v29 = vpop.permute.xlu1 %3676 }
 0x917   :  { %v3853_v10 = vsel %vm97_vm0, %v8663_v15, %v3677_v29 }
 0x918   :  { %v3885_v42 = vsel %vm1381_vm1, %v3853_v10, %v8735_v8 }
 0x919   :  { %5773 = vmatmul.mubr.msk.f32.vlgmr.msra.gmra.mrb[160].mxu1 %vm1433_vm2, %v3885_v42 }
 0x91a   :  { %v8841_v9 = vpop.permute.xlu1 %3798  ;;  %v3679_v40 = vpop.permute.xlu0 %3678 }
 0x91b   :  { %v3854_v13 = vsel %vm97_vm0, %v8665_v62, %v3679_v40 }
 0x91c   :  { %v3886_v26 = vsel %vm1381_vm1, %v3854_v13, %v8667_v25 }
 0x91d   :  { %5775 = vmatprep.mubr.msk.f32.mxu1 %vm1433_vm2, %v3886_v26 }
 0x91e   :  { %v8848_v5 = vpop.permute.xlu1 %3800  ;;  %v3667_v19 = vpop.permute.xlu0 %3666 }
 0x91f   :  { %v3848_v8 = vsel %vm97_vm0, %v8648_v56, %v3667_v19 }
 0x922   :  { %v8850_v15 = vpop.permute.xlu1 %3802  ;;  %v3669_v11 = vpop.permute.xlu0 %3668 }
 0x923   :  { %v3849_v1 = vsel %vm97_vm0, %v8650_v47, %v3669_v11 }
 0x926   :  { %v3763_v24 = vpop.permute.xlu0 %3762  ;;  %v3681_v52 = vpop.permute.xlu1 %3680 }
 0x927   :  { %v3880_v3 = vsel %vm1381_vm1, %v3848_v8, %v3763_v24  ;;  %v3855_v62 = vsel %vm97_vm0, %v8672_v55, %v3681_v52 }
 0x928   :  { %5766 = vmatprep.mubr.msk.f32.mxu0 %vm1433_vm2, %v3880_v3  ;;  %v3887_v25 = vsel %vm1381_vm1, %v3855_v62, %v8743_v21 }
 0x929   :  { %5776 = vmatmul.mubr.msk.f32.gmra.mrb[162].mxu1 %vm1433_vm2, %v3887_v25 }
 0x92a   :  { %v3765_v16 = vpop.permute.xlu0 %3764  ;;  %v3683_v14 = vpop.permute.xlu1 %3682 }
 0x92b   :  { %v3881_v56 = vsel %vm1381_vm1, %v3849_v1, %v3765_v16  ;;  %v3856_v45 = vsel %vm97_vm0, %v8680_v43, %v3683_v14  ;;  %v8945_v1 = vld [vmem:[%s9593_s6] ss:$0 sm:$0xff] }
 0x92c   :  { %5767 = vmatmul.mubr.msk.f32.gmra.mrb[202].mxu0 %vm1433_vm2, %v3881_v56  ;;  %v3888_v55 = vsel %vm1381_vm1, %v3856_v45, %v8754_v20 }
 0x92d   :  { %5778 = vmatprep.mubr.msk.f32.mxu1 %vm1433_vm2, %v3888_v55 }
 0x92e   :  { %v3671_v21 = vpop.permute.xlu0 %3670  ;;  %v3685_v30 = vpop.permute.xlu1 %3684 }
 0x92f   :  { %v3857_v51 = vsel %vm97_vm0, %v8687_v2, %v3685_v30  ;;  %v3850_v41 = vsel %vm97_vm0, %v8653_v33, %v3671_v21 }
 0x930   :  { %v3889_v47 = vsel %vm1381_vm1, %v3857_v51, %v8768_v17 }
 0x931   :  { %5779 = vmatmul.mubr.msk.f32.gmra.mrb[164].mxu1 %vm1433_vm2, %v3889_v47 }
 0x932   :  { %v3673_v12 = vpop.permute.xlu0 %3672  ;;  %v3687_v44 = vpop.permute.xlu1 %3686 }
 0x933   :  { %v3858_v43 = vsel %vm97_vm0, %v8692_v58, %v3687_v44 }
 0x934   :  { %v3890_v20 = vsel %vm1381_vm1, %v3858_v43, %v8778_v49  ;;  %v3851_v49 = vsel %vm97_vm0, %v8655_v23, %v3673_v12 }
 0x935   :  { %5781 = vmatprep.mubr.msk.f32.mxu1 %vm1433_vm2, %v3890_v20 }
 0x936   :  { %v3767_v38 = vpop.permute.xlu0 %3766  ;;  %v3689_v2 = vpop.permute.xlu1 %3688 }
 0x937   :  { %v3882_v60 = vsel %vm1381_vm1, %v3850_v41, %v3767_v38  ;;  %v3859_v17 = vsel %vm97_vm0, %v8699_v35, %v3689_v2 }
 0x938   :  { %5769 = vmatprep.mubr.msk.f32.mxu0 %vm1433_vm2, %v3882_v60  ;;  %v3891_v58 = vsel %vm1381_vm1, %v3859_v17, %v8790_v36 }
 0x939   :  { %5782 = vmatmul.mubr.msk.f32.gmra.mrb[166].mxu1 %vm1433_vm2, %v3891_v58 }
 0x93a   :  { %v3769_v29 = vpop.permute.xlu0 %3768  ;;  %v3691_v10 = vpop.permute.xlu1 %3690 }
 0x93b   :  { %v3883_v33 = vsel %vm1381_vm1, %v3851_v49, %v3769_v29  ;;  %v3860_v42 = vsel %vm97_vm0, %v8706_v63, %v3691_v10 }
 0x93c   :  { %5770 = vmatmul.mubr.msk.f32.gmra.mrb[204].mxu0 %vm1433_vm2, %v3883_v33  ;;  %v3892_v35 = vsel %vm1381_vm1, %v3860_v42, %v8801_v57 }
 0x93d   :  { %5784 = vmatprep.mubr.msk.f32.mxu1 %vm1433_vm2, %v3892_v35 }
 0x93e   :  { %v3693_v36 = vpop.permute.xlu1 %3692 }
 0x93f   :  { %v3861_v40 = vsel %vm97_vm0, %v8710_v59, %v3693_v36 }
 0x940   :  { %v3893_v23 = vsel %vm1381_vm1, %v3861_v40, %v8811_v4 }
 0x941   :  { %5785 = vmatmul.mubr.msk.f32.gmra.mrb[168].mxu1 %vm1433_vm2, %v3893_v23 }
 0x942   :  { %v3695_v13 = vpop.permute.xlu1 %3694 }
 0x943   :  { %v3862_v63 = vsel %vm97_vm0, %v8716_v31, %v3695_v13 }
 0x944   :  { %v3894_v26 = vsel %vm1381_vm1, %v3862_v63, %v8820_v46 }
 0x945   :  { %5787 = vmatprep.mubr.msk.f32.mxu1 %vm1433_vm2, %v3894_v26 }
 0x946   :  { %v3697_v57 = vpop.permute.xlu1 %3696 }
 0x947   :  { %v3863_v19 = vsel %vm97_vm0, %v8723_v48, %v3697_v57 }
 0x948   :  { %v3895_v59 = vsel %vm1381_vm1, %v3863_v19, %v8825_v34 }
 0x949   :  { %5788 = vmatmul.mubr.msk.f32.gmra.mrb[170].mxu1 %vm1433_vm2, %v3895_v59 }
 0x94a   :  { %v3699_v4 = vpop.permute.xlu1 %3698 }
 0x94b   :  { %v3864_v11 = vsel %vm97_vm0, %v8728_v6, %v3699_v4 }
 0x94c   :  { %v3896_v31 = vsel %vm1381_vm1, %v3864_v11, %v8827_v50 }
 0x94d   :  { %5790 = vmatprep.mubr.msk.f32.mxu1 %vm1433_vm2, %v3896_v31 }
 0x94e   :  { %v3701_v46 = vpop.permute.xlu1 %3700 }
 0x94f   :  { %v3865_v8 = vsel %vm97_vm0, %v8733_v0, %v3701_v46 }
 0x950   :  { %v3897_v48 = vsel %vm1381_vm1, %v3865_v8, %v8829_v22 }
 0x951   :  { %5791 = vmatmul.mubr.msk.f32.gmra.mrb[172].mxu1 %vm1433_vm2, %v3897_v48 }
 0x952   :  { %v3703_v34 = vpop.permute.xlu1 %3702 }
 0x953   :  { %v3866_v24 = vsel %vm97_vm0, %v8740_v54, %v3703_v34 }
 0x954   :  { %v3898_v6 = vsel %vm1381_vm1, %v3866_v24, %v8841_v9 }
 0x955   :  { %5793 = vmatprep.mubr.msk.f32.mxu1 %vm1433_vm2, %v3898_v6 }
 0x956   :  { %v3705_v50 = vpop.permute.xlu1 %3704 }
 0x957   :  { %v3867_v52 = vsel %vm97_vm0, %v8745_v37, %v3705_v50 }
 0x958   :  { %v3899_v0 = vsel %vm1381_vm1, %v3867_v52, %v8848_v5 }
 0x959   :  { %5794 = vmatmul.mubr.msk.f32.gmra.mrb[174].mxu1 %vm1433_vm2, %v3899_v0 }
 0x95a   :  { %v3707_v22 = vpop.permute.xlu1 %3706 }
 0x95b   :  { %v3868_v3 = vsel %vm97_vm0, %v8750_v18, %v3707_v22 }
 0x95c   :  { %v3900_v54 = vsel %vm1381_vm1, %v3868_v3, %v8850_v15 }
 0x95d   :  { %5796 = vmatprep.mubr.msk.f32.mxu1 %vm1433_vm2, %v3900_v54 }
 0x95e   :  { %v3709_v9 = vpop.permute.xlu1 %3708 }
 0x95f   :  { %v3869_v62 = vsel %vm97_vm0, %v8760_v39, %v3709_v9 }
 0x962   :  { %v3805_v25 = vpop.permute.xlu1 %3804 }
 0x963   :  { %v3901_v37 = vsel %vm1381_vm1, %v3869_v62, %v3805_v25 }
 0x964   :  { %5797 = vmatmul.mubr.msk.f32.gmra.mrb[176].mxu1 %vm1433_vm2, %v3901_v37 }
 0x9b4   :  { %v5753_v5 = vpop.f32.mrb[192].mxu0 }
 0x9b5   :  { %v8948_v18 = vadd.f32 %v8945_v1, %v5753_v5  ;;  %v4064_v15 = vpop.f32.mrb[193].mxu0 }
 0x9b6   :  { %v8951_v16 = vadd.f32 %v8945_v1, %v4064_v15 }
 0x9b7   :  { %4449 = vrot.lane.b32.xlu1 %v8948_v18, %s6838_s4  ;;  %v5352_v19 = vmul.f32 -1.442695, %v8948_v18 }
 0x9b8   :  { %4447 = vrot.lane.b32.xlu0 %v8951_v16, %s6838_s4  ;;  %v5351_v11 = vmul.f32 -1.442695, %v8951_v16 }
 0x9b9   :  { %6427 = vpow2.f32 %v5352_v19 }
 0x9ba   :  { %6429 = vpow2.f32 %v5351_v11 }
 0x9bc   :  { %v5756_v39 = vpop.f32.mrb[194].mxu0 }
 0x9bd   :  { %v8958_v14 = vadd.f32 %v8945_v1, %v5756_v39  ;;  %v4074_v56 = vpop.f32.mrb[195].mxu0 }
 0x9be   :  { %v8961_v45 = vadd.f32 %v8945_v1, %v4074_v56 }
 0x9bf   :  { %4453 = vrot.lane.b32.xlu1 %v8958_v14, %s6838_s4  ;;  %v5354_v34 = vmul.f32 -1.442695, %v8958_v14 }
 0x9c0   :  { %4451 = vrot.lane.b32.xlu0 %v8961_v45, %s6838_s4  ;;  %v5353_v50 = vmul.f32 -1.442695, %v8961_v45 }
 0x9c1   :  { %6431 = vpow2.f32 %v5354_v34 }
 0x9c2   :  { %6433 = vpow2.f32 %v5353_v50 }
 0x9c3   :  { %v6428_v22 = vpop.eup %6427 }
 0x9c4   :  { %v5759_v55 = vpop.f32.mrb[196].mxu0  ;;  %v6430_v25 = vpop.eup %6429  ;;  %v4320_v37 = vadd.f32 1.0, %v6428_v22 }
 0x9c5   :  { %v8968_v21 = vadd.f32 %v8945_v1, %v5759_v55  ;;  %v4084_v30 = vpop.f32.mrb[197].mxu0 }
 0x9c6   :  { %v8971_v51 = vadd.f32 %v8945_v1, %v4084_v30 }
 0x9c7   :  { %4457 = vrot.lane.b32.xlu1 %v8968_v21, %s6838_s4  ;;  %v5356_v3 = vmul.f32 -1.442695, %v8968_v21 }
 0x9c8   :  { %4455 = vrot.lane.b32.xlu0 %v8971_v51, %s6838_s4  ;;  %v5355_v9 = vmul.f32 -1.442695, %v8971_v51 }
 0x9c9   :  { %6435 = vpow2.f32 %v5356_v3 }
 0x9ca   :  { %6437 = vpow2.f32 %v5355_v9 }
 0x9cb   :  { %6439 = vrcp.f32 %v4320_v37 }
 0x9cc   :  { %v5762_v47 = vpop.f32.mrb[198].mxu0 }
 0x9cd   :  { %v8978_v12 = vadd.f32 %v8945_v1, %v5762_v47  ;;  %v4094_v44 = vpop.f32.mrb[199].mxu0  ;;  %v4319_v47 = vadd.f32 1.0, %v6430_v25 }
 0x9ce   :  { %v8981_v43 = vadd.f32 %v8945_v1, %v4094_v44 }
 0x9cf   :  { %4461 = vrot.lane.b32.xlu1 %v8978_v12, %s6838_s4  ;;  %v5358_v5 = vmul.f32 -1.442695, %v8978_v12 }
 0x9d0   :  { %4459 = vrot.lane.b32.xlu0 %v8981_v43, %s6838_s4  ;;  %v5357_v56 = vmul.f32 -1.442695, %v8981_v43 }
 0x9d1   :  { %6441 = vpow2.f32 %v5358_v5 }
 0x9d2   :  { %6443 = vpow2.f32 %v5357_v56 }
 0x9d3   :  { %6445 = vrcp.f32 %v4319_v47 }
 0x9d4   :  { %v5765_v20 = vpop.f32.mrb[200].mxu0 }
 0x9d5   :  { %v8988_v41 = vadd.f32 %v8945_v1, %v5765_v20  ;;  %v4104_v38 = vpop.f32.mrb[201].mxu0 }
 0x9d6   :  { %v8991_v2 = vadd.f32 %v8945_v1, %v4104_v38  ;;  %v6432_v38 = vpop.eup %6431 }
 0x9d7   :  { %4465 = vrot.lane.b32.xlu1 %v8988_v41, %s6838_s4 }
 0x9d8   :  { %4463 = vrot.lane.b32.xlu0 %v8991_v2, %s6838_s4 }
 0x9ec   :  { %v5774_v60 = vpop.f32.mrb[160].mxu1 }
 0x9ed   :  { %v4134_v17 = vpop.f32.mrb[161].mxu1  ;;  %v9019_v59 = vadd.f32 %v8945_v1, %v5774_v60  ;;  %v5360_v60 = vmul.f32 -1.442695, %v8988_v41 }
 0x9ee   :  { %v9023_v31 = vadd.f32 %v8945_v1, %v4134_v17  ;;  %v6434_v17 = vpop.eup %6433 }
 0x9ef   :  { %6447 = vpow2.f32 %v5360_v60 }
 0x9fc   :  { %v5777_v58 = vpop.f32.mrb[162].mxu1 }
 0x9fd   :  { %v4144_v49 = vpop.f32.mrb[163].mxu1  ;;  %v9030_v8 = vadd.f32 %v8945_v1, %v5777_v58  ;;  %v5359_v58 = vmul.f32 -1.442695, %v8991_v2 }
 0x9fe   :  { %v9033_v48 = vadd.f32 %v8945_v1, %v4144_v49 }
 0x9ff   :  { %v5768_v29 = vpop.f32.mrb[202].mxu0  ;;  %6449 = vpow2.f32 %v5359_v58 }
 0xa00   :  { %v8998_v10 = vadd.f32 %v8945_v1, %v5768_v29  ;;  %v4114_v33 = vpop.f32.mrb[203].mxu0 }
 0xa01   :  { %v9001_v42 = vadd.f32 %v8945_v1, %v4114_v33  ;;  %v4322_v33 = vadd.f32 1.0, %v6432_v38 }
 0xa02   :  { %4469 = vrot.lane.b32.xlu1 %v8998_v10, %s6838_s4 }
 0xa03   :  { %4467 = vrot.lane.b32.xlu0 %v9001_v42, %s6838_s4  ;;  %6451 = vrcp.f32 %v4322_v33 }
 0xa04   :  { %v5780_v35 = vpop.f32.mrb[164].mxu1 }
 0xa05   :  { %v4154_v36 = vpop.f32.mrb[165].mxu1  ;;  %v9041_v24 = vadd.f32 %v8945_v1, %v5780_v35 }
 0xa06   :  { %v9045_v52 = vadd.f32 %v8945_v1, %v4154_v36 }
 0xa0c   :  { %v5783_v40 = vpop.f32.mrb[166].mxu1 }
 0xa0d   :  { %v4164_v23 = vpop.f32.mrb[167].mxu1  ;;  %v9053_v54 = vadd.f32 %v8945_v1, %v5783_v40  ;;  %v6436_v40 = vpop.eup %6435 }
 0xa0e   :  { %v9057_v62 = vadd.f32 %v8945_v1, %v4164_v23  ;;  %v4321_v23 = vadd.f32 1.0, %v6434_v17 }
 0xa0f   :  { %v5771_v13 = vpop.f32.mrb[204].mxu0 }
 0xa10   :  { %v9008_v63 = vadd.f32 %v8945_v1, %v5771_v13  ;;  %v4124_v26 = vpop.f32.mrb[205].mxu0  ;;  %v6438_v13 = vpop.eup %6437  ;;  %6453 = vrcp.f32 %v4321_v23 }
 0xa11   :  { %v9011_v57 = vadd.f32 %v8945_v1, %v4124_v26  ;;  %v9100_v19 = vpop.eup %6439 }
 0xa12   :  { %4473 = vrot.lane.b32.xlu1 %v9008_v63, %s6838_s4  ;;  %v6442_v34 = vpop.eup %6441 }
 0xa13   :  { %4471 = vrot.lane.b32.xlu0 %v9011_v57, %s6838_s4  ;;  %v4326_v9 = vadd.f32 1.0, %v6442_v34 }
 0xa14   :  { %v5786_v4 = vpop.f32.mrb[168].mxu1 }
 0xa15   :  { %v4174_v46 = vpop.f32.mrb[169].mxu1  ;;  %v9065_v15 = vadd.f32 %v8945_v1, %v5786_v4  ;;  %v4324_v4 = vadd.f32 1.0, %v6436_v40 }
 0xa16   :  { %4477 = vrot.lane.b32.xlu1 %v9019_v59, %s6838_s4  ;;  %v9069_v55 = vadd.f32 %v8945_v1, %v4174_v46 }
 0xa17   :  { %4475 = vrot.lane.b32.xlu0 %v9023_v31, %s6838_s4  ;;  %6455 = vrcp.f32 %v4324_v4 }
 0xa1a   :  { %4481 = vrot.lane.b32.xlu1 %v9030_v8, %s6838_s4 }
 0xa1b   :  { %4479 = vrot.lane.b32.xlu0 %v9033_v48, %s6838_s4 }
 0xa1c   :  { %v5789_v6 = vpop.f32.mrb[170].mxu1 }
 0xa1d   :  { %v4184_v0 = vpop.f32.mrb[171].mxu1  ;;  %v9076_v44 = vadd.f32 %v8945_v1, %v5789_v6  ;;  %v4323_v6 = vadd.f32 1.0, %v6438_v13 }
 0xa1e   :  { %4485 = vrot.lane.b32.xlu1 %v9041_v24, %s6838_s4  ;;  %v9079_v20 = vadd.f32 %v8945_v1, %v4184_v0  ;;  %v6444_v0 = vpop.eup %6443 }
 0xa1f   :  { %4483 = vrot.lane.b32.xlu0 %v9045_v52, %s6838_s4  ;;  %v9109_v22 = vpop.eup %6445  ;;  %6457 = vrcp.f32 %v4323_v6  ;;  %v4325_v37 = vadd.f32 1.0, %v6444_v0 }
 0xa20   :  { %6459 = vrcp.f32 %v4326_v9 }
 0xa21   :  { %6461 = vrcp.f32 %v4325_v37 }
 0xa22   :  { %4489 = vrot.lane.b32.xlu1 %v9053_v54, %s6838_s4 }
 0xa23   :  { %4487 = vrot.lane.b32.xlu0 %v9057_v62, %s6838_s4 }
 0xa24   :  { %v5792_v39 = vpop.f32.mrb[172].mxu1 }
 0xa25   :  { %v4194_v30 = vpop.f32.mrb[173].mxu1  ;;  %v9088_v49 = vadd.f32 %v8945_v1, %v5792_v39  ;;  %v6448_v39 = vpop.eup %6447 }
 0xa26   :  { %4493 = vrot.lane.b32.xlu1 %v9065_v15, %s6838_s4  ;;  %v9091_v35 = vadd.f32 %v8945_v1, %v4194_v30  ;;  %v6450_v47 = vpop.eup %6449 }
 0xa27   :  { %4491 = vrot.lane.b32.xlu0 %v9069_v55, %s6838_s4  ;;  %v9123_v58 = vpop.eup %6451 }
 0xa28   :  { %v9127_v33 = vpop.eup %6453 }
 0xa29   :  { %v4450_v11 = vpop.permute.xlu1 %4449  ;;  %v9132_v4 = vpop.eup %6455 }
 0xa2a   :  { %4497 = vrot.lane.b32.xlu1 %v9076_v44, %s6838_s4  ;;  %v4448_v50 = vpop.permute.xlu0 %4447  ;;  %v4544_v3 = vmul.f32 %v9100_v19, %v4450_v11  ;;  %v9135_v11 = vpop.eup %6457 }
 0xa2b   :  { %4495 = vrot.lane.b32.xlu0 %v9079_v20, %s6838_s4  ;;  %v4543_v25 = vmul.f32 %v9109_v22, %v4448_v50 }
 0xa2c   :  { %v5795_v29 = vpop.f32.mrb[174].mxu1 }
 0xa2d   :  { %v4204_v36 = vpop.f32.mrb[175].mxu1  ;;  %v9098_v26 = vadd.f32 %v8945_v1, %v5795_v29  ;;  %v4328_v29 = vadd.f32 1.0, %v6448_v39 }
 0xa2e   :  { %4501 = vrot.lane.b32.xlu1 %v9088_v49, %s6838_s4  ;;  %v9103_v46 = vadd.f32 %v8945_v1, %v4204_v36  ;;  %v4327_v36 = vadd.f32 1.0, %v6450_v47 }
 0xa2f   :  { %4499 = vrot.lane.b32.xlu0 %v9091_v35, %s6838_s4  ;;  %6463 = vrcp.f32 %v4328_v29  ;;  %v5362_v29 = vmul.f32 -1.442695, %v8998_v10 }
 0xa30   :  { %6465 = vrcp.f32 %v4327_v36  ;;  %v5361_v36 = vmul.f32 -1.442695, %v9001_v42 }
 0xa31   :  { %v4454_v38 = vpop.permute.xlu1 %4453  ;;  %6467 = vpow2.f32 %v5362_v29  ;;  %v5369_v29 = vmul.f32 -1.442695, %v9045_v52 }
 0xa32   :  { %4505 = vrot.lane.b32.xlu1 %v9098_v26, %s6838_s4  ;;  %v4452_v17 = vpop.permute.xlu0 %4451  ;;  %v4546_v40 = vmul.f32 %v9123_v58, %v4454_v38  ;;  %6469 = vpow2.f32 %v5361_v36 }
 0xa33   :  { %4503 = vrot.lane.b32.xlu0 %v9103_v46, %s6838_s4  ;;  %v4545_v23 = vmul.f32 %v9127_v33, %v4452_v17 }
 0xa36   :  { %4609 = vrot.lane.b32.xlu1 %v4544_v3, %s6837_s24  ;;  %v9140_v3 = vpop.eup %6459 }
 0xa37   :  { %v5798_v5 = vpop.f32.mrb[176].mxu1  ;;  %4607 = vrot.lane.b32.xlu0 %v4543_v25, %s6837_s24  ;;  %v9143_v9 = vpop.eup %6461 }
 0xa38   :  { %v9116_v56 = vadd.f32 %v8945_v1, %v5798_v5  ;;  %v4214_v30 = vpop.f32.mrb[177].mxu1  ;;  %9804 = vst [vmem:[#allocation8_spill] sm:$0xff] %v9143_v9 }
 0xa39   :  { %v9119_v60 = vadd.f32 %v8945_v1, %v4214_v30  ;;  %v4458_v1 = vpop.permute.xlu1 %4457  ;;  %v9149_v5 = vpop.eup %6463 }
 0xa3a   :  { %4509 = vrot.lane.b32.xlu1 %v9116_v56, %s6838_s4  ;;  %v4456_v13 = vpop.permute.xlu0 %4455  ;;  %v4548_v34 = vmul.f32 %v9132_v4, %v4458_v1  ;;  %9805 = vst [vmem:[#allocation9_spill] sm:$0xff] %v9149_v5  ;;  %v9151_v30 = vpop.eup %6465  ;;  %v5365_v1 = vmul.f32 -1.442695, %v9023_v31 }
 0xa3b   :  { %4507 = vrot.lane.b32.xlu0 %v9119_v60, %s6838_s4  ;;  %v4547_v6 = vmul.f32 %v9135_v11, %v4456_v13  ;;  %9806 = vst [vmem:[#allocation10_spill] sm:$0xff] %v9151_v30 }
 0xa3e   :  { %4613 = vrot.lane.b32.xlu1 %v4546_v40, %s6837_s24  ;;  %v6468_v40 = vpop.eup %6467 }
 0xa3f   :  { %4611 = vrot.lane.b32.xlu0 %v4545_v23, %s6837_s24  ;;  %v5366_v23 = vmul.f32 -1.442695, %v9019_v59  ;;  %v6470_v13 = vpop.eup %6469 }
 0xa41   :  { %v4462_v50 = vpop.permute.xlu1 %4461  ;;  %6471 = vpow2.f32 %v5366_v23 }
 0xa42   :  { %4617 = vrot.lane.b32.xlu1 %v4548_v34, %s6837_s24  ;;  %v4460_v0 = vpop.permute.xlu0 %4459  ;;  %v4550_v25 = vmul.f32 %v9140_v3, %v4462_v50  ;;  %v4330_v34 = vadd.f32 1.0, %v6468_v40  ;;  %v5363_v50 = vmul.f32 -1.442695, %v9011_v57  ;;  %6473 = vpow2.f32 %v5365_v1 }
 0xa43   :  { %4615 = vrot.lane.b32.xlu0 %v4547_v6, %s6837_s24  ;;  %v4549_v37 = vmul.f32 %v9143_v9, %v4460_v0  ;;  %v5364_v6 = vmul.f32 -1.442695, %v9008_v63  ;;  %v4329_v0 = vadd.f32 1.0, %v6470_v13  ;;  %v5372_v40 = vmul.f32 -1.442695, %v9053_v54 }
 0xa44   :  { %6475 = vrcp.f32 %v4330_v34 }
 0xa45   :  { %6477 = vpow2.f32 %v5364_v6  ;;  %v5371_v6 = vmul.f32 -1.442695, %v9057_v62 }
 0xa46   :  { %4621 = vrot.lane.b32.xlu1 %v4550_v25, %s6837_s24  ;;  %6479 = vpow2.f32 %v5363_v50  ;;  %v5368_v25 = vmul.f32 -1.442695, %v9030_v8 }
 0xa47   :  { %4619 = vrot.lane.b32.xlu0 %v4549_v37, %s6837_s24  ;;  %6481 = vrcp.f32 %v4329_v0  ;;  %v5367_v37 = vmul.f32 -1.442695, %v9033_v48 }
 0xa48   :  { %6483 = vpow2.f32 %v5368_v25 }
 0xa49   :  { %v4466_v39 = vpop.permute.xlu1 %4465  ;;  %6485 = vpow2.f32 %v5367_v37 }
 0xa4a   :  { %v4552_v47 = vmul.f32 %v9149_v5, %v4466_v39  ;;  %v4464_v38 = vpop.permute.xlu0 %4463  ;;  %v5370_v39 = vmul.f32 -1.442695, %v9041_v24 }
 0xa4b   :  { %v4551_v17 = vmul.f32 %v9151_v30, %v4464_v38 }
 0xa4c   :  { %4625 = vrot.lane.b32.xlu1 %v4552_v47, %s6837_s24  ;;  %v6472_v47 = vpop.eup %6471  ;;  %6487 = vpow2.f32 %v5370_v39 }
 0xa4d   :  { %4623 = vrot.lane.b32.xlu0 %v4551_v17, %s6837_s24  ;;  %v6474_v38 = vpop.eup %6473  ;;  %v4334_v1 = vadd.f32 1.0, %v6472_v47  ;;  %6489 = vpow2.f32 %v5369_v29  ;;  %v5374_v47 = vmul.f32 -1.442695, %v9065_v15  ;;  %v5376_v29 = vmul.f32 -1.442695, %v9076_v44 }
 0xa4e   :  { %v9166_v17 = vpop.eup %6475  ;;  %6491 = vpow2.f32 %v5372_v40  ;;  %v4333_v39 = vadd.f32 1.0, %v6474_v38  ;;  %v5375_v38 = vmul.f32 -1.442695, %v9079_v20 }
 0xa4f   :  { %9807 = vst [vmem:[#allocation11_spill] sm:$0xff] %v9166_v17  ;;  %v6478_v36 = vpop.eup %6477  ;;  %6493 = vrcp.f32 %v4334_v1 }
 0xa50   :  { %v6480_v23 = vpop.eup %6479  ;;  %v4332_v25 = vadd.f32 1.0, %v6478_v36  ;;  %6495 = vpow2.f32 %v5371_v6 }
 0xa51   :  { %v9170_v34 = vpop.eup %6481  ;;  %v4331_v61 = vadd.f32 1.0, %v6480_v23 }
 0xa52   :  { %9808 = vst [vmem:[#allocation12_spill] sm:$0xff] %v9170_v34  ;;  %v6484_v30 = vpop.eup %6483  ;;  %6497 = vrcp.f32 %v4332_v25  ;;  %v5378_v25 = vmul.f32 -1.442695, %v9088_v49 }
 0xa53   :  { %6499 = vrcp.f32 %v4331_v61  ;;  %v6486_v36 = vpop.eup %6485  ;;  %v4336_v23 = vadd.f32 1.0, %v6484_v30  ;;  %v5377_v61 = vmul.f32 -1.442695, %v9091_v35 }
 0xa54   :  { %6501 = vrcp.f32 %v4333_v39  ;;  %v4335_v1 = vadd.f32 1.0, %v6486_v36 }
 0xa55   :  { %6503 = vpow2.f32 %v5374_v47 }
 0xa56   :  { %v6488_v40 = vpop.eup %6487 }
 0xa57   :  { %v6490_v6 = vpop.eup %6489 }
 0xa58   :  { %v4337_v30 = vadd.f32 1.0, %v6490_v6 }
 0xa74   :  { %v4470_v13 = vpop.permute.xlu1 %4469 }
 0xa75   :  { %v4554_v50 = vmul.f32 %v9166_v17, %v4470_v13  ;;  %v4468_v0 = vpop.permute.xlu0 %4467  ;;  %v5373_v13 = vmul.f32 -1.442695, %v9069_v55 }
 0xa76   :  { %v4553_v37 = vmul.f32 %v9170_v34, %v4468_v0  ;;  %v6492_v0 = vpop.eup %6491 }
 0xa77   :  { %4629 = vrot.lane.b32.xlu1 %v4554_v50, %s6837_s24  ;;  %6505 = vpow2.f32 %v5373_v13  ;;  %v4338_v50 = vadd.f32 1.0, %v6488_v40  ;;  %v4340_v13 = vadd.f32 1.0, %v6492_v0  ;;  %v5380_v40 = vmul.f32 -1.442695, %v9098_v26 }
 0xa78   :  { %4627 = vrot.lane.b32.xlu0 %v4553_v37, %s6837_s24  ;;  %6507 = vpow2.f32 %v5376_v29  ;;  %v9182_v37 = vpop.eup %6493 }
 0xa79   :  { %6509 = vrcp.f32 %v4336_v23  ;;  %9809 = vst [vmem:[#allocation13_spill] sm:$0xff] %v9182_v37  ;;  %v6496_v39 = vpop.eup %6495 }
 0xa7a   :  { %6511 = vpow2.f32 %v5375_v38  ;;  %v9185_v47 = vpop.eup %6497  ;;  %v5379_v38 = vmul.f32 -1.442695, %v9103_v46 }
 0xa7b   :  { %6513 = vrcp.f32 %v4335_v1  ;;  %9810 = vst [vmem:[#allocation41_spill] sm:$0xff] %v9185_v47  ;;  %v9187_v29 = vpop.eup %6499 }
 0xa7c   :  { %6515 = vrcp.f32 %v4338_v50  ;;  %v9191_v17 = vpop.eup %6501  ;;  %v4339_v50 = vadd.f32 1.0, %v6496_v39 }
 0xa7d   :  { %6517 = vpow2.f32 %v5378_v25  ;;  %9811 = vst [vmem:[#allocation42_spill] sm:$0xff] %v9191_v17  ;;  %v6504_v6 = vpop.eup %6503 }
 0xa7e   :  { %6519 = vpow2.f32 %v5377_v61  ;;  %v4342_v61 = vadd.f32 1.0, %v6504_v6 }
 0xa7f   :  { %6521 = vrcp.f32 %v4337_v30 }
 0xa80   :  { %6523 = vrcp.f32 %v4340_v13 }
 0xa81   :  { %v6506_v0 = vpop.eup %6505  ;;  %6525 = vpow2.f32 %v5380_v40  ;;  %v5382_v40 = vmul.f32 -1.442695, %v9116_v56 }
 0xa82   :  { %v6508_v5 = vpop.eup %6507  ;;  %6527 = vpow2.f32 %v5379_v38  ;;  %v4341_v39 = vadd.f32 1.0, %v6506_v0 }
 0xa83   :  { %6529 = vrcp.f32 %v4339_v50  ;;  %v4344_v13 = vadd.f32 1.0, %v6508_v5 }
 0xa84   :  { %v4474_v36 = vpop.permute.xlu1 %4473  ;;  %6531 = vrcp.f32 %v4342_v61 }
 0xa85   :  { %v4556_v23 = vmul.f32 %v9185_v47, %v4474_v36  ;;  %v4472_v34 = vpop.permute.xlu0 %4471  ;;  %6533 = vrcp.f32 %v4341_v39 }
 0xa86   :  { %v4555_v1 = vmul.f32 %v9187_v29, %v4472_v34  ;;  %v9199_v34 = vpop.eup %6509  ;;  %6535 = vrcp.f32 %v4344_v13 }
 0xa87   :  { %4633 = vrot.lane.b32.xlu1 %v4556_v23, %s6837_s24  ;;  %9812 = vst [vmem:[#allocation43_spill] sm:$0xff] %v9199_v34  ;;  %v6512_v30 = vpop.eup %6511  ;;  %6537 = vpow2.f32 %v5382_v40 }
 0xa88   :  { %v4478_v25 = vpop.permute.xlu1 %4477  ;;  %4631 = vrot.lane.b32.xlu0 %v4555_v1, %s6837_s24  ;;  %v9203_v1 = vpop.eup %6513  ;;  %v4343_v5 = vadd.f32 1.0, %v6512_v30 }
 0xa89   :  { %v4558_v36 = vmul.f32 %v9182_v37, %v4478_v25  ;;  %v4476_v47 = vpop.permute.xlu0 %4475  ;;  %v9207_v25 = vpop.eup %6515 }
 0xa8a   :  { %v4557_v9 = vmul.f32 %v9191_v17, %v4476_v47  ;;  %9813 = vst [vmem:[#allocation44_spill] sm:$0xff] %v9207_v25  ;;  %v5381_v47 = vmul.f32 -1.442695, %v9119_v60  ;;  %v6518_v0 = vpop.eup %6517 }
 0xa8b   :  { %4637 = vrot.lane.b32.xlu1 %v4558_v36, %s6837_s24  ;;  %v4346_v37 = vadd.f32 1.0, %v6518_v0 }
 0xa8c   :  { %v4482_v23 = vpop.permute.xlu1 %4481  ;;  %4635 = vrot.lane.b32.xlu0 %v4557_v9, %s6837_s24  ;;  %v6520_v9 = vpop.eup %6519  ;;  %6539 = vpow2.f32 %v5381_v47 }
 0xa8d   :  { %v4560_v6 = vmul.f32 %v9199_v34, %v4482_v23  ;;  %v4480_v38 = vpop.permute.xlu0 %4479  ;;  %v9213_v17 = vpop.eup %6521  ;;  %6541 = vrcp.f32 %v4343_v5 }
 0xa8e   :  { %v4559_v50 = vmul.f32 %v9203_v1, %v4480_v38  ;;  %v9216_v34 = vpop.eup %6523  ;;  %6543 = vrcp.f32 %v4346_v37 }
 0xa8f   :  { %4641 = vrot.lane.b32.xlu1 %v4560_v6, %s6837_s24  ;;  %v6526_v30 = vpop.eup %6525  ;;  %v4345_v6 = vadd.f32 1.0, %v6520_v9 }
 0xa90   :  { %v4486_v36 = vpop.permute.xlu1 %4485  ;;  %4639 = vrot.lane.b32.xlu0 %v4559_v50, %s6837_s24  ;;  %v6528_v13 = vpop.eup %6527 }
 0xa91   :  { %v4562_v23 = vmul.f32 %v9207_v25, %v4486_v36  ;;  %v4484_v61 = vpop.permute.xlu0 %4483  ;;  %v9221_v50 = vpop.eup %6529  ;;  %v4348_v25 = vadd.f32 1.0, %v6526_v30  ;;  %6545 = vrcp.f32 %v4345_v6  ;;  %v4347_v0 = vadd.f32 1.0, %v6528_v13 }
 0xa92   :  { %v4561_v39 = vmul.f32 %v9213_v17, %v4484_v61  ;;  %9814 = vst [vmem:[#allocation45_spill] sm:$0xff] %v9221_v50  ;;  %v9226_v5 = vpop.eup %6531 }
 0xa93   :  { %4645 = vrot.lane.b32.xlu1 %v4562_v23, %s6837_s24  ;;  %9815 = vst [vmem:[#allocation46_spill] sm:$0xff] %v9226_v5  ;;  %v9229_v23 = vpop.eup %6533  ;;  %6547 = vrcp.f32 %v4348_v25 }
 0xa94   :  { %v4490_v38 = vpop.permute.xlu1 %4489  ;;  %4643 = vrot.lane.b32.xlu0 %v4561_v39, %s6837_s24  ;;  %6549 = vrcp.f32 %v4347_v0 }
 0xa95   :  { %v4564_v40 = vmul.f32 %v9216_v34, %v4490_v38  ;;  %v4488_v36 = vpop.permute.xlu0 %4487  ;;  %v9232_v38 = vpop.eup %6535 }
 0xa96   :  { %v4563_v47 = vmul.f32 %v9221_v50, %v4488_v36  ;;  %v6538_v30 = vpop.eup %6537 }
 0xa97   :  { %4649 = vrot.lane.b32.xlu1 %v4564_v40, %s6837_s24  ;;  %v6540_v6 = vpop.eup %6539 }
 0xa98   :  { %v4494_v9 = vpop.permute.xlu1 %4493  ;;  %4647 = vrot.lane.b32.xlu0 %v4563_v47, %s6837_s24  ;;  %v9237_v40 = vpop.eup %6541  ;;  %v4349_v50 = vadd.f32 1.0, %v6540_v6 }
 0xa99   :  { %v4566_v61 = vmul.f32 %v9226_v5, %v4494_v9  ;;  %v4492_v39 = vpop.permute.xlu0 %4491  ;;  %9816 = vst [vmem:[#allocation47_spill] sm:$0xff] %v9237_v40  ;;  %v4350_v9 = vadd.f32 1.0, %v6538_v30  ;;  %v9242_v25 = vpop.eup %6543 }
 0xa9a   :  { %v4565_v37 = vmul.f32 %v9229_v23, %v4492_v39 }
 0xa9b   :  { %4653 = vrot.lane.b32.xlu1 %v4566_v61, %s6837_s24  ;;  %v9245_v61 = vpop.eup %6545  ;;  %6551 = vrcp.f32 %v4350_v9 }
 0xa9c   :  { %v4498_v13 = vpop.permute.xlu1 %4497  ;;  %4651 = vrot.lane.b32.xlu0 %v4565_v37, %s6837_s24  ;;  %9817 = vst [vmem:[#allocation48_spill] sm:$0xff] %v9245_v61  ;;  %6553 = vrcp.f32 %v4349_v50 }
 0xa9d   :  { %v4568_v36 = vmul.f32 %v9232_v38, %v4498_v13  ;;  %v4496_v47 = vpop.permute.xlu0 %4495  ;;  %v9250_v30 = vpop.eup %6547 }
 0xa9e   :  { %v4567_v5 = vmul.f32 %v9237_v40, %v4496_v47 }
 0xa9f   :  { %4657 = vrot.lane.b32.xlu1 %v4568_v36, %s6837_s24  ;;  %v9253_v36 = vpop.eup %6549 }
 0xaa0   :  { %v4502_v0 = vpop.permute.xlu1 %4501  ;;  %4655 = vrot.lane.b32.xlu0 %v4567_v5, %s6837_s24 }
 0xaa1   :  { %v4570_v39 = vmul.f32 %v9242_v25, %v4502_v0  ;;  %v4500_v37 = vpop.permute.xlu0 %4499 }
 0xaa2   :  { %v4569_v13 = vmul.f32 %v9245_v61, %v4500_v37 }
 0xaa3   :  { %4661 = vrot.lane.b32.xlu1 %v4570_v39, %s6837_s24 }
 0xaa4   :  { %v4506_v6 = vpop.permute.xlu1 %4505  ;;  %4659 = vrot.lane.b32.xlu0 %v4569_v13, %s6837_s24 }
 0xaa5   :  { %v4572_v5 = vmul.f32 %v9250_v30, %v4506_v6  ;;  %v4504_v47 = vpop.permute.xlu0 %4503  ;;  %v9261_v37 = vpop.eup %6551 }
 0xaa6   :  { %v4571_v40 = vmul.f32 %v9253_v36, %v4504_v47  ;;  %9818 = vst [vmem:[#allocation49_spill] sm:$0xff] %v9261_v37  ;;  %v9263_v61 = vpop.eup %6553 }
 0xaa7   :  { %4665 = vrot.lane.b32.xlu1 %v4572_v5, %s6837_s24 }
 0xaa8   :  { %v4610_v9 = vpop.permute.xlu1 %4609  ;;  %4663 = vrot.lane.b32.xlu0 %v4571_v40, %s6837_s24 }
 0xaa9   :  { %v4704_v50 = vadd.f32 %v4610_v9, %v8948_v18  ;;  %v4608_v0 = vpop.permute.xlu0 %4607 }
 0xaaa   :  { %v4703_v39 = vadd.f32 %v4608_v0, %v8951_v16 }
 0xaab   :  { %6555 = vtanh.f32 %v4704_v50 }
 0xaac   :  { %6557 = vtanh.f32 %v4703_v39  ;;  %v4510_v13 = vpop.permute.xlu1 %4509 }
 0xaad   :  { %v4574_v6 = vmul.f32 %v9261_v37, %v4510_v13  ;;  %v4508_v47 = vpop.permute.xlu0 %4507 }
 0xaae   :  { %v4573_v5 = vmul.f32 %v9263_v61, %v4508_v47 }
 0xaaf   :  { %4669 = vrot.lane.b32.xlu1 %v4574_v6, %s6837_s24 }
 0xab0   :  { %v4614_v40 = vpop.permute.xlu1 %4613  ;;  %4667 = vrot.lane.b32.xlu0 %v4573_v5, %s6837_s24 }
 0xab1   :  { %v4706_v18 = vadd.f32 %v4614_v40, %v8958_v14  ;;  %v4612_v16 = vpop.permute.xlu0 %4611 }
 0xab2   :  { %v4705_v9 = vadd.f32 %v4612_v16, %v8961_v45 }
 0xab3   :  { %6559 = vtanh.f32 %v4706_v18 }
 0xab4   :  { %6561 = vtanh.f32 %v4705_v9  ;;  %v4618_v50 = vpop.permute.xlu1 %4617 }
 0xab5   :  { %v6556_v0 = vpop.eup %6555  ;;  %v4708_v39 = vadd.f32 %v4618_v50, %v8968_v21  ;;  %v4616_v13 = vpop.permute.xlu0 %4615 }
 0xab6   :  { %v6558_v37 = vpop.eup %6557  ;;  %v4707_v47 = vadd.f32 %v4616_v13, %v8971_v51  ;;  %4865 = vrot.lane.b32.xlu1 %v6556_v0, %s6836_s23 }
 0xab7   :  { %6563 = vtanh.f32 %v4708_v39  ;;  %4863 = vrot.lane.b32.xlu0 %v6558_v37, %s6836_s23 }
 0xab8   :  { %6565 = vtanh.f32 %v4707_v47  ;;  %v4622_v14 = vpop.permute.xlu1 %4621 }
 0xab9   :  { %v4710_v6 = vadd.f32 %v4622_v14, %v8978_v12  ;;  %v4620_v45 = vpop.permute.xlu0 %4619 }
 0xaba   :  { %v4709_v5 = vadd.f32 %v4620_v45, %v8981_v43 }
 0xabb   :  { %6567 = vtanh.f32 %v4710_v6 }
 0xabc   :  { %6569 = vtanh.f32 %v4709_v5 }
 0xabd   :  { %v6560_v40 = vpop.eup %6559 }
 0xabe   :  { %v6562_v21 = vpop.eup %6561  ;;  %v4626_v18 = vpop.permute.xlu1 %4625  ;;  %4869 = vrot.lane.b32.xlu1 %v6560_v40, %s6836_s23 }
 0xabf   :  { %v4712_v51 = vadd.f32 %v4626_v18, %v8988_v41  ;;  %4867 = vrot.lane.b32.xlu0 %v6562_v21, %s6836_s23  ;;  %v4624_v16 = vpop.permute.xlu0 %4623 }
 0xac0   :  { %v4711_v37 = vadd.f32 %v4624_v16, %v8991_v2 }
 0xac1   :  { %v6564_v9 = vpop.eup %6563  ;;  %6571 = vtanh.f32 %v4712_v51 }
 0xac2   :  { %v6566_v12 = vpop.eup %6565  ;;  %6573 = vtanh.f32 %v4711_v37  ;;  %4873 = vrot.lane.b32.xlu1 %v6564_v9, %s6836_s23 }
 0xac3   :  { %4871 = vrot.lane.b32.xlu0 %v6566_v12, %s6836_s23 }
 0xac5   :  { %v6568_v43 = vpop.eup %6567 }
 0xac6   :  { %v6570_v50 = vpop.eup %6569  ;;  %4877 = vrot.lane.b32.xlu1 %v6568_v43, %s6836_s23 }
 0xac7   :  { %4875 = vrot.lane.b32.xlu0 %v6570_v50, %s6836_s23 }
 0xacb   :  { %v6572_v41 = vpop.eup %6571 }
 0xacc   :  { %v6574_v0 = vpop.eup %6573  ;;  %4881 = vrot.lane.b32.xlu1 %v6572_v41, %s6836_s23 }
 0xacd   :  { %4879 = vrot.lane.b32.xlu0 %v6574_v0, %s6836_s23 }
 0xae9   :  { %v4630_v2 = vpop.permute.xlu1 %4629 }
 0xaea   :  { %v4714_v39 = vadd.f32 %v4630_v2, %v8998_v10  ;;  %v4628_v13 = vpop.permute.xlu0 %4627 }
 0xaeb   :  { %v4713_v47 = vadd.f32 %v4628_v13, %v9001_v42 }
 0xaec   :  { %6575 = vtanh.f32 %v4714_v39 }
 0xaed   :  { %6577 = vtanh.f32 %v4713_v47 }
 0xaf6   :  { %v6576_v14 = vpop.eup %6575 }
 0xaf7   :  { %v6578_v6 = vpop.eup %6577  ;;  %4885 = vrot.lane.b32.xlu1 %v6576_v14, %s6836_s23 }
 0xaf8   :  { %4883 = vrot.lane.b32.xlu0 %v6578_v6, %s6836_s23 }
 0xaf9   :  { %v4634_v45 = vpop.permute.xlu1 %4633 }
 0xafa   :  { %v4716_v5 = vadd.f32 %v4634_v45, %v9008_v63  ;;  %v4632_v40 = vpop.permute.xlu0 %4631 }
 0xafb   :  { %v4715_v21 = vadd.f32 %v4632_v40, %v9011_v57 }
 0xafc   :  { %6579 = vtanh.f32 %v4716_v5 }
 0xafd   :  { %6581 = vtanh.f32 %v4715_v21  ;;  %v4638_v10 = vpop.permute.xlu1 %4637 }
 0xafe   :  { %v4718_v18 = vadd.f32 %v4638_v10, %v9019_v59  ;;  %v4636_v42 = vpop.permute.xlu0 %4635 }
 0xaff   :  { %v4717_v51 = vadd.f32 %v4636_v42, %v9023_v31 }
 0xb00   :  { %6583 = vtanh.f32 %v4718_v18 }
 0xb01   :  { %6585 = vtanh.f32 %v4717_v51  ;;  %v4642_v16 = vpop.permute.xlu1 %4641 }
 0xb02   :  { %v4720_v37 = vadd.f32 %v4642_v16, %v9030_v8  ;;  %v4640_v9 = vpop.permute.xlu0 %4639 }
 0xb03   :  { %v4719_v12 = vadd.f32 %v4640_v9, %v9033_v48 }
 0xb04   :  { %6587 = vtanh.f32 %v4720_v37 }
 0xb05   :  { %6589 = vtanh.f32 %v4719_v12  ;;  %v4646_v63 = vpop.permute.xlu1 %4645 }
 0xb06   :  { %v6580_v57 = vpop.eup %6579  ;;  %v4722_v43 = vadd.f32 %v4646_v63, %v9041_v24  ;;  %v4644_v50 = vpop.permute.xlu0 %4643 }
 0xb07   :  { %v6582_v41 = vpop.eup %6581  ;;  %v4721_v59 = vadd.f32 %v4644_v50, %v9045_v52  ;;  %4889 = vrot.lane.b32.xlu1 %v6580_v57, %s6836_s23 }
 0xb08   :  { %6591 = vtanh.f32 %v4722_v43  ;;  %4887 = vrot.lane.b32.xlu0 %v6582_v41, %s6836_s23 }
 0xb09   :  { %6593 = vtanh.f32 %v4721_v59  ;;  %v4650_v31 = vpop.permute.xlu1 %4649 }
 0xb0a   :  { %v6584_v8 = vpop.eup %6583  ;;  %v4724_v48 = vadd.f32 %v4650_v31, %v9053_v54  ;;  %v4648_v0 = vpop.permute.xlu0 %4647 }
 0xb0b   :  { %v6586_v2 = vpop.eup %6585  ;;  %v4723_v39 = vadd.f32 %v4648_v0, %v9057_v62  ;;  %4893 = vrot.lane.b32.xlu1 %v6584_v8, %s6836_s23  ;;  %v4768_v8 = vsub.f32 1.0, %v9100_v19 }
 0xb0c   :  { %6595 = vtanh.f32 %v4724_v48  ;;  %4891 = vrot.lane.b32.xlu0 %v6586_v2, %s6836_s23  ;;  %v4767_v48 = vsub.f32 1.0, %v9109_v22 }
 0xb0d   :  { %6597 = vtanh.f32 %v4723_v39  ;;  %v4654_v24 = vpop.permute.xlu1 %4653 }
 0xb0e   :  { %v6588_v52 = vpop.eup %6587  ;;  %v4726_v13 = vadd.f32 %v4654_v24, %v9065_v15  ;;  %v4652_v47 = vpop.permute.xlu0 %4651  ;;  %v4800_v24 = vmul.f32 %v4768_v8, %v8232_v53  ;;  %v9826_v8 = vld [vmem:[#allocation17_spill] sm:$0xff] }
 0xb0f   :  { %v6590_v14 = vpop.eup %6589  ;;  %v4725_v6 = vadd.f32 %v4652_v47, %v9069_v55  ;;  %4897 = vrot.lane.b32.xlu1 %v6588_v52, %s6836_s23  ;;  %v4770_v52 = vsub.f32 1.0, %v9123_v58 }
 0xb10   :  { %6599 = vtanh.f32 %v4726_v13  ;;  %4895 = vrot.lane.b32.xlu0 %v6590_v14, %s6836_s23  ;;  %v4799_v13 = vmul.f32 %v4767_v48, %v8220_v27  ;;  %v4769_v14 = vsub.f32 1.0, %v9127_v33 }
 0xb11   :  { %6601 = vtanh.f32 %v4725_v6  ;;  %v4658_v54 = vpop.permute.xlu1 %4657  ;;  %v4802_v53 = vmul.f32 %v4770_v52, %v8245_v28 }
 0xb12   :  { %v6592_v62 = vpop.eup %6591  ;;  %v4728_v45 = vadd.f32 %v4658_v54, %v9076_v44  ;;  %v4656_v5 = vpop.permute.xlu0 %4655  ;;  %v4801_v27 = vmul.f32 %v4769_v14, %v8240_v32 }
 0xb13   :  { %v6594_v40 = vpop.eup %6593  ;;  %v4727_v21 = vadd.f32 %v4656_v5, %v9079_v20  ;;  %4901 = vrot.lane.b32.xlu1 %v6592_v62, %s6836_s23 }
 0xb14   :  { %6603 = vtanh.f32 %v4728_v45  ;;  %4899 = vrot.lane.b32.xlu0 %v6594_v40, %s6836_s23  ;;  %v4772_v45 = vsub.f32 1.0, %v9132_v4  ;;  %v4771_v40 = vsub.f32 1.0, %v9135_v11 }
 0xb15   :  { %6605 = vtanh.f32 %v4727_v21  ;;  %v4662_v15 = vpop.permute.xlu1 %4661 }
 0xb16   :  { %v6596_v55 = vpop.eup %6595  ;;  %v4730_v10 = vadd.f32 %v4662_v15, %v9088_v49  ;;  %v4660_v18 = vpop.permute.xlu0 %4659  ;;  %v4804_v28 = vmul.f32 %v4772_v45, %v8255_v7 }
 0xb17   :  { %v6598_v42 = vpop.eup %6597  ;;  %v4729_v51 = vadd.f32 %v4660_v18, %v9091_v35  ;;  %4905 = vrot.lane.b32.xlu1 %v6596_v55, %s6836_s23  ;;  %v9819_v18 = vld [vmem:[#allocation38_spill] sm:$0xff] }
 0xb18   :  { %6607 = vtanh.f32 %v4730_v10  ;;  %4903 = vrot.lane.b32.xlu0 %v6598_v42, %s6836_s23  ;;  %v4774_v10 = vsub.f32 1.0, %v9140_v3  ;;  %v4803_v32 = vmul.f32 %v4771_v40, %v9819_v18  ;;  %v4779_v40 = vsub.f32 1.0, %v9187_v29  ;;  %v9834_v18 = vld [vmem:[#allocation16_spill] sm:$0xff] }
 0xb19   :  { %6609 = vtanh.f32 %v4729_v51  ;;  %v4666_v44 = vpop.permute.xlu1 %4665  ;;  %v9820_v51 = vld [vmem:[#allocation8_spill] sm:$0xff] }
 0xb1a   :  { %v6600_v20 = vpop.eup %6599  ;;  %v4732_v16 = vadd.f32 %v4666_v44, %v9098_v26  ;;  %v4664_v37 = vpop.permute.xlu0 %4663  ;;  %v4773_v44 = vsub.f32 1.0, %v9820_v51 }
 0xb1b   :  { %v6602_v9 = vpop.eup %6601  ;;  %v4731_v12 = vadd.f32 %v4664_v37, %v9103_v46  ;;  %4909 = vrot.lane.b32.xlu1 %v6600_v20, %s6836_s23 }
 0xb1c   :  { %6611 = vtanh.f32 %v4732_v16  ;;  %4907 = vrot.lane.b32.xlu0 %v6602_v9, %s6836_s23  ;;  %v9821_v9 = vld [vmem:[#allocation39_spill] sm:$0xff] }
 0xb1d   :  { %6613 = vtanh.f32 %v4731_v12  ;;  %v4806_v7 = vmul.f32 %v4774_v10, %v9821_v9  ;;  %v9822_v12 = vld [vmem:[#allocation9_spill] sm:$0xff] }
 0xb1e   :  { %v6604_v49 = vpop.eup %6603 }
 0xb1f   :  { %v6606_v35 = vpop.eup %6605  ;;  %4913 = vrot.lane.b32.xlu1 %v6604_v49, %s6836_s23  ;;  %v4776_v49 = vsub.f32 1.0, %v9822_v12 }
 0xb20   :  { %4911 = vrot.lane.b32.xlu0 %v6606_v35, %s6836_s23  ;;  %v9823_v35 = vld [vmem:[#allocation20_spill] sm:$0xff] }
 0xb21   :  { %v4670_v63 = vpop.permute.xlu1 %4669 }
 0xb22   :  { %v6608_v57 = vpop.eup %6607  ;;  %v4734_v26 = vadd.f32 %v4670_v63, %v9116_v56  ;;  %v4668_v43 = vpop.permute.xlu0 %4667  ;;  %v4805_v63 = vmul.f32 %v4773_v44, %v9823_v35  ;;  %v9838_v35 = vld [vmem:[#allocation24_spill] sm:$0xff] }
 0xb23   :  { %v6610_v50 = vpop.eup %6609  ;;  %v4733_v46 = vadd.f32 %v4668_v43, %v9119_v60  ;;  %4917 = vrot.lane.b32.xlu1 %v6608_v57, %s6836_s23  ;;  %v9824_v57 = vld [vmem:[#allocation10_spill] sm:$0xff] }
 0xb24   :  { %6615 = vtanh.f32 %v4734_v26  ;;  %4915 = vrot.lane.b32.xlu0 %v6610_v50, %s6836_s23  ;;  %v4775_v26 = vsub.f32 1.0, %v9824_v57 }
 0xb25   :  { %6617 = vtanh.f32 %v4733_v46 }
 0xb26   :  { %v6612_v41 = vpop.eup %6611 }
 0xb27   :  { %v6614_v59 = vpop.eup %6613  ;;  %4921 = vrot.lane.b32.xlu1 %v6612_v41, %s6836_s23 }
 0xb28   :  { %4919 = vrot.lane.b32.xlu0 %v6614_v59, %s6836_s23  ;;  %v4866_v31 = vpop.permute.xlu1 %4865 }
 0xb29   :  { %v4864_v56 = vpop.permute.xlu0 %4863  ;;  %v4960_v60 = vmul.f32 %v9100_v19, %v4866_v31 }
 0xb2a   :  { %v4959_v2 = vmul.f32 %v9109_v22, %v4864_v56  ;;  %v4807_v56 = vmul.f32 %v4775_v26, %v9826_v8 }
 0xb2b   :  { %v4992_v6 = vadd.f32 %v4960_v60, %v4800_v24  ;;  %v9828_v24 = vld [vmem:[#allocation12_spill] sm:$0xff] }
 0xb2c   :  { %v4991_v62 = vadd.f32 %v4959_v2, %v4799_v13  ;;  %v9827_v2 = vld [vmem:[#allocation11_spill] sm:$0xff]  ;;  %v4777_v52 = vsub.f32 1.0, %v9828_v24 }
 0xb2e   :  { %v6616_v0 = vpop.eup %6615 }
 0xb2f   :  { %v6618_v39 = vpop.eup %6617  ;;  %4925 = vrot.lane.b32.xlu1 %v6616_v0, %s6836_s23 }
 0xb30   :  { %v4870_v47 = vpop.permute.xlu1 %4869  ;;  %4923 = vrot.lane.b32.xlu0 %v6618_v39, %s6836_s23  ;;  %v4778_v39 = vsub.f32 1.0, %v9827_v2 }
 0xb31   :  { %v4962_v19 = vmul.f32 %v9123_v58, %v4870_v47  ;;  %v4868_v54 = vpop.permute.xlu0 %4867  ;;  %v9829_v47 = vld [vmem:[#allocation14_spill] sm:$0xff] }
 0xb32   :  { %v4961_v22 = vmul.f32 %v9127_v33, %v4868_v54  ;;  %v4810_v14 = vmul.f32 %v4778_v39, %v9829_v47  ;;  %v9830_v54 = vld [vmem:[#allocation22_spill] sm:$0xff] }
 0xb33   :  { %5057 = vrot.lane.b32.xlu1 %v4992_v6, %s6836_s23  ;;  %v4994_v21 = vadd.f32 %v4962_v19, %v4802_v53 }
 0xb34   :  { %v4874_v5 = vpop.permute.xlu1 %4873  ;;  %5055 = vrot.lane.b32.xlu0 %v4991_v62, %s6836_s23  ;;  %v4993_v55 = vadd.f32 %v4961_v22, %v4801_v27  ;;  %v4809_v62 = vmul.f32 %v4777_v52, %v9830_v54  ;;  %v9831_v27 = vld [vmem:[#allocation41_spill] sm:$0xff]  ;;  %v9842_v52 = vld [vmem:[#allocation18_spill] sm:$0xff] }
 0xb35   :  { %v4964_v58 = vmul.f32 %v9132_v4, %v4874_v5  ;;  %v4872_v15 = vpop.permute.xlu0 %4871  ;;  %v4780_v5 = vsub.f32 1.0, %v9831_v27 }
 0xb36   :  { %v4963_v33 = vmul.f32 %v9135_v11, %v4872_v15 }
 0xb37   :  { %5061 = vrot.lane.b32.xlu1 %v4994_v21, %s6836_s23  ;;  %v4996_v20 = vadd.f32 %v4964_v58, %v4804_v28  ;;  %v9832_v58 = vld [vmem:[#allocation23_spill] sm:$0xff]  ;;  %v9833_v28 = vld [vmem:[#allocation13_spill] sm:$0xff] }
 0xb38   :  { %v4878_v42 = vpop.permute.xlu1 %4877  ;;  %5059 = vrot.lane.b32.xlu0 %v4993_v55, %s6836_s23  ;;  %v4995_v37 = vadd.f32 %v4963_v33, %v4803_v32  ;;  %v4812_v15 = vmul.f32 %v4780_v5, %v9832_v58  ;;  %v4782_v10 = vsub.f32 1.0, %v9833_v28  ;;  %v4811_v32 = vmul.f32 %v4779_v40, %v9834_v18  ;;  %v9845_v5 = vld [vmem:[#allocation27_spill] sm:$0xff] }
 0xb39   :  { %v4966_v4 = vmul.f32 %v9140_v3, %v4878_v42  ;;  %v4876_v16 = vpop.permute.xlu0 %4875  ;;  %v9825_v3 = vld [vmem:[#allocation21_spill] sm:$0xff] }
 0xb3a   :  { %v4965_v11 = vmul.f32 %v9820_v51, %v4876_v16  ;;  %v4808_v41 = vmul.f32 %v4776_v49, %v9825_v3  ;;  %v9835_v51 = vld [vmem:[#allocation42_spill] sm:$0xff] }
 0xb3b   :  { %5065 = vrot.lane.b32.xlu1 %v4996_v20, %s6836_s23  ;;  %v4998_v43 = vadd.f32 %v4966_v4, %v4806_v7  ;;  %v4781_v44 = vsub.f32 1.0, %v9835_v51 }
 0xb3c   :  { %5063 = vrot.lane.b32.xlu0 %v4995_v37, %s6836_s23  ;;  %v4997_v50 = vadd.f32 %v4965_v11, %v4805_v63  ;;  %v9836_v37 = vld [vmem:[#allocation15_spill] sm:$0xff] }
 0xb3d   :  { %v4814_v11 = vmul.f32 %v4782_v10, %v9836_v37  ;;  %v4813_v63 = vmul.f32 %v4781_v44, %v9838_v35  ;;  %v4789_v10 = vsub.f32 1.0, %v9229_v23 }
 0xb3e   :  { %v4882_v46 = vpop.permute.xlu1 %4881 }
 0xb3f   :  { %v4968_v59 = vmul.f32 %v9822_v12, %v4882_v46  ;;  %5069 = vrot.lane.b32.xlu1 %v4998_v43, %s6836_s23  ;;  %v4880_v31 = vpop.permute.xlu0 %4879  ;;  %v9837_v12 = vld [vmem:[#allocation43_spill] sm:$0xff]  ;;  %v9839_v46 = vld [vmem:[#allocation25_spill] sm:$0xff] }
 0xb40   :  { %v4967_v48 = vmul.f32 %v9824_v57, %v4880_v31  ;;  %5067 = vrot.lane.b32.xlu0 %v4997_v50, %s6836_s23  ;;  %v4784_v49 = vsub.f32 1.0, %v9837_v12  ;;  %v9840_v31 = vld [vmem:[#allocation44_spill] sm:$0xff] }
 0xb41   :  { %v5000_v60 = vadd.f32 %v4968_v59, %v4808_v41  ;;  %v4786_v8 = vsub.f32 1.0, %v9840_v31 }
 0xb42   :  { %v4999_v0 = vadd.f32 %v4967_v48, %v4807_v56  ;;  %v4816_v3 = vmul.f32 %v4784_v49, %v9839_v46  ;;  %v9841_v56 = vld [vmem:[#allocation19_spill] sm:$0xff] }
 0xb43   :  { %5073 = vrot.lane.b32.xlu1 %v5000_v60, %s6836_s23 }
 0xb44   :  { %5071 = vrot.lane.b32.xlu0 %v4999_v0, %s6836_s23  ;;  %v4785_v0 = vsub.f32 1.0, %v9213_v17 }
 0xb69   :  { %v4886_v13 = vpop.permute.xlu1 %4885 }
 0xb6a   :  { %v4970_v6 = vmul.f32 %v9827_v2, %v4886_v13  ;;  %v4884_v19 = vpop.permute.xlu0 %4883  ;;  %v4818_v13 = vmul.f32 %v4786_v8, %v9842_v52  ;;  %v4795_v52 = vsub.f32 1.0, %v9253_v36 }
 0xb6b   :  { %v4969_v22 = vmul.f32 %v9828_v24, %v4884_v19  ;;  %v9843_v19 = vld [vmem:[#allocation26_spill] sm:$0xff] }
 0xb6c   :  { %v5002_v53 = vadd.f32 %v4970_v6, %v4810_v14  ;;  %v4788_v6 = vsub.f32 1.0, %v9216_v34  ;;  %v4817_v54 = vmul.f32 %v4785_v0, %v9843_v19  ;;  %v4796_v0 = vsub.f32 1.0, %v9250_v30 }
 0xb6d   :  { %v5001_v45 = vadd.f32 %v4969_v22, %v4809_v62  ;;  %v9844_v62 = vld [vmem:[#allocation45_spill] sm:$0xff] }
 0xb6e   :  { %5077 = vrot.lane.b32.xlu1 %v5002_v53, %s6836_s23  ;;  %v4787_v22 = vsub.f32 1.0, %v9844_v62  ;;  %v4820_v40 = vmul.f32 %v4788_v6, %v9845_v5  ;;  %v9856_v6 = vld [vmem:[#allocation35_spill] sm:$0xff] }
 0xb6f   :  { %5075 = vrot.lane.b32.xlu0 %v5001_v45, %s6836_s23  ;;  %v4828_v19 = vmul.f32 %v4796_v0, %v9856_v6 }
 0xb79   :  { %v4890_v21 = vpop.permute.xlu1 %4889 }
 0xb7a   :  { %v4972_v55 = vmul.f32 %v9831_v27, %v4890_v21  ;;  %v4888_v33 = vpop.permute.xlu0 %4887 }
 0xb7b   :  { %v4971_v42 = vmul.f32 %v9187_v29, %v4888_v33  ;;  %v4783_v29 = vsub.f32 1.0, %v9203_v1  ;;  %v9847_v33 = vld [vmem:[#allocation28_spill] sm:$0xff] }
 0xb7c   :  { %v5004_v20 = vadd.f32 %v4972_v55, %v4812_v15  ;;  %v9846_v15 = vld [vmem:[#allocation46_spill] sm:$0xff] }
 0xb7d   :  { %v5003_v4 = vadd.f32 %v4971_v42, %v4811_v32  ;;  %v4894_v16 = vpop.permute.xlu1 %4893  ;;  %v4815_v48 = vmul.f32 %v4783_v29, %v9841_v56  ;;  %v4790_v55 = vsub.f32 1.0, %v9846_v15  ;;  %v9854_v56 = vld [vmem:[#allocation33_spill] sm:$0xff] }
 0xb7e   :  { %v4974_v9 = vmul.f32 %v9833_v28, %v4894_v16  ;;  %5081 = vrot.lane.b32.xlu1 %v5004_v20, %s6836_s23  ;;  %v4892_v7 = vpop.permute.xlu0 %4891  ;;  %v4819_v28 = vmul.f32 %v4787_v22, %v9847_v33  ;;  %v9849_v16 = vld [vmem:[#allocation30_spill] sm:$0xff]  ;;  %v9860_v33 = vld [vmem:[#allocation40_spill] sm:$0xff] }
 0xb7f   :  { %v4973_v57 = vmul.f32 %v9835_v51, %v4892_v7  ;;  %5079 = vrot.lane.b32.xlu0 %v5003_v4, %s6836_s23  ;;  %v9848_v51 = vld [vmem:[#allocation29_spill] sm:$0xff]  ;;  %v4792_v4 = vsub.f32 1.0, %v9232_v38  ;;  %v4821_v37 = vmul.f32 %v4789_v10, %v9849_v16 }
 0xb80   :  { %v5006_v26 = vadd.f32 %v4974_v9, %v4814_v11  ;;  %v4822_v44 = vmul.f32 %v4790_v55, %v9848_v51  ;;  %v9850_v9 = vld [vmem:[#allocation47_spill] sm:$0xff] }
 0xb81   :  { %v5005_v43 = vadd.f32 %v4973_v57, %v4813_v63  ;;  %v4898_v50 = vpop.permute.xlu1 %4897  ;;  %v4791_v7 = vsub.f32 1.0, %v9850_v9  ;;  %v9851_v63 = vld [vmem:[#allocation31_spill] sm:$0xff] }
 0xb82   :  { %v4976_v41 = vmul.f32 %v9837_v12, %v4898_v50  ;;  %5085 = vrot.lane.b32.xlu1 %v5006_v26, %s6836_s23  ;;  %v4896_v59 = vpop.permute.xlu0 %4895  ;;  %v4824_v57 = vmul.f32 %v4792_v4, %v9851_v63  ;;  %v9852_v50 = vld [vmem:[#allocation32_spill] sm:$0xff] }
 0xb83   :  { %v4975_v60 = vmul.f32 %v9203_v1, %v4896_v59  ;;  %5083 = vrot.lane.b32.xlu0 %v5005_v43, %s6836_s23  ;;  %v4794_v43 = vsub.f32 1.0, %v9242_v25  ;;  %v4823_v46 = vmul.f32 %v4791_v7, %v9852_v50 }
 0xb84   :  { %v5008_v2 = vadd.f32 %v4976_v41, %v4816_v3  ;;  %v9853_v3 = vld [vmem:[#allocation48_spill] sm:$0xff] }
 0xb85   :  { %v5007_v39 = vadd.f32 %v4975_v60, %v4815_v48  ;;  %v4902_v24 = vpop.permute.xlu1 %4901  ;;  %v4793_v41 = vsub.f32 1.0, %v9853_v3  ;;  %v4826_v48 = vmul.f32 %v4794_v43, %v9854_v56 }
 0xb86   :  { %v4978_v47 = vmul.f32 %v9840_v31, %v4902_v24  ;;  %5089 = vrot.lane.b32.xlu1 %v5008_v2, %s6836_s23  ;;  %v4900_v14 = vpop.permute.xlu0 %4899  ;;  %v9855_v2 = vld [vmem:[#allocation34_spill] sm:$0xff] }
 0xb87   :  { %v4977_v1 = vmul.f32 %v9213_v17, %v4900_v14  ;;  %5087 = vrot.lane.b32.xlu0 %v5007_v39, %s6836_s23  ;;  %v4825_v39 = vmul.f32 %v4793_v41, %v9855_v2 }
 0xb88   :  { %v5010_v53 = vadd.f32 %v4978_v47, %v4818_v13 }
 0xb89   :  { %v5009_v45 = vadd.f32 %v4977_v1, %v4817_v54  ;;  %v4906_v27 = vpop.permute.xlu1 %4905  ;;  %v9857_v1 = vld [vmem:[#allocation36_spill] sm:$0xff] }
 0xb8a   :  { %v4980_v21 = vmul.f32 %v9216_v34, %v4906_v27  ;;  %5093 = vrot.lane.b32.xlu1 %v5010_v53, %s6836_s23  ;;  %v4904_v58 = vpop.permute.xlu0 %4903  ;;  %v9858_v27 = vld [vmem:[#allocation49_spill] sm:$0xff] }
 0xb8b   :  { %v4979_v17 = vmul.f32 %v9844_v62, %v4904_v58  ;;  %5091 = vrot.lane.b32.xlu0 %v5009_v45, %s6836_s23  ;;  %v4827_v62 = vmul.f32 %v4795_v52, %v9857_v1  ;;  %v4798_v5 = vsub.f32 1.0, %v9858_v27 }
 0xb8c   :  { %v5012_v18 = vadd.f32 %v4980_v21, %v4820_v40  ;;  %v4797_v40 = vsub.f32 1.0, %v9263_v61  ;;  %v9859_v21 = vld [vmem:[#allocation37_spill] sm:$0xff] }
 0xb8d   :  { %v5011_v32 = vadd.f32 %v4979_v17, %v4819_v28  ;;  %v4910_v42 = vpop.permute.xlu1 %4909  ;;  %v4830_v58 = vmul.f32 %v4798_v5, %v9859_v21 }
 0xb8e   :  { %v4982_v34 = vmul.f32 %v9846_v15, %v4910_v42  ;;  %5097 = vrot.lane.b32.xlu1 %v5012_v18, %s6836_s23  ;;  %v4908_v20 = vpop.permute.xlu0 %4907 }
 0xb8f   :  { %v4981_v11 = vmul.f32 %v9229_v23, %v4908_v20  ;;  %5095 = vrot.lane.b32.xlu0 %v5011_v32, %s6836_s23 }
 0xb90   :  { %v5014_v12 = vadd.f32 %v4982_v34, %v4822_v44 }
 0xb91   :  { %v5013_v49 = vadd.f32 %v4981_v11, %v4821_v37  ;;  %v4914_v35 = vpop.permute.xlu1 %4913 }
 0xb92   :  { %v4984_v29 = vmul.f32 %v9232_v38, %v4914_v35  ;;  %5101 = vrot.lane.b32.xlu1 %v5014_v12, %s6836_s23  ;;  %v4912_v26 = vpop.permute.xlu0 %4911 }
 0xb93   :  { %v4983_v23 = vmul.f32 %v9850_v9, %v4912_v26  ;;  %5099 = vrot.lane.b32.xlu0 %v5013_v49, %s6836_s23 }
 0xb94   :  { %v5016_v59 = vadd.f32 %v4984_v29, %v4824_v57 }
 0xb95   :  { %v5015_v31 = vadd.f32 %v4983_v23, %v4823_v46  ;;  %v4918_v8 = vpop.permute.xlu1 %4917 }
 0xb96   :  { %v4986_v38 = vmul.f32 %v9242_v25, %v4918_v8  ;;  %5105 = vrot.lane.b32.xlu1 %v5016_v59, %s6836_s23  ;;  %v4916_v60 = vpop.permute.xlu0 %4915 }
 0xb97   :  { %v4985_v24 = vmul.f32 %v9853_v3, %v4916_v60  ;;  %5103 = vrot.lane.b32.xlu0 %v5015_v31, %s6836_s23 }
 0xb98   :  { %v5018_v13 = vadd.f32 %v4986_v38, %v4826_v48 }
 0xb99   :  { %v5017_v47 = vadd.f32 %v4985_v24, %v4825_v39  ;;  %v4922_v14 = vpop.permute.xlu1 %4921 }
 0xb9a   :  { %v4988_v25 = vmul.f32 %v9250_v30, %v4922_v14  ;;  %5109 = vrot.lane.b32.xlu1 %v5018_v13, %s6836_s23  ;;  %v4920_v54 = vpop.permute.xlu0 %4919 }
 0xb9b   :  { %v4987_v22 = vmul.f32 %v9253_v36, %v4920_v54  ;;  %5107 = vrot.lane.b32.xlu0 %v5017_v47, %s6836_s23  ;;  %v4829_v36 = vmul.f32 %v4797_v40, %v9860_v33 }
 0xb9c   :  { %v5020_v53 = vadd.f32 %v4988_v25, %v4828_v19 }
 0xb9d   :  { %v5019_v45 = vadd.f32 %v4987_v22, %v4827_v62 }
 0xb9e   :  { %5113 = vrot.lane.b32.xlu1 %v5020_v53, %s6836_s23 }
 0xb9f   :  { %5111 = vrot.lane.b32.xlu0 %v5019_v45, %s6836_s23 }
 0xba1   :  { %v4926_v30 = vpop.permute.xlu1 %4925 }
 0xba2   :  { %v4990_v15 = vmul.f32 %v9858_v27, %v4926_v30  ;;  %v4924_v55 = vpop.permute.xlu0 %4923 }
 0xba3   :  { %v4989_v28 = vmul.f32 %v9263_v61, %v4924_v55 }
 0xba4   :  { %v5022_v17 = vadd.f32 %v4990_v15, %v4830_v58 }
 0xba5   :  { %v5021_v10 = vadd.f32 %v4989_v28, %v4829_v36  ;;  %v5058_v18 = vpop.permute.xlu1 %5057 }
 0xba6   :  { %5152 = vst.msk [vmem:[%s9594_s7 + $0x8] sm:$0xff] %vm97_vm0, %v5058_v18  ;;  %5117 = vrot.lane.b32.xlu1 %v5022_v17, %s6836_s23  ;;  %v5056_v32 = vpop.permute.xlu0 %5055 }
 0xba7   :  { %5151 = vst.msk [vmem:[%s9594_s7] sm:$0xff] %vm97_vm0, %v5056_v32  ;;  %5115 = vrot.lane.b32.xlu0 %v5021_v10, %s6836_s23 }
 0xba9   :  { %v5062_v42 = vpop.permute.xlu1 %5061 }
 0xbaa   :  { %5154 = vst.msk [vmem:[%s9594_s7 + $0x18] sm:$0xff] %vm97_vm0, %v5062_v42  ;;  %v5060_v61 = vpop.permute.xlu0 %5059 }
 0xbab   :  { %5153 = vst.msk [vmem:[%s9594_s7 + $0x10] sm:$0xff] %vm97_vm0, %v5060_v61 }
 0xbad   :  { %v5066_v51 = vpop.permute.xlu1 %5065 }
 0xbae   :  { %5156 = vst.msk [vmem:[%s9594_s7 + $0x28] sm:$0xff] %vm97_vm0, %v5066_v51  ;;  %v5064_v44 = vpop.permute.xlu0 %5063 }
 0xbaf   :  { %5155 = vst.msk [vmem:[%s9594_s7 + $0x20] sm:$0xff] %vm97_vm0, %v5064_v44 }
 0xbb1   :  { %v5070_v34 = vpop.permute.xlu1 %5069 }
 0xbb2   :  { %5158 = vst.msk [vmem:[%s9594_s7 + $0x38] sm:$0xff] %vm97_vm0, %v5070_v34  ;;  %v5068_v20 = vpop.permute.xlu0 %5067 }
 0xbb3   :  { %5157 = vst.msk [vmem:[%s9594_s7 + $0x30] sm:$0xff] %vm97_vm0, %v5068_v20 }
 0xbb5   :  { %v5074_v4 = vpop.permute.xlu1 %5073 }
 0xbb6   :  { %5160 = vst.msk [vmem:[%s9594_s7 + $0x48] sm:$0xff] %vm97_vm0, %v5074_v4  ;;  %v5072_v16 = vpop.permute.xlu0 %5071 }
 0xbb7   :  { %5159 = vst.msk [vmem:[%s9594_s7 + $0x40] sm:$0xff] %vm97_vm0, %v5072_v16 }
 0xbe0   :  { %v5078_v37 = vpop.permute.xlu1 %5077 }
 0xbe1   :  { %5162 = vst.msk [vmem:[%s9594_s7 + $0x58] sm:$0xff] %vm97_vm0, %v5078_v37  ;;  %v5076_v11 = vpop.permute.xlu0 %5075 }
 0xbe2   :  { %5161 = vst.msk [vmem:[%s9594_s7 + $0x50] sm:$0xff] %vm97_vm0, %v5076_v11 }
 0xbf0   :  { %v5082_v9 = vpop.permute.xlu1 %5081 }
 0xbf1   :  { %5164 = vst.msk [vmem:[%s9594_s7 + $0x68] sm:$0xff] %vm97_vm0, %v5082_v9  ;;  %v5080_v7 = vpop.permute.xlu0 %5079 }
 0xbf2   :  { %5163 = vst.msk [vmem:[%s9594_s7 + $0x60] sm:$0xff] %vm97_vm0, %v5080_v7 }
 0xbf4   :  { %v5086_v12 = vpop.permute.xlu1 %5085 }
 0xbf5   :  { %5166 = vst.msk [vmem:[%s9594_s7 + $0x78] sm:$0xff] %vm97_vm0, %v5086_v12  ;;  %v5084_v49 = vpop.permute.xlu0 %5083 }
 0xbf6   :  { %5165 = vst.msk [vmem:[%s9594_s7 + $0x70] sm:$0xff] %vm97_vm0, %v5084_v49 }
 0xbf8   :  { %v5090_v35 = vpop.permute.xlu1 %5089 }
 0xbf9   :  { %5168 = vst.msk [vmem:[%s9594_s7 + $0x88] sm:$0xff] %vm97_vm0, %v5090_v35  ;;  %v5088_v63 = vpop.permute.xlu0 %5087 }
 0xbfa   :  { %5167 = vst.msk [vmem:[%s9594_s7 + $0x80] sm:$0xff] %vm97_vm0, %v5088_v63 }
 0xbfc   :  { %v5094_v57 = vpop.permute.xlu1 %5093 }
 0xbfd   :  { %5170 = vst.msk [vmem:[%s9594_s7 + $0x98] sm:$0xff] %vm97_vm0, %v5094_v57  ;;  %v5092_v29 = vpop.permute.xlu0 %5091 }
 0xbfe   :  { %5169 = vst.msk [vmem:[%s9594_s7 + $0x90] sm:$0xff] %vm97_vm0, %v5092_v29 }
 0xc00   :  { %v5098_v26 = vpop.permute.xlu1 %5097 }
 0xc01   :  { %5172 = vst.msk [vmem:[%s9594_s7 + $0xa8] sm:$0xff] %vm97_vm0, %v5098_v26  ;;  %v5096_v43 = vpop.permute.xlu0 %5095 }
 0xc02   :  { %5171 = vst.msk [vmem:[%s9594_s7 + $0xa0] sm:$0xff] %vm97_vm0, %v5096_v43 }
 0xc04   :  { %v5102_v50 = vpop.permute.xlu1 %5101 }
 0xc05   :  { %5174 = vst.msk [vmem:[%s9594_s7 + $0xb8] sm:$0xff] %vm97_vm0, %v5102_v50  ;;  %v5100_v46 = vpop.permute.xlu0 %5099 }
 0xc06   :  { %5173 = vst.msk [vmem:[%s9594_s7 + $0xb0] sm:$0xff] %vm97_vm0, %v5100_v46 }
 0xc08   :  { %v5106_v23 = vpop.permute.xlu1 %5105 }
 0xc09   :  { %5176 = vst.msk [vmem:[%s9594_s7 + $0xc8] sm:$0xff] %vm97_vm0, %v5106_v23  ;;  %v5104_v3 = vpop.permute.xlu0 %5103 }
 0xc0a   :  { %5175 = vst.msk [vmem:[%s9594_s7 + $0xc0] sm:$0xff] %vm97_vm0, %v5104_v3 }
 0xc0c   :  { %v5110_v41 = vpop.permute.xlu1 %5109 }
 0xc0d   :  { %5178 = vst.msk [vmem:[%s9594_s7 + $0xd8] sm:$0xff] %vm97_vm0, %v5110_v41  ;;  %v5108_v59 = vpop.permute.xlu0 %5107 }
 0xc0e   :  { %5177 = vst.msk [vmem:[%s9594_s7 + $0xd0] sm:$0xff] %vm97_vm0, %v5108_v59 }
 0xc10   :  { %v5114_v31 = vpop.permute.xlu1 %5113 }
 0xc11   :  { %5180 = vst.msk [vmem:[%s9594_s7 + $0xe8] sm:$0xff] %vm97_vm0, %v5114_v31  ;;  %v5112_v8 = vpop.permute.xlu0 %5111 }
 0xc12   :  { %5179 = vst.msk [vmem:[%s9594_s7 + $0xe0] sm:$0xff] %vm97_vm0, %v5112_v8 }
 0xc18   :  { %v5118_v56 = vpop.permute.xlu1 %5117 }
 0xc19   :  { %5182 = vst.msk [vmem:[%s9594_s7 + $0xf8] sm:$0xff] %vm97_vm0, %v5118_v56  ;;  %v5116_v48 = vpop.permute.xlu0 %5115 }
 0xc1a   :  { %5181 = vst.msk [vmem:[%s9594_s7 + $0xf0] sm:$0xff] %vm97_vm0, %v5116_v48 }
 0xc1b   :  { %5187 = vsyncpa [#allocation3], 1 }
 0xc1c   :  { %5188 = vsyncpa [#allocation5], 1 }

</bundles_post_ra>
